<compile_context>
chip_gen: v5e
topology: v5e:2x2
jax: 0.10.0
libtpu: 0.0.40
codegen_flags: <defaults>
</compile_context>

<pallas_src>
import functools

import jax
import jax.numpy as jnp
from jax.experimental import pallas as pl
from jax.experimental.pallas import tpu as pltpu


# ---------------------------------------------------------------------------------------------
# Fused single-pass kernel: the whole per-sample (C, S) slab is resident in VMEM.
# ---------------------------------------------------------------------------------------------

def _scse_fused_kernel(x_ref, w1t_ref, b1t_ref, w2_ref, b2_ref, ws_ref, bs_ref, o_ref, *, inv_s):
    x = x_ref[0].astype(jnp.float32)                                   # (C, S), f32 compute

    # ---- cSE: global average pool + C -> Cr -> C matvec chain + sigmoid (tiny VPU/XLU work) ----
    mean = jnp.sum(x, axis=1, keepdims=True) * inv_s                   # (C, 1)
    h = jnp.sum(w1t_ref[...] * mean, axis=0, keepdims=True) + b1t_ref[...]   # (1, Cr)
    h = jnp.maximum(h, 0.0)
    cse = jnp.sum(w2_ref[...] * h, axis=1, keepdims=True) + b2_ref[...]      # (C, 1)
    cse_gate = jax.nn.sigmoid(cse)                                     # (C, 1)

    # ---- sSE: 1x1x1 conv C -> 1 at every voxel: skinny MXU dot (overlaps with VPU gating) ----
    sse = jnp.dot(ws_ref[...], x, preferred_element_type=jnp.float32) + bs_ref[...]  # (1, S)
    sse_gate = jax.nn.sigmoid(sse)                                     # (1, S)

    # factored gating: one big (C, S) VPU multiply instead of two.
    o_ref[0] = (x * (cse_gate + sse_gate)).astype(o_ref.dtype)


def _scse_fused(x_flat, params):
    N, C, S = x_flat.shape
    Cr = params["w1"].shape[0]
    w1t = params["w1"].T                      # (C, Cr)   (tiny, one-time)
    b1t = params["b1"].T                      # (1, Cr)

    kernel = functools.partial(_scse_fused_kernel, inv_s=1.0 / float(S))
    return pl.pallas_call(
        kernel,
        out_shape=jax.ShapeDtypeStruct((N, C, S), x_flat.dtype),
        grid_spec=pltpu.PrefetchScalarGridSpec(
            num_scalar_prefetch=0,
            grid=(N,),
            in_specs=[
                pl.BlockSpec((1, C, S), lambda n: (n, 0, 0)),   # x slab (full extent, no pad)
                pl.BlockSpec((C, Cr), lambda n: (0, 0)),        # w1^T   (resident)
                pl.BlockSpec((1, Cr), lambda n: (0, 0)),        # b1^T   (resident)
                pl.BlockSpec((C, Cr), lambda n: (0, 0)),        # w2     (resident)
                pl.BlockSpec((C, 1), lambda n: (0, 0)),         # b2     (resident)
                pl.BlockSpec((1, C), lambda n: (0, 0)),         # ws     (resident)
                pl.BlockSpec((1, 1), lambda n: (0, 0)),         # bs     (resident)
            ],
            out_specs=pl.BlockSpec((1, C, S), lambda n: (n, 0, 0)),
        ),
        compiler_params=pltpu.CompilerParams(dimension_semantics=("parallel",)),
    )(x_flat, w1t, b1t, params["w2"], params["b2"], params["ws"], params["bs"])


# ---------------------------------------------------------------------------------------------
# Two-pass tiled fallback (large S): pass 1 = channel sums, pass 2 = gating apply.
# ---------------------------------------------------------------------------------------------

def _channel_sum_kernel(x_ref, sum_ref, *, true_s, tile_s):
    # x_ref block: (1, C, TS); sum_ref block: (1, C, 1), resident across the S-tile axis.
    s = pl.program_id(1)

    @pl.when(s == 0)
    def _():
        sum_ref[...] = jnp.zeros_like(sum_ref)

    x = x_ref[0].astype(jnp.float32)                                   # (C, TS)
    if true_s % tile_s != 0:
        # Ragged last tile: lanes >= true_s hold stale VMEM — mask before reducing.
        lane = jax.lax.broadcasted_iota(jnp.int32, x.shape, dimension=1)
        x = jnp.where(lane + s * tile_s < true_s, x, 0.0)
    sum_ref[0] += jnp.sum(x, axis=1, keepdims=True)                    # (C, 1)


def _scse_apply_kernel(g_ref, x_ref, ws_ref, bs_ref, o_ref):
    x = x_ref[0].astype(jnp.float32)                                   # (C, TS)
    cse_gate = g_ref[0]                                                # (C, 1) precomputed
    sse = jnp.dot(ws_ref[...], x, preferred_element_type=jnp.float32) + bs_ref[...]  # (1, TS)
    sse_gate = jax.nn.sigmoid(sse)
    # Ragged last tile: out-of-range lanes are never written back (clamped write), so no mask.
    o_ref[0] = (x * (cse_gate + sse_gate)).astype(o_ref.dtype)


def _scse_two_pass(x_flat, params, tile_s):
    N, C, S = x_flat.shape
    S128 = ((S + 127) // 128) * 128
    # Keep the per-step apply footprint (2 in + 2 out buffers of a (C, TS) tile) ~<= 12 MiB.
    ts_cap = max(128, (12 * 1024 * 1024 // (16 * C)) // 128 * 128)
    TS = max(128, min((int(tile_s) // 128) * 128, S128, ts_cap))
    nS = pl.cdiv(S, TS)

    # ---- Pass 1: per-(sample, channel) spatial sums, reduced over S tiles ----
    sums = pl.pallas_call(
        functools.partial(_channel_sum_kernel, true_s=S, tile_s=TS),
        out_shape=jax.ShapeDtypeStruct((N, C, 1), jnp.float32),
        grid_spec=pltpu.PrefetchScalarGridSpec(
            num_scalar_prefetch=0,
            grid=(N, nS),
            in_specs=[pl.BlockSpec((1, C, TS), lambda n, s: (n, 0, s))],
            out_specs=pl.BlockSpec((1, C, 1), lambda n, s: (n, 0, 0)),
        ),
        compiler_params=pltpu.CompilerParams(
            dimension_semantics=("parallel", "arbitrary")),
    )(x_flat)

    # ---- Tiny cSE matvec chain, batched over N (negligible; done outside the big kernel) ----
    means = sums[:, :, 0] * (1.0 / float(S))                                   # (N, C)
    h = jnp.maximum(means @ params["w1"].T + params["b1"][:, 0], 0.0)          # (N, Cr)
    cse = h @ params["w2"].T + params["b2"][:, 0]                              # (N, C)
    cse_gate = jax.nn.sigmoid(cse).astype(jnp.float32)[:, :, None]             # (N, C, 1)

    # ---- Pass 2: tiled gating apply ----
    return pl.pallas_call(
        _scse_apply_kernel,
        out_shape=jax.ShapeDtypeStruct((N, C, S), x_flat.dtype),
        grid_spec=pltpu.PrefetchScalarGridSpec(
            num_scalar_prefetch=0,
            grid=(N, nS),
            in_specs=[
                pl.BlockSpec((1, C, 1), lambda n, s: (n, 0, 0)),    # cSE gate (resident per n)
                pl.BlockSpec((1, C, TS), lambda n, s: (n, 0, s)),   # x tile
                pl.BlockSpec((1, C), lambda n, s: (0, 0)),          # ws (resident)
                pl.BlockSpec((1, 1), lambda n, s: (0, 0)),          # bs (resident)
            ],
            out_specs=pl.BlockSpec((1, C, TS), lambda n, s: (n, 0, s)),
        ),
        compiler_params=pltpu.CompilerParams(
            dimension_semantics=("parallel", "parallel")),
    )(cse_gate, x_flat, params["ws"], params["bs"])


# ---------------------------------------------------------------------------------------------
# Public wrapper
# ---------------------------------------------------------------------------------------------

def scse_forward(x, params, *, tile_s=8192, force_two_pass=False):
    """x: (N, C, D, H, W). params: dict of weights (see init_params). Returns same shape/dtype."""
    N, C, D, H, W = x.shape
    S = D * H * W
    x_flat = x.reshape(N, C, S)

    itemsize = jnp.dtype(x.dtype).itemsize
    S128 = ((S + 127) // 128) * 128
    # Fused-path VMEM estimate: double-buffered in + out slabs plus ~2 f32-sized intermediates.
    fused_vmem_est = 4 * C * S128 * itemsize + 2 * C * S128 * 4
    if (not force_two_pass) and fused_vmem_est <= 12 * 1024 * 1024:
        out_flat = _scse_fused(x_flat, params)
    else:
        out_flat = _scse_two_pass(x_flat, params, tile_s)
    return out_flat.reshape(N, C, D, H, W)


def init_params(key, in_channels, reduction=16):
    """Deterministic synthetic parameters matching SCSEModule.__init__ shapes.

    Conv3d with 1x1x1 kernels collapse to dense matrices:
      cSE conv1: weight (Cr, C, 1,1,1) -> (Cr, C), bias (Cr,)
      cSE conv2: weight (C, Cr, 1,1,1) -> (C, Cr), bias (C,)
      sSE conv : weight (1,  C, 1,1,1) -> (1, C),  bias (1,)
    """
    Cr = in_channels // reduction
    assert Cr >= 1, "in_channels must be >= reduction"
    k1, k2, k3, k4, k5, k6 = jax.random.split(key, 6)
    scale = 0.1
    return {
        "w1": scale * jax.random.normal(k1, (Cr, in_channels), jnp.float32),
        "b1": scale * jax.random.normal(k2, (Cr, 1), jnp.float32),
        "w2": scale * jax.random.normal(k3, (in_channels, Cr), jnp.float32),
        "b2": scale * jax.random.normal(k4, (in_channels, 1), jnp.float32),
        "ws": scale * jax.random.normal(k5, (1, in_channels), jnp.float32),
        "bs": scale * jax.random.normal(k6, (1, 1), jnp.float32),
    }


def scse_reference(x, params):
    """Pure-JAX reference mirroring the PyTorch forward (for validation)."""
    mean = jnp.mean(x, axis=(2, 3, 4))                                  # (N, C)
    h = jnp.maximum(mean @ params["w1"].T + params["b1"][:, 0], 0.0)    # (N, Cr)
    cse = h @ params["w2"].T + params["b2"][:, 0]                       # (N, C)
    cse_gate = jax.nn.sigmoid(cse)[:, :, None, None, None]              # (N, C, 1,1,1)
    sse = jnp.einsum("ncdhw,c->ndhw", x, params["ws"][0]) + params["bs"][0, 0]
    sse_gate = jax.nn.sigmoid(sse)[:, None]                             # (N, 1, D, H, W)
    return x * cse_gate + x * sse_gate


if __name__ == "__main__":
    key = jax.random.PRNGKey(0)
    kx, kp = jax.random.split(key)

    # in_channels=32, reduction=16 -> Cr=2.  S = 10*20*20 = 4000 is not 128-aligned, so the
    # ragged-tail handling is exercised without any wrapper-side padding.
    N, C, D, H, W = 2, 32, 10, 20, 20
    x = jax.random.normal(kx, (N, C, D, H, W), jnp.float32)
    params = init_params(kp, in_channels=C, reduction=16)
    ref = scse_reference(x, params)

    # 1) Fused single-pass path (per-sample slab fits VMEM).
    out_fused = jax.block_until_ready(scse_forward(x, params))
    assert out_fused.shape == (N, C, D, H, W)
    assert jnp.allclose(out_fused, ref, atol=1e-4, rtol=1e-4), "fused path mismatch vs reference"

    # 2) Tiled two-pass fallback, forced, with a small tile so the grid has several S tiles and
    #    a ragged last tile (4000 = 3*1024 + 928): exercises accumulation + in-kernel masking.
    out_tiled = jax.block_until_ready(
        scse_forward(x, params, force_two_pass=True, tile_s=1024))
    assert jnp.allclose(out_tiled, ref, atol=1e-4, rtol=1e-4), "tiled path mismatch vs reference"

    # 3) bf16 I/O (v5e recommendation): kernels are I/O-dtype agnostic, f32 accumulation inside.
    x_bf16 = x.astype(jnp.bfloat16)
    ref_bf16 = scse_reference(x_bf16.astype(jnp.float32), params)
    out_bf16 = jax.block_until_ready(scse_forward(x_bf16, params))
    assert out_bf16.dtype == jnp.bfloat16
    assert jnp.allclose(out_bf16.astype(jnp.float32), ref_bf16, atol=5e-2, rtol=5e-2), \
        "bf16 path mismatch vs reference"

    print("KERNEL_OK")
</pallas_src>

<mosaic_0001>
module attributes {stable_mosaic.version = 11 : i64} {
  func.func @_scse_fused_kernel(%arg0: i32, %arg1: memref<1x32x4000xf32, #tpu.memory_space<vmem>>, %arg2: memref<32x2xf32, #tpu.memory_space<vmem>>, %arg3: memref<1x2xf32, #tpu.memory_space<vmem>>, %arg4: memref<32x2xf32, #tpu.memory_space<vmem>>, %arg5: memref<32x1xf32, #tpu.memory_space<vmem>>, %arg6: memref<1x32xf32, #tpu.memory_space<vmem>>, %arg7: memref<1x1xf32, #tpu.memory_space<vmem>>, %arg8: memref<1x32x4000xf32, #tpu.memory_space<vmem>>) attributes {dimension_semantics = [#tpu.dimension_semantics<parallel>], iteration_bounds = array<i64: 2>, scalar_prefetch = 0 : i64, scratch_operands = 0 : i64, tpu.core_type = #tpu.core_type<tc>, window_params = [{transform_indices = @transform_0, window_bounds = array<i64: 1, 32, 4000>}, {pipeline_mode = #tpu.pipeline_mode<synchronous>, transform_indices = @transform_1, window_bounds = array<i64: 32, 2>}, {pipeline_mode = #tpu.pipeline_mode<synchronous>, transform_indices = @transform_2, window_bounds = array<i64: 1, 2>}, {pipeline_mode = #tpu.pipeline_mode<synchronous>, transform_indices = @transform_3, window_bounds = array<i64: 32, 2>}, {pipeline_mode = #tpu.pipeline_mode<synchronous>, transform_indices = @transform_4, window_bounds = array<i64: 32, 1>}, {pipeline_mode = #tpu.pipeline_mode<synchronous>, transform_indices = @transform_5, window_bounds = array<i64: 1, 32>}, {pipeline_mode = #tpu.pipeline_mode<synchronous>, transform_indices = @transform_6, window_bounds = array<i64: 1, 1>}, {transform_indices = @transform_7, window_bounds = array<i64: 1, 32, 4000>}]} {
    %c0 = arith.constant 0 : index
    %c0_0 = arith.constant 0 : index
    %c0_1 = arith.constant 0 : index
    %0 = vector.load %arg1[%c0, %c0_0, %c0_1] : memref<1x32x4000xf32, #tpu.memory_space<vmem>>, vector<1x32x4000xf32>
    %1 = vector.shape_cast %0 : vector<1x32x4000xf32> to vector<32x4000xf32>
    %cst = arith.constant dense<0.000000e+00> : vector<32xf32>
    %2 = vector.multi_reduction <add>, %1, %cst [1] : vector<32x4000xf32> to vector<32xf32>
    %3 = vector.shape_cast %2 : vector<32xf32> to vector<32x1xf32>
    %cst_2 = arith.constant 2.500000e-04 : f32
    %4 = vector.broadcast %cst_2 : f32 to vector<32x1xf32>
    %5 = arith.mulf %3, %4 : vector<32x1xf32>
    %c0_3 = arith.constant 0 : index
    %c0_4 = arith.constant 0 : index
    %6 = vector.load %arg2[%c0_3, %c0_4] : memref<32x2xf32, #tpu.memory_space<vmem>>, vector<32x2xf32>
    %7 = vector.broadcast %5 : vector<32x1xf32> to vector<32x2xf32>
    %8 = arith.mulf %6, %7 : vector<32x2xf32>
    %cst_5 = arith.constant dense<0.000000e+00> : vector<2xf32>
    %9 = vector.multi_reduction <add>, %8, %cst_5 [0] : vector<32x2xf32> to vector<2xf32>
    %10 = vector.shape_cast %9 : vector<2xf32> to vector<1x2xf32>
    %c0_6 = arith.constant 0 : index
    %c0_7 = arith.constant 0 : index
    %11 = vector.load %arg3[%c0_6, %c0_7] : memref<1x2xf32, #tpu.memory_space<vmem>>, vector<1x2xf32>
    %12 = arith.addf %10, %11 : vector<1x2xf32>
    %cst_8 = arith.constant 0.000000e+00 : f32
    %13 = vector.broadcast %cst_8 : f32 to vector<1x2xf32>
    %14 = arith.maximumf %12, %13 : vector<1x2xf32>
    %c0_9 = arith.constant 0 : index
    %c0_10 = arith.constant 0 : index
    %15 = vector.load %arg4[%c0_9, %c0_10] : memref<32x2xf32, #tpu.memory_space<vmem>>, vector<32x2xf32>
    %16 = vector.broadcast %14 : vector<1x2xf32> to vector<32x2xf32>
    %17 = arith.mulf %15, %16 : vector<32x2xf32>
    %cst_11 = arith.constant dense<0.000000e+00> : vector<32xf32>
    %18 = vector.multi_reduction <add>, %17, %cst_11 [1] : vector<32x2xf32> to vector<32xf32>
    %19 = vector.shape_cast %18 : vector<32xf32> to vector<32x1xf32>
    %c0_12 = arith.constant 0 : index
    %c0_13 = arith.constant 0 : index
    %20 = vector.load %arg5[%c0_12, %c0_13] : memref<32x1xf32, #tpu.memory_space<vmem>>, vector<32x1xf32>
    %21 = arith.addf %19, %20 : vector<32x1xf32>
    %22 = arith.negf %21 : vector<32x1xf32>
    %23 = math.exp %22 : vector<32x1xf32>
    %cst_14 = arith.constant 1.000000e+00 : f32
    %24 = vector.broadcast %cst_14 : f32 to vector<32x1xf32>
    %25 = arith.addf %24, %23 : vector<32x1xf32>
    %26 = arith.divf %24, %25 : vector<32x1xf32>
    %c0_15 = arith.constant 0 : index
    %c0_16 = arith.constant 0 : index
    %27 = vector.load %arg6[%c0_15, %c0_16] : memref<1x32xf32, #tpu.memory_space<vmem>>, vector<1x32xf32>
    %cst_17 = arith.constant dense<0.000000e+00> : vector<1x4000xf32>
    %28 = tpu.matmul %27, %1, %cst_17 {dimension_numbers = #tpu.dot_dimension_numbers<[1], [0], [0], [1], [0, 0, 1, 1], [], []>} : vector<1x32xf32>, vector<32x4000xf32>, vector<1x4000xf32> -> vector<1x4000xf32>
    %c0_18 = arith.constant 0 : index
    %c0_19 = arith.constant 0 : index
    %29 = vector.load %arg7[%c0_18, %c0_19] : memref<1x1xf32, #tpu.memory_space<vmem>>, vector<1x1xf32>
    %30 = vector.broadcast %29 : vector<1x1xf32> to vector<1x4000xf32>
    %31 = arith.addf %28, %30 : vector<1x4000xf32>
    %32 = arith.negf %31 : vector<1x4000xf32>
    %33 = math.exp %32 : vector<1x4000xf32>
    %cst_20 = arith.constant 1.000000e+00 : f32
    %34 = vector.broadcast %cst_20 : f32 to vector<1x4000xf32>
    %35 = arith.addf %34, %33 : vector<1x4000xf32>
    %36 = arith.divf %34, %35 : vector<1x4000xf32>
    %37 = vector.broadcast %26 : vector<32x1xf32> to vector<32x4000xf32>
    %38 = vector.broadcast %36 : vector<1x4000xf32> to vector<32x4000xf32>
    %39 = arith.addf %37, %38 : vector<32x4000xf32>
    %40 = arith.mulf %1, %39 : vector<32x4000xf32>
    %c0_21 = arith.constant 0 : index
    %c0_22 = arith.constant 0 : index
    %c0_23 = arith.constant 0 : index
    %41 = vector.load %arg8[%c0_21, %c0_22, %c0_23] : memref<1x32x4000xf32, #tpu.memory_space<vmem>>, vector<1x32x4000xf32>
    %42 = vector.shape_cast %41 : vector<1x32x4000xf32> to vector<32x4000xf32>
    %43 = vector.shape_cast %40 : vector<32x4000xf32> to vector<1x32x4000xf32>
    tpu.vector_store %arg8[%c0_21, %c0_22, %c0_23], %43 {strides = array<i32>} : memref<1x32x4000xf32, #tpu.memory_space<vmem>>, vector<1x32x4000xf32>,
    return
  }
  func.func @transform_0(%arg0: i32) -> (i32, i32, i32) {
    %c0_i32 = arith.constant 0 : i32
    %c0_i32_0 = arith.constant 0 : i32
    %c0_i32_1 = arith.constant 0 : i32
    return %arg0, %c0_i32, %c0_i32_0 : i32, i32, i32
  }
  func.func @transform_1(%arg0: i32) -> (i32, i32) {
    %c0_i32 = arith.constant 0 : i32
    %c0_i32_0 = arith.constant 0 : i32
    %c0_i32_1 = arith.constant 0 : i32
    return %c0_i32, %c0_i32_0 : i32, i32
  }
  func.func @transform_2(%arg0: i32) -> (i32, i32) {
    %c0_i32 = arith.constant 0 : i32
    %c0_i32_0 = arith.constant 0 : i32
    %c0_i32_1 = arith.constant 0 : i32
    return %c0_i32, %c0_i32_0 : i32, i32
  }
  func.func @transform_3(%arg0: i32) -> (i32, i32) {
    %c0_i32 = arith.constant 0 : i32
    %c0_i32_0 = arith.constant 0 : i32
    %c0_i32_1 = arith.constant 0 : i32
    return %c0_i32, %c0_i32_0 : i32, i32
  }
  func.func @transform_4(%arg0: i32) -> (i32, i32) {
    %c0_i32 = arith.constant 0 : i32
    %c0_i32_0 = arith.constant 0 : i32
    %c0_i32_1 = arith.constant 0 : i32
    return %c0_i32, %c0_i32_0 : i32, i32
  }
  func.func @transform_5(%arg0: i32) -> (i32, i32) {
    %c0_i32 = arith.constant 0 : i32
    %c0_i32_0 = arith.constant 0 : i32
    %c0_i32_1 = arith.constant 0 : i32
    return %c0_i32, %c0_i32_0 : i32, i32
  }
  func.func @transform_6(%arg0: i32) -> (i32, i32) {
    %c0_i32 = arith.constant 0 : i32
    %c0_i32_0 = arith.constant 0 : i32
    %c0_i32_1 = arith.constant 0 : i32
    return %c0_i32, %c0_i32_0 : i32, i32
  }
  func.func @transform_7(%arg0: i32) -> (i32, i32, i32) {
    %c0_i32 = arith.constant 0 : i32
    %c0_i32_0 = arith.constant 0 : i32
    %c0_i32_1 = arith.constant 0 : i32
    return %arg0, %c0_i32, %c0_i32_0 : i32, i32, i32
  }
}

</mosaic_0001>

<bundles_post_ra>
// kernel: tpu_custom_call.1
= control target key start
LH: loop header
LB: loop body
LE: loop exit
PB: predicated region body
PF: predicated region fallthrough
CT: control target
= control target key end

     0   :  { %s5721_s0 = inlined_call_operand.hbm [shape: f32[2,32,4000], index: 0, kind: input, shape index: {}]   ;;  %s5722_s1 = inlined_call_operand.vmem [shape: f32[32,2], index: 1, kind: input, shape index: {}]   ;;  %s5723_s2 = inlined_call_operand.vmem [shape: f32[1,2], index: 2, kind: input, shape index: {}]   ;;  %s5724_s3 = inlined_call_operand.vmem [shape: f32[32,2], index: 3, kind: input, shape index: {}]   ;;  %s5725_s4 = inlined_call_operand.vmem [shape: f32[32,1], index: 4, kind: input, shape index: {}]   ;;  %s5726_s5 = inlined_call_operand.vmem [shape: f32[1,32], index: 5, kind: input, shape index: {}]   ;;  %s5727_s6 = inlined_call_operand.<no memory space> [shape: f32[1,1], index: 6, kind: input, shape index: {}]   ;;  %s5728_s7 = inlined_call_operand.hbm [shape: f32[2,32,4000], index: 7, kind: output, shape index: {}]  }
   0x1   :  { %v12_v0 = vstv %s5727_s6 }
   0x2   :  { %13 = vst [vmem:[#allocation2] sm:$0x1] %v12_v0 }
   0x3   :  { %14 = vsyncpa [#allocation4], 0 }
   0x4   :  { %16 = vsyncpa [#allocation4 + $0x1], 0 }
   0x5   :  { %17 = vsyncpa [#allocation5], 0 }
   0x6   :  { %19 = vsyncpa [#allocation5 + $0x1], 0  ;;  %s3040_s26 = smov 0   ;;  %s3042_s27 = smov 0  }
   0x7   :  { %s3044_s28 = smov 0   ;;  %s3046_s29 = smov 0  }
   0x8 LB: > { %s3061_s6 = sadd.s32 4294967295, %s2990_s29   ;;  %s2484_s30 = sadd.s32 4294967294, %s2990_s29   ;;  %s2990_s29 = sphi %s3046_s29, %s6141_s29   ;;  %s2986_s28 = sphi %s3044_s28, %s6140_s28   ;;  %s2982_s27 = sphi %s3042_s27, %s6139_s27   ;;  %s2978_s26 = sphi %s3040_s26, %s6138_s26  }
   0x9   : > { %s3065_s8 = sadd.s32 1, %s2990_s29   ;;  %s32_s9 = sadd.s32 1, %s2986_s28 }
   0xa   : > { %s29_s10 = ssub.s32 %s2990_s29, %s3065_s8  ;;  %p39_p0 = scmp.ne.s32.totalorder %s2986_s28, %s2982_s27 }
   0xb   : > { %p30_p1 = scmp.eq.s32.totalorder %s29_s10, 0  ;;  %p40_p2 = scmp.eq.s32.totalorder %s2990_s29, 0 }
   0xc   : > { %p45_p3 = scmp.ne.s32.totalorder %s2982_s27, %s2978_s26  ;;  %p46_p4 = scmp.eq.s32.totalorder %s3061_s6, 0 }
   0xd   : > { %s3077_s11 = scalar_select %p30_p1, %s2986_s28, %s32_s9  }
   0xe   : > { %p3079_p5 = por %p40_p2, %p39_p0  ;;  %p3083_p6 = por %p46_p4, %p45_p3 }
   0xf   : > { %p195_p7 = scmp.eq.s32.totalorder %s3061_s6, 1  ;;  %p201_p8 = scmp.eq.s32.totalorder %s2484_s30, 1 }
  0x10   : > { %p2580_p10 = scmp.lt.s32.totalorder %s2990_s29, 2  ;;  %s239_s16 = sand.u32 1, %s2986_s28  }
  0x11   : > { %p3090_p11 = por %p195_p7, %p39_p0  ;;  %p3094_p12 = por %p201_p8, %p45_p3 }
  0x12   : > { %s2566_s17 = sshll.u32 %s2990_s29, 10  ;;  %s2487_s18 = sshll.u32 %s239_s16, 10 }
  0x13   : > { %s248_s21 = scalar_lea.hbm %s5721_s0, %s2566_s17  ;;  %s243_s23 = scalar_lea.vmem [#allocation3], %s2487_s18 }
  0x14   : > { %s249_s22 = sshll.u32 %s248_s21, 4  ;;  %s251_s24 = sshll.u32 %s243_s23, 4  ;;  %s250_s22 = int_to_ptr.hbm [resolvable:$true] %s249_s22  ;;  %s252_s24 = int_to_ptr.vmem [resolvable:$true] %s251_s24 }
  0x15   : > { %p3105_p13 = pnand %p2580_p10, %p3079_p5  ;;  %p2490_p0 = scmp.ge.s32.totalorder %s2990_s29, 1 }
  0x16   : > { %p259_p1 = scmp.lt.s32.totalorder %s2990_s29, 3  ;;  %s240_s30 = scalar_lea.sflag [#allocation4], %s239_s16 }
  0x17   : > { %s2894_s9 = sshra.s32 %s250_s22, 4  ;;  %p2898_p3 = pneg %p3105_p13  ;;  %s2895_s9 = int_to_ptr.hbm [resolvable:$true] %s2894_s9 }
  0x18   : > { %s2896_s10 = scalar_lea.hbm %s2895_s9, 1024  ;;  %s2901_s12 = scalar_lea.hbm %s5721_s0, 2048 }
  0x19   : > { %p2897_p2 = scmp.ne.s32.totalorder %s2895_s9, %s2896_s10  ;;  %p2902_p5 = scmp.lt.s32.totalorder %s2895_s9, %s5721_s0 }
  0x1a   : > { %p2903_p8 = scmp.lt.s32.totalorder %s2901_s12, %s2896_s10 }
  0x1b   : > { %p2899_p4 = pnand %p2898_p3, %p2897_p2 }
  0x1c   : > { %p2904_p10 = por %p2903_p8, %p2902_p5 }
  0x1d   : > { %p2900_p7 = pneg %p2899_p4 }
  0x1f   : > { %p2905_p9 = pnand %p2904_p10, %p2900_p7 }
  0x21   : > { %2908 = shalt.err (!%p2905_p9)
}
  0x22   : > { %s2992_s16 = smov 4096   ;;  %s2993_s21 = smov 256  }
  0x23   : > { %2575 = dma.hbm_to_vmem [thread:$0]  (!%p3105_p13), %s250_s22, 16384, %s252_s24, %s240_s30, %s2992_s16, %s2992_s16, %s2993_s21  }
  0x24   : > { %p260_p2 = pnand %p2490_p0, %p259_p1 }
  0x26   : > { %263 = sbr.rel (%p260_p2) target bundleno = 701 (0x2bd), region = 48 }
  0x2b   : > { %s3126_s23 = sand.u32 1, %s2982_s27  }
  0x2c   : > { %s2491_s9 = sshll.u32 %s3126_s23, 10  ;;  %s266_s10 = scalar_lea.sflag [#allocation4], %s3126_s23 }
  0x2d   : > { %s3132_s17 = scalar_lea.vmem [#allocation3], %s2491_s9 }
  0x2e   : > { %2969 = dma.done.wait (%p3083_p6), %s266_s10, 16384  }
  0x2f   : > { %2971 = vsyncadd (%p3083_p6), %s266_s10, 4294950912  ;;  %v3139_v1 = vld [vmem:[%s3132_s17] sm:$0xff]  ;;  %v3142_v2 = vld [vmem:[%s3132_s17 + $0x8] sm:$0xff]  ;;  %vm5783_vm0 = vcmask 261120   ;;  %vm578_vm1 = vcmask 15360   ;;  %s5087_s30 = scalar_lea.vmem [#allocation6], %s2491_s9 }
  0x30   : > { %v3145_v3 = vld [vmem:[%s3132_s17 + $0x10] sm:$0xff]  ;;  %v429_v4 = vadd.f32 %v3142_v2, %v3139_v1  ;;  %v3150_v5 = vld [vmem:[%s3132_s17 + $0x18] sm:$0xff]  ;;  %v3154_v7 = vld [vmem:[%s3132_s17 + $0x20] sm:$0xff]  ;;  %s2567_s9 = sshll.u32 %s3061_s6, 10  ;;  %s2408_s19 = sshll.u32 %s5087_s30, 4  ;;  %s2409_s19 = int_to_ptr.vmem [resolvable:$true] %s2408_s19 }
  0x31   : > { %v3158_v9 = vld [vmem:[%s3132_s17 + $0x28] sm:$0xff]  ;;  %v3162_v11 = vld [vmem:[%s3132_s17 + $0x30] sm:$0xff]  ;;  %v3166_v13 = vld [vmem:[%s3132_s17 + $0x38] sm:$0xff]  ;;  %s2407_s12 = scalar_lea.hbm %s5728_s7, %s2567_s9  ;;  %s2396_s16 = scalar_lea.sflag [#allocation5], %s3126_s23 }
  0x32   : > { %v430_v6 = vadd.f32 %v429_v4, %v3145_v3  ;;  %v3169_v14 = vld [vmem:[%s3132_s17 + $0x200] sm:$0xff]  ;;  %v366_v16 = vld [vmem:[%s3132_s17 + $0x208] sm:$0xff]  ;;  %v3174_v17 = vld [vmem:[%s3132_s17 + $0x210] sm:$0xff]  ;;  %s2410_s20 = sshll.u32 %s2407_s12, 4  ;;  %s2411_s20 = int_to_ptr.hbm [resolvable:$true] %s2410_s20 }
  0x33   : > { %v3177_v18 = vld [vmem:[%s3132_s17 + $0x40] sm:$0xff]  ;;  %v498_v19 = vadd.f32 %v366_v16, %v3169_v14  ;;  %v3182_v21 = vld [vmem:[%s3132_s17 + $0x218] sm:$0xff]  ;;  %v3185_v22 = vld [vmem:[%s3132_s17 + $0x48] sm:$0xff]  ;;  %s2938_s21 = sshra.s32 %s2411_s20, 4  ;;  %s2939_s21 = int_to_ptr.hbm [resolvable:$true] %s2938_s21 }
  0x34   : > { %v431_v8 = vadd.f32 %v430_v6, %v3150_v5  ;;  %v3190_v25 = vld [vmem:[%s3132_s17 + $0x220] sm:$0xff]  ;;  %v3193_v26 = vld [vmem:[%s3132_s17 + $0x50] sm:$0xff]  ;;  %v3198_v29 = vld [vmem:[%s3132_s17 + $0x228] sm:$0xff]  ;;  %s2940_s10 = scalar_lea.hbm %s2939_s21, 1024  ;;  %p2945_p0 = scmp.lt.s32.totalorder %s2939_s21, %s5728_s7 }
  0x35   : > { %v499_v23 = vadd.f32 %v498_v19, %v3174_v17  ;;  %v333_v30 = vld [vmem:[%s3132_s17 + $0x100] sm:$0xff]  ;;  %v3202_v31 = vld [vmem:[%s3132_s17 + $0x58] sm:$0xff]  ;;  %v334_v33 = vld [vmem:[%s3132_s17 + $0x108] sm:$0xff]  ;;  %p2941_p6 = scmp.ne.s32.totalorder %s2939_s21, %s2940_s10 }
  0x36   : > { %v432_v10 = vadd.f32 %v431_v8, %v3154_v7  ;;  %v335_v34 = vld [vmem:[%s3132_s17 + $0x110] sm:$0xff]  ;;  %v464_v37 = vadd.f32 %v334_v33, %v333_v30  ;;  %v3212_v38 = vld [vmem:[%s3132_s17 + $0x60] sm:$0xff]  ;;  %v336_v40 = vld [vmem:[%s3132_s17 + $0x118] sm:$0xff] }
  0x37   : > { %v500_v27 = vadd.f32 %v499_v23, %v3182_v21  ;;  %v3209_v36 = vld [vmem:[%s3132_s17 + $0x230] sm:$0xff]  ;;  %v3218_v42 = vld [vmem:[%s3132_s17 + $0x238] sm:$0xff]  ;;  %v3221_v44 = vld [vmem:[%s3132_s17 + $0x68] sm:$0xff]  ;;  %p2942_p9 = pnand %p2941_p6, %p3090_p11 }
  0x38   : > { %v433_v12 = vadd.f32 %v432_v10, %v3158_v9  ;;  %v465_v43 = vadd.f32 %v464_v37, %v335_v34  ;;  %v3225_v46 = vld [vmem:[%s3132_s17 + $0x120] sm:$0xff]  ;;  %v3232_v50 = vld [vmem:[%s3132_s17 + $0x70] sm:$0xff]  ;;  %v3236_v52 = vld [vmem:[%s3132_s17 + $0x128] sm:$0xff] }
  0x39   : > { %v501_v32 = vadd.f32 %v500_v27, %v3190_v25  ;;  %v3229_v48 = vld [vmem:[%s3132_s17 + $0x240] sm:$0xff]  ;;  %v3239_v53 = vld [vmem:[%s3132_s17 + $0x78] sm:$0xff]  ;;  %v3243_v55 = vld [vmem:[%s3132_s17 + $0x248] sm:$0xff]  ;;  %p2943_p13 = pneg %p2942_p9 }
  0x3a   : > { %v434_v15 = vadd.f32 %v433_v12, %v3162_v11  ;;  %v466_v49 = vadd.f32 %v465_v43, %v336_v40  ;;  %v3248_v58 = vld [vmem:[%s3132_s17 + $0x130] sm:$0xff]  ;;  %v397_v59 = vld [vmem:[%s3132_s17 + $0x300] sm:$0xff]  ;;  %v398_v60 = vld [vmem:[%s3132_s17 + $0x308] sm:$0xff] }
  0x3b   : > { %v502_v39 = vadd.f32 %v501_v32, %v3198_v29  ;;  %v3254_v62 = vld [vmem:[%s3132_s17 + $0x250] sm:$0xff]  ;;  %v400_v4 = vld [vmem:[%s3132_s17 + $0x318] sm:$0xff]  ;;  %v532_v6 = vadd.f32 %v398_v60, %v397_v59  ;;  %723 = vmatpush.msra.mxu0 %v397_v59  ;;  %743 = vmatpush.msra.mxu1 %v398_v60  ;;  %v3260_v8 = vld [vmem:[%s3132_s17 + $0x80] sm:$0xff] }
  0x3c   : > { %v435_v20 = vadd.f32 %v434_v15, %v3166_v13  ;;  %v467_v56 = vadd.f32 %v466_v49, %v3225_v46  ;;  %v399_v0 = vld [vmem:[%s3132_s17 + $0x310] sm:$0xff]  ;;  %5803 = vst [vmem:[#allocation9_spill] sm:$0xff] %v3260_v8  ;;  %v3264_v12 = vld [vmem:[%s3132_s17 + $0x138] sm:$0xff]  ;;  %783 = vmatpush.msra.mxu3 %v400_v4  ;;  %v401_v32 = vld [vmem:[%s3132_s17 + $0x320] sm:$0xff] }
  0x3d   : > { %v503_v45 = vadd.f32 %v502_v39, %v3209_v36  ;;  %763 = vmatpush.msra.mxu2 %v399_v0  ;;  %v3268_v19 = vld [vmem:[%s3132_s17 + $0x258] sm:$0xff]  ;;  %v533_v23 = vadd.f32 %v532_v6, %v399_v0  ;;  %724 = vmatpush.msra.mxu0 %v3169_v14  ;;  %v3284_v37 = vld [vmem:[%s3132_s17 + $0x260] sm:$0xff]  ;;  %v3288_v39 = vld [vmem:[%s3132_s17 + $0x90] sm:$0xff] }
  0x3e   : > { %v436_v24 = vadd.f32 %v435_v20, %v3177_v18  ;;  %v468_v63 = vadd.f32 %v467_v56, %v3236_v52  ;;  %744 = vmatpush.msra.mxu1 %v366_v16  ;;  %784 = vmatpush.msra.mxu3 %v3182_v21  ;;  %v402_v43 = vld [vmem:[%s3132_s17 + $0x328] sm:$0xff]  ;;  %v3296_v21 = vld [vmem:[%s3132_s17 + $0x98] sm:$0xff]  ;;  %v3315_v56 = vld [vmem:[%s3132_s17 + $0x270] sm:$0xff] }
  0x3f   : > { %v504_v51 = vadd.f32 %v503_v45, %v3218_v42  ;;  %764 = vmatpush.msra.mxu2 %v3174_v17  ;;  %v534_v16 = vadd.f32 %v533_v23, %v400_v4  ;;  %725 = vmatpush.msra.mxu0 %v333_v30  ;;  %v3292_v17 = vld [vmem:[%s3132_s17 + $0x148] sm:$0xff]  ;;  %v3323_v60 = vld [vmem:[%s3132_s17 + $0x158] sm:$0xff]  ;;  %v3337_v6 = vld [vmem:[%s3132_s17 + $0x160] sm:$0xff] }
  0x40   : > { %v437_v28 = vadd.f32 %v436_v24, %v3185_v22  ;;  %v469_v20 = vadd.f32 %v468_v63, %v3248_v58  ;;  %v3273_v24 = vld [vmem:[%s3132_s17 + $0x88] sm:$0xff]  ;;  %745 = vmatpush.msra.mxu1 %v334_v33  ;;  %785 = vmatpush.msra.mxu3 %v336_v40  ;;  %v403_v40 = vld [vmem:[%s3132_s17 + $0x330] sm:$0xff] }
  0x41   : > { %v505_v57 = vadd.f32 %v504_v51, %v3229_v48  ;;  %5804 = vst [vmem:[#allocation10_spill] sm:$0xff] %v3273_v24  ;;  %765 = vmatpush.msra.mxu2 %v335_v34  ;;  %v535_v33 = vadd.f32 %v534_v16, %v401_v32  ;;  %726 = vmatpush.msra.mxu0 %v3139_v1  ;;  %v3307_v34 = vld [vmem:[%s3132_s17 + $0x150] sm:$0xff]  ;;  %v404_v51 = vld [vmem:[%s3132_s17 + $0x338] sm:$0xff]  ;;  %v3333_v0 = vld [vmem:[%s3132_s17 + $0xa8] sm:$0xff] }
  0x42   : > { %v438_v35 = vadd.f32 %v437_v28, %v3193_v26  ;;  %v3277_v28 = vld [vmem:[%s3132_s17 + $0x140] sm:$0xff]  ;;  %v470_v14 = vadd.f32 %v469_v20, %v3264_v12  ;;  %746 = vmatpush.msra.mxu1 %v3142_v2  ;;  %786 = vmatpush.msra.mxu3 %v3150_v5  ;;  %v3327_v5 = vld [vmem:[%s3132_s17 + $0x278] sm:$0xff]  ;;  %5806 = vst [vmem:[#allocation12_spill] sm:$0xff] %v3333_v0  ;;  %v3352_v23 = vld [vmem:[%s3132_s17 + $0xb0] sm:$0xff] }
  0x43   : > { %v506_v10 = vadd.f32 %v505_v57, %v3243_v55  ;;  %766 = vmatpush.msra.mxu2 %v3145_v3  ;;  %v536_v57 = vadd.f32 %v535_v33, %v402_v43  ;;  %v3319_v2 = vld [vmem:[%s3132_s17 + $0xa0] sm:$0xff]  ;;  %803 = vmatpush.msrb.mxu0 %v401_v32  ;;  %5807 = vst [vmem:[#allocation13_spill] sm:$0xff] %v3352_v23  ;;  %v3379_v16 = vld [vmem:[%s3132_s17 + $0x350] sm:$0xff]  ;;  %v3394_v33 = vld [vmem:[%s3132_s17 + $0x178] sm:$0xff] }
  0x44   : > { %v439_v41 = vadd.f32 %v438_v35, %v3202_v31  ;;  %v471_v30 = vadd.f32 %v470_v14, %v3277_v28  ;;  %863 = vmatpush.msrb.mxu3 %v404_v51  ;;  %5805 = vst [vmem:[#allocation11_spill] sm:$0xff] %v3319_v2  ;;  %823 = vmatpush.msrb.mxu1 %v402_v43  ;;  %v3372_v14 = vld [vmem:[%s3132_s17 + $0xb8] sm:$0xff] }
  0x45   : > { %v507_v27 = vadd.f32 %v506_v10, %v3254_v62  ;;  %843 = vmatpush.msrb.mxu2 %v403_v40  ;;  %v537_v63 = vadd.f32 %v536_v57, %v403_v40  ;;  %v3340_v10 = vld [vmem:[%s3132_s17 + $0x340] sm:$0xff]  ;;  %804 = vmatpush.msrb.mxu0 %v3190_v25  ;;  %5808 = vst [vmem:[#allocation14_spill] sm:$0xff] %v3372_v14 }
  0x46   : > { %v440_v47 = vadd.f32 %v439_v41, %v3212_v38  ;;  %v472_v1 = vadd.f32 %v471_v30, %v3292_v17  ;;  %864 = vmatpush.msrb.mxu3 %v3218_v42  ;;  %824 = vmatpush.msrb.mxu1 %v3198_v29  ;;  %v3359_v29 = vld [vmem:[%s3132_s17 + $0x348] sm:$0xff]  ;;  %v3410_v57 = vld [vmem:[%s3132_s17 + $0x180] sm:$0xff] }
  0x47   : > { %v508_v41 = vadd.f32 %v507_v27, %v3268_v19  ;;  %844 = vmatpush.msrb.mxu2 %v3209_v36  ;;  %v3346_v36 = vld [vmem:[%s3132_s17 + $0x280] sm:$0xff]  ;;  %v538_v20 = vadd.f32 %v537_v63, %v404_v51  ;;  %v3356_v27 = vld [vmem:[%s3132_s17 + $0x168] sm:$0xff]  ;;  %805 = vmatpush.msrb.mxu0 %v3225_v46  ;;  %5811 = vst [vmem:[#allocation17_spill] sm:$0xff] %v3410_v57 }
  0x48   : > { %v441_v54 = vadd.f32 %v440_v47, %v3221_v44  ;;  %v3300_v47 = vld [vmem:[%s3132_s17 + $0x268] sm:$0xff]  ;;  %865 = vmatpush.msrb.mxu3 %v3264_v12  ;;  %825 = vmatpush.msrb.mxu1 %v3236_v52  ;;  %v3376_v52 = vld [vmem:[%s3132_s17 + $0x170] sm:$0xff] }
  0x49   : > { %v509_v49 = vadd.f32 %v508_v41, %v3284_v37  ;;  %845 = vmatpush.msrb.mxu2 %v3248_v58  ;;  %v3365_v58 = vld [vmem:[%s3132_s17 + $0x288] sm:$0xff]  ;;  %806 = vmatpush.msrb.mxu0 %v3154_v7  ;;  %v3385_v41 = vld [vmem:[%s3132_s17 + $0x290] sm:$0xff]  ;;  %v3397_v7 = vld [vmem:[%s3132_s17 + $0x358] sm:$0xff] }
  0x4a   : > { %v442_v61 = vadd.f32 %v441_v54, %v3232_v50  ;;  %866 = vmatpush.msrb.mxu3 %v3166_v13  ;;  %826 = vmatpush.msrb.mxu1 %v3158_v9 }
  0x4b   : > { %v510_v59 = vadd.f32 %v509_v49, %v3300_v47  ;;  %846 = vmatpush.msrb.mxu2 %v3162_v11  ;;  %v3401_v49 = vld [vmem:[%s3132_s17 + $0x298] sm:$0xff] }
  0x4c   : > { %v443_v15 = vadd.f32 %v442_v61, %v3239_v53  ;;  %v473_v61 = vadd.f32 %v472_v1, %v3307_v34 }
  0x4d   : > { %v511_v4 = vadd.f32 %v510_v59, %v3315_v56  ;;  %v3413_v59 = vld [vmem:[%s3132_s17 + $0x360] sm:$0xff] }
  0x4e   : > { %v444_v35 = vadd.f32 %v443_v15, %v3260_v8  ;;  %v474_v42 = vadd.f32 %v473_v61, %v3323_v60  ;;  %v3417_v61 = vld [vmem:[%s3132_s17 + $0x2a0] sm:$0xff]  ;;  %v3511_v8 = vld [vmem:[%s3132_s17 + $0x390] sm:$0xff] }
  0x4f   : > { %v512_v25 = vadd.f32 %v511_v4, %v3327_v5  ;;  %5812 = vst [vmem:[#allocation18_spill] sm:$0xff] %v3417_v61 }
  0x50   : > { %v445_v45 = vadd.f32 %v444_v35, %v3273_v24  ;;  %v475_v12 = vadd.f32 %v474_v42, %v3337_v6  ;;  %v539_v35 = vadd.f32 %v538_v20, %v3340_v10  ;;  %v3426_v20 = vld [vmem:[%s3132_s17 + $0x188] sm:$0xff]  ;;  %v3508_v24 = vld [vmem:[%s3132_s17 + $0x1b0] sm:$0xff] }
  0x51   : > { %v513_v46 = vadd.f32 %v512_v25, %v3346_v36  ;;  %5814 = vst [vmem:[#allocation20_spill] sm:$0xff] %v3426_v20  ;;  %v3429_v25 = vld [vmem:[%s3132_s17 + $0x368] sm:$0xff] }
  0x52   : > { %v446_v54 = vadd.f32 %v445_v45, %v3288_v39  ;;  %v476_v13 = vadd.f32 %v475_v12, %v3356_v27  ;;  %v540_v43 = vadd.f32 %v539_v35, %v3359_v29  ;;  %v3390_v45 = vld [vmem:[%s3132_s17 + $0xc0] sm:$0xff]  ;;  %v3433_v12 = vld [vmem:[%s3132_s17 + $0x2a8] sm:$0xff]  ;;  %5827 = vst [vmem:[#allocation33_spill] sm:$0xff] %v3508_v24 }
  0x53   : > { %5809 = vst [vmem:[#allocation15_spill] sm:$0xff] %v3390_v45  ;;  %v514_v30 = vadd.f32 %v513_v46, %v3365_v58 }
  0x54   : > { %v447_v3 = vadd.f32 %v446_v54, %v3296_v21  ;;  %v477_v40 = vadd.f32 %v476_v13, %v3376_v52  ;;  %v541_v51 = vadd.f32 %v540_v43, %v3379_v16  ;;  %v3406_v54 = vld [vmem:[%s3132_s17 + $0xc8] sm:$0xff]  ;;  %5815 = vst [vmem:[#allocation21_spill] sm:$0xff] %v3433_v12  ;;  %v3442_v43 = vld [vmem:[%s3132_s17 + $0x190] sm:$0xff] }
  0x55   : > { %5810 = vst [vmem:[#allocation16_spill] sm:$0xff] %v3406_v54  ;;  %v515_v1 = vadd.f32 %v514_v30, %v3385_v41  ;;  %v3445_v30 = vld [vmem:[%s3132_s17 + $0x370] sm:$0xff] }
  0x56   : > { %v448_v15 = vadd.f32 %v447_v3, %v3319_v2  ;;  %v478_v63 = vadd.f32 %v477_v40, %v3394_v33  ;;  %v542_v4 = vadd.f32 %v541_v51, %v3397_v7  ;;  %v3449_v40 = vld [vmem:[%s3132_s17 + $0x2b0] sm:$0xff]  ;;  %v3480_v2 = vld [vmem:[%s3132_s17 + $0xf8] sm:$0xff] }
  0x57   : > { %v516_v42 = vadd.f32 %v515_v1, %v3401_v49  ;;  %5817 = vst [vmem:[#allocation23_spill] sm:$0xff] %v3449_v40 }
  0x58   : > { %v449_v32 = vadd.f32 %v448_v15, %v3333_v0  ;;  %v3422_v15 = vld [vmem:[%s3132_s17 + $0xd0] sm:$0xff]  ;;  %v479_v35 = vadd.f32 %v478_v63, %v3410_v57  ;;  %v543_v46 = vadd.f32 %v542_v4, %v3413_v59  ;;  %v3458_v4 = vld [vmem:[%s3132_s17 + $0x198] sm:$0xff]  ;;  %v3477_v0 = vld [vmem:[%s3132_s17 + $0x380] sm:$0xff]  ;;  %5822 = vst [vmem:[#allocation28_spill] sm:$0xff] %v3480_v2 }
  0x59   : > { %5813 = vst [vmem:[#allocation19_spill] sm:$0xff] %v3422_v15  ;;  %v517_v13 = vadd.f32 %v516_v42, %v3417_v61  ;;  %v3461_v42 = vld [vmem:[%s3132_s17 + $0x378] sm:$0xff]  ;;  %v3493_v61 = vld [vmem:[%s3132_s17 + $0x1a8] sm:$0xff] }
  0x5a   : > { %v450_v11 = vadd.f32 %v449_v32, %v3352_v23  ;;  %v480_v51 = vadd.f32 %v479_v35, %v3426_v20  ;;  %v544_v1 = vadd.f32 %v543_v46, %v3429_v25  ;;  %5825 = vst [vmem:[#allocation31_spill] sm:$0xff] %v3493_v61  ;;  %v3591_v20 = vld [vmem:[%s3132_s17 + $0x1e8] sm:$0xff] }
  0x5b   : > { %v518_v63 = vadd.f32 %v517_v13, %v3433_v12  ;;  %v3489_v12 = vld [vmem:[%s3132_s17 + $0xf0] sm:$0xff]  ;;  %5843 = vst [vmem:[#allocation49_spill] sm:$0xff] %v3591_v20 }
  0x5c   : > { %v451_v9 = vadd.f32 %v450_v11, %v3372_v14  ;;  %v3438_v11 = vld [vmem:[%s3132_s17 + $0xd8] sm:$0xff]  ;;  %v481_v35 = vadd.f32 %v480_v51, %v3442_v43  ;;  %v545_v46 = vadd.f32 %v544_v1, %v3445_v30  ;;  %5824 = vst [vmem:[#allocation30_spill] sm:$0xff] %v3489_v12  ;;  %v3496_v14 = vld [vmem:[%s3132_s17 + $0x388] sm:$0xff] }
  0x5d   : > { %5816 = vst [vmem:[#allocation22_spill] sm:$0xff] %v3438_v11  ;;  %v519_v13 = vadd.f32 %v518_v63, %v3449_v40 }
  0x5e   : > { %v452_v3 = vadd.f32 %v451_v9, %v3390_v45  ;;  %v3470_v45 = vld [vmem:[%s3132_s17 + $0xe8] sm:$0xff]  ;;  %v482_v51 = vadd.f32 %v481_v35, %v3458_v4  ;;  %v546_v1 = vadd.f32 %v545_v46, %v3461_v42  ;;  %v460_v46 = vsel %vm5783_vm0, %v3480_v2, 0.0 }
  0x5f   : > { %5820 = vst [vmem:[#allocation26_spill] sm:$0xff] %v3470_v45 }
  0x60   : > { %v453_v32 = vadd.f32 %v452_v3, %v3406_v54  ;;  %v3454_v3 = vld [vmem:[%s3132_s17 + $0xe0] sm:$0xff]  ;;  %v547_v35 = vadd.f32 %v546_v1, %v3477_v0 }
  0x61   : > { %5818 = vst [vmem:[#allocation24_spill] sm:$0xff] %v3454_v3 }
  0x62   : > { %v454_v9 = vadd.f32 %v453_v32, %v3422_v15  ;;  %v3465_v32 = vld [vmem:[%s3132_s17 + $0x2b8] sm:$0xff]  ;;  %v3474_v15 = vld [vmem:[%s3132_s17 + $0x1a0] sm:$0xff]  ;;  %v548_v1 = vadd.f32 %v547_v35, %v3496_v14 }
  0x63   : > { %5819 = vst [vmem:[#allocation25_spill] sm:$0xff] %v3465_v32  ;;  %v520_v63 = vadd.f32 %v519_v13, %v3465_v32  ;;  %v483_v23 = vadd.f32 %v482_v51, %v3474_v15  ;;  %v3527_v32 = vld [vmem:[%s3132_s17 + $0x2d8] sm:$0xff]  ;;  %v3533_v35 = vld [vmem:[%s3132_s17 + $0x1c0] sm:$0xff] }
  0x64   : > { %v455_v54 = vadd.f32 %v454_v9, %v3438_v11  ;;  %5821 = vst [vmem:[#allocation27_spill] sm:$0xff] %v3474_v15  ;;  %v3484_v11 = vld [vmem:[%s3132_s17 + $0x2c0] sm:$0xff]  ;;  %v3521_v15 = vld [vmem:[%s3132_s17 + $0x1b8] sm:$0xff] }
  0x65   : > { %5823 = vst [vmem:[#allocation29_spill] sm:$0xff] %v3484_v11  ;;  %v521_v13 = vadd.f32 %v520_v63, %v3484_v11  ;;  %v484_v51 = vadd.f32 %v483_v23, %v3493_v61  ;;  %v3524_v63 = vld [vmem:[%s3132_s17 + $0x398] sm:$0xff] }
  0x66   : > { %v456_v9 = vadd.f32 %v455_v54, %v3454_v3  ;;  %v3500_v3 = vld [vmem:[%s3132_s17 + $0x2c8] sm:$0xff]  ;;  %5829 = vst [vmem:[#allocation35_spill] sm:$0xff] %v3521_v15 }
  0x67   : > { %5826 = vst [vmem:[#allocation32_spill] sm:$0xff] %v3500_v3  ;;  %v522_v2 = vadd.f32 %v521_v13, %v3500_v3  ;;  %v3536_v13 = vld [vmem:[%s3132_s17 + $0x3a0] sm:$0xff] }
  0x68   : > { %v457_v54 = vadd.f32 %v456_v9, %v3470_v45  ;;  %v3515_v45 = vld [vmem:[%s3132_s17 + $0x2d0] sm:$0xff]  ;;  %5830 = vst [vmem:[#allocation36_spill] sm:$0xff] %v3527_v32  ;;  %v3539_v3 = vld [vmem:[%s3132_s17 + $0x2e0] sm:$0xff] }
  0x69   : > { %5828 = vst [vmem:[#allocation34_spill] sm:$0xff] %v3515_v45  ;;  %v523_v23 = vadd.f32 %v522_v2, %v3515_v45  ;;  %v3548_v2 = vld [vmem:[%s3132_s17 + $0x3a8] sm:$0xff] }
  0x6a   : > { %v458_v9 = vadd.f32 %v457_v54, %v3489_v12  ;;  %v485_v54 = vadd.f32 %v484_v51, %v3508_v24  ;;  %v549_v12 = vadd.f32 %v548_v1, %v3511_v8  ;;  %5831 = vst [vmem:[#allocation37_spill] sm:$0xff] %v3533_v35  ;;  %v3545_v1 = vld [vmem:[%s3132_s17 + $0x1c8] sm:$0xff]  ;;  %v3556_v24 = vld [vmem:[%s3132_s17 + $0x2f8] sm:$0xff] }
  0x6b   : > { %5832 = vst [vmem:[#allocation38_spill] sm:$0xff] %v3536_v13  ;;  %v524_v51 = vadd.f32 %v523_v23, %v3527_v32  ;;  %v3551_v45 = vld [vmem:[%s3132_s17 + $0x2e8] sm:$0xff]  ;;  %v3566_v23 = vld [vmem:[%s3132_s17 + $0x2f0] sm:$0xff] }
  0x6c   : > { %v461_v11 = vadd.f32 %v460_v46, %v458_v9  ;;  %5833 = vst [vmem:[#allocation39_spill] sm:$0xff] %v3539_v3  ;;  %v486_v46 = vadd.f32 %v485_v54, %v3521_v15  ;;  %v550_v9 = vadd.f32 %v549_v12, %v3524_v63  ;;  %v3560_v12 = vld [vmem:[%s3132_s17 + $0x1d0] sm:$0xff] }
  0x6d   : > { %5834 = vst [vmem:[#allocation40_spill] sm:$0xff] %v3545_v1  ;;  %v525_v54 = vadd.f32 %v524_v51, %v3539_v3  ;;  %v3563_v15 = vld [vmem:[%s3132_s17 + $0x3b0] sm:$0xff]  ;;  %v528_v51 = vsel %vm5783_vm0, %v3556_v24, 0.0 }
  0x6e   : > { %462 = vadd.xlane.f32.xlu0 %v461_v11  ;;  %5835 = vst [vmem:[#allocation41_spill] sm:$0xff] %v3548_v2  ;;  %v487_v61 = vadd.f32 %v486_v46, %v3533_v35  ;;  %v551_v11 = vadd.f32 %v550_v9, %v3536_v13  ;;  %v3572_v35 = vld [vmem:[%s3132_s17 + $0x1d8] sm:$0xff] }
  0x6f   : > { %5836 = vst [vmem:[#allocation42_spill] sm:$0xff] %v3551_v45  ;;  %v526_v9 = vadd.f32 %v525_v54, %v3551_v45  ;;  %v3575_v13 = vld [vmem:[%s3132_s17 + $0x3b8] sm:$0xff] }
  0x70   : > { %5837 = vst [vmem:[#allocation43_spill] sm:$0xff] %v3556_v24  ;;  %v488_v32 = vadd.f32 %v487_v61, %v3545_v1  ;;  %v552_v46 = vadd.f32 %v551_v11, %v3548_v2  ;;  %v3583_v1 = vld [vmem:[%s3132_s17 + $0x1e0] sm:$0xff]  ;;  %v3594_v24 = vld [vmem:[%s3132_s17 + $0x3c8] sm:$0xff] }
  0x71   : > { %5838 = vst [vmem:[#allocation44_spill] sm:$0xff] %v3560_v12  ;;  %v527_v61 = vadd.f32 %v526_v9, %v3566_v23  ;;  %v3586_v11 = vld [vmem:[%s3132_s17 + $0x3c0] sm:$0xff] }
  0x72   : > { %5839 = vst [vmem:[#allocation45_spill] sm:$0xff] %v3566_v23  ;;  %v489_v3 = vadd.f32 %v488_v32, %v3560_v12  ;;  %v553_v40 = vadd.f32 %v552_v46, %v3563_v15  ;;  %v3597_v32 = vld [vmem:[%s3132_s17 + $0x1f8] sm:$0xff]  ;;  %v3602_v23 = vld [vmem:[%s3132_s17 + $0x1f0] sm:$0xff]  ;;  %v3621_v12 = vld [vmem:[%s3132_s17 + $0x3e8] sm:$0xff] }
  0x73   : > { %5840 = vst [vmem:[#allocation46_spill] sm:$0xff] %v3572_v35  ;;  %v529_v2 = vadd.f32 %v528_v51, %v527_v61  ;;  %v494_v61 = vsel %vm5783_vm0, %v3597_v32, 0.0 }
  0x74   : > { %5841 = vst [vmem:[#allocation47_spill] sm:$0xff] %v3583_v1  ;;  %v490_v54 = vadd.f32 %v489_v3, %v3572_v35  ;;  %v554_v45 = vadd.f32 %v553_v40, %v3575_v13  ;;  %v3605_v3 = vld [vmem:[%s3132_s17 + $0x3d0] sm:$0xff]  ;;  %v3612_v35 = vld [vmem:[%s3132_s17 + $0x3d8] sm:$0xff] }
  0x75   : > { %5842 = vst [vmem:[#allocation48_spill] sm:$0xff] %v3586_v11  ;;  %530 = vadd.xlane.f32.xlu1 %v529_v2 }
  0x76   : > { %5844 = vst [vmem:[#allocation50_spill] sm:$0xff] %v3594_v24  ;;  %v491_v46 = vadd.f32 %v490_v54, %v3583_v1  ;;  %v555_v9 = vadd.f32 %v554_v45, %v3586_v11  ;;  %v3617_v45 = vld [vmem:[%s3132_s17 + $0x3e0] sm:$0xff] }
  0x77   : > { %5845 = vst [vmem:[#allocation51_spill] sm:$0xff] %v3597_v32 }
  0x78   : > { %5846 = vst [vmem:[#allocation52_spill] sm:$0xff] %v3602_v23  ;;  %v492_v40 = vadd.f32 %v491_v46, %v3591_v20  ;;  %v556_v51 = vadd.f32 %v555_v9, %v3594_v24  ;;  %v3624_v46 = vld [vmem:[%s3132_s17 + $0x3f8] sm:$0xff]  ;;  %v3628_v20 = vld [vmem:[%s3132_s17 + $0x3f0] sm:$0xff] }
  0x79   : > { %5847 = vst [vmem:[#allocation53_spill] sm:$0xff] %v3605_v3 }
  0x7a   : > { %5848 = vst [vmem:[#allocation54_spill] sm:$0xff] %v3612_v35  ;;  %v493_v54 = vadd.f32 %v492_v40, %v3602_v23  ;;  %v557_v1 = vadd.f32 %v556_v51, %v3605_v3  ;;  %v562_v40 = vsel %vm5783_vm0, %v3624_v46, 0.0 }
  0x7b   : > { %5849 = vst [vmem:[#allocation55_spill] sm:$0xff] %v3617_v45 }
  0x7c   : > { %v495_v2 = vadd.f32 %v494_v61, %v493_v54  ;;  %v558_v11 = vadd.f32 %v557_v1, %v3612_v35  ;;  %5850 = vst [vmem:[#allocation56_spill] sm:$0xff] %v3621_v12  ;;  %v570_v54 = vld [vmem:[%s5722_s1] sm:$0xff] }
  0x7d   : > { %5851 = vst [vmem:[#allocation57_spill] sm:$0xff] %v3624_v46 }
  0x7e   : > { %496 = vadd.xlane.f32.xlu0 %v495_v2  ;;  %v559_v9 = vadd.f32 %v558_v11, %v3617_v45  ;;  %5852 = vst [vmem:[#allocation58_spill] sm:$0xff] %v3628_v20  ;;  %v571_v11 = vld [vmem:[%s5722_s1 + $0x8] sm:$0xff] }
  0x80   : > { %v560_v32 = vadd.f32 %v559_v9, %v3621_v12 }
  0x82   : > { %v561_v51 = vadd.f32 %v560_v32, %v3628_v20  ;;  %v573_v20 = vld [vmem:[%s5722_s1 + $0x18] sm:$0xff] }
  0x84   : > { %v563_v23 = vadd.f32 %v562_v40, %v561_v51 }
  0x86   : > { %564 = vadd.xlane.f32.xlu1 %v563_v23  ;;  %v572_v23 = vld [vmem:[%s5722_s1 + $0x10] sm:$0xff] }
  0xe1   : > { %v463_v61 = vpop.xlane.xlu0 %462 }
  0xe2   : > { %v566_v1 = vmul.f32 0.00025, %v463_v61 }
  0xe4   : > { %v574_v9 = vmul.f32 %v570_v54, %v566_v1 }
  0xe6   : > { %v579_v40 = vsel %vm578_vm1, %v574_v9, 0.0  ;;  %v5884_v9 = vld [vmem:[#allocation57_spill] sm:$0xff] }
  0xe8   : > { %v531_v2 = vpop.xlane.xlu1 %530 }
  0xe9   : > { %v568_v12 = vmul.f32 0.00025, %v531_v2 }
  0xeb   : > { %v576_v51 = vmul.f32 %v572_v23, %v568_v12  ;;  %v5885_v23 = vld [vmem:[#allocation37_spill] sm:$0xff] }
  0xed   : > { %v582_v1 = vsel %vm578_vm1, %v576_v51, 0.0  ;;  %v5888_v51 = vld [vmem:[#allocation43_spill] sm:$0xff] }
  0xf1   : > { %v497_v45 = vpop.xlane.xlu0 %496 }
  0xf2   : > { %v567_v24 = vmul.f32 0.00025, %v497_v45 }
  0xf4   : > { %v575_v32 = vmul.f32 %v571_v11, %v567_v24  ;;  %v3653_v24 = vld [vmem:[%s5726_s5] sm:$0x1]  ;;  %v5883_v11 = vld [vmem:[#allocation58_spill] sm:$0xff] }
  0xf5   : > { %2499 = vmatmul.msk.f32.vlgmr.msra.gmra.mxu2 %vm5783_vm0, %v3653_v24  ;;  %2500 = vmatmul.msk.f32.vlgmr.msra.gmra.mxu3 %vm5783_vm0, %v3653_v24 }
  0xf6   : > { %v580_v61 = vsel %vm578_vm1, %v575_v32, 0.0  ;;  %2497 = vmatmul.msk.f32.vlgmr.msra.gmra.mxu0 %vm5783_vm0, %v3653_v24  ;;  %2498 = vmatmul.msk.f32.vlgmr.msra.gmra.mxu1 %vm5783_vm0, %v3653_v24  ;;  %v5886_v32 = vld [vmem:[#allocation40_spill] sm:$0xff] }
  0xf7   : > { %v581_v46 = vadd.f32 %v580_v61, %v579_v40  ;;  %923 = vmatpush.msra.mxu2 %v3379_v16  ;;  %943 = vmatpush.msra.mxu3 %v3397_v7  ;;  %v5869_v7 = vld [vmem:[#allocation27_spill] sm:$0xff]  ;;  %v5887_v40 = vld [vmem:[#allocation45_spill] sm:$0xff] }
  0xf8   : > { %883 = vmatpush.msra.mxu0 %v3340_v10  ;;  %903 = vmatpush.msra.mxu1 %v3359_v29  ;;  %v5863_v29 = vld [vmem:[#allocation13_spill] sm:$0xff]  ;;  %v5889_v61 = vld [vmem:[#allocation15_spill] sm:$0xff] }
  0xf9   : > { %v565_v35 = vpop.xlane.xlu1 %564  ;;  %v583_v54 = vadd.f32 %v582_v1, %v581_v46  ;;  %924 = vmatpush.msra.mxu2 %v3254_v62  ;;  %944 = vmatpush.msra.mxu3 %v3268_v19  ;;  %v5882_v46 = vld [vmem:[#allocation32_spill] sm:$0xff] }
  0xfa   : > { %v569_v45 = vmul.f32 0.00025, %v565_v35  ;;  %884 = vmatpush.msra.mxu0 %v3229_v48  ;;  %904 = vmatpush.msra.mxu1 %v3243_v55  ;;  %v592_v48 = vld [vmem:[%s5723_s2] sm:$0x1] }
  0xfb   : > { %925 = vmatpush.msra.mxu2 %v3307_v34  ;;  %945 = vmatpush.msra.mxu3 %v3323_v60  ;;  %v5890_v1 = vld [vmem:[#allocation16_spill] sm:$0xff] }
  0xfc   : > { %v577_v2 = vmul.f32 %v573_v20, %v569_v45  ;;  %885 = vmatpush.msra.mxu0 %v3277_v28  ;;  %905 = vmatpush.msra.mxu1 %v3292_v17  ;;  %v5891_v45 = vld [vmem:[#allocation52_spill] sm:$0xff] }
  0xfd   : > { %2503 = vmatmul.msk.f32.vlgmr.msrb.gmra.mxu2 %vm5783_vm0, %v3653_v24  ;;  %2504 = vmatmul.msk.f32.vlgmr.msrb.gmra.mxu3 %vm5783_vm0, %v3653_v24 }
  0xfe   : > { %v584_v3 = vsel %vm578_vm1, %v577_v2, 0.0  ;;  %2501 = vmatmul.msk.f32.vlgmr.msrb.gmra.mxu0 %vm5783_vm0, %v3653_v24  ;;  %2502 = vmatmul.msk.f32.vlgmr.msrb.gmra.mxu1 %vm5783_vm0, %v3653_v24  ;;  %v5893_v2 = vld [vmem:[#allocation55_spill] sm:$0xff] }
  0xff   : > { %v585_v57 = vadd.f32 %v584_v3, %v583_v54  ;;  %926 = vmatpush.msra.mxu2 %v3193_v26  ;;  %946 = vmatpush.msra.mxu3 %v3202_v31  ;;  %v595_v31 = vld [vmem:[%s5724_s3] sm:$0xff]  ;;  %v5892_v54 = vld [vmem:[#allocation51_spill] sm:$0xff] }
 0x100   : > { %886 = vmatpush.msra.mxu0 %v3177_v18  ;;  %906 = vmatpush.msra.mxu1 %v3185_v22  ;;  %v598_v18 = vld [vmem:[%s5724_s3 + $0x18] sm:$0xff]  ;;  %v597_v22 = vld [vmem:[%s5724_s3 + $0x10] sm:$0xff]  ;;  %v5881_v3 = vld [vmem:[#allocation29_spill] sm:$0xff] }
 0x101   : > { %v586_v12 = vrot.slane %v585_v57, 4  ;;  %1003 = vmatpush.msrb.mxu2 %v3445_v30  ;;  %1023 = vmatpush.msrb.mxu3 %v3461_v42  ;;  %v5876_v30 = vld [vmem:[#allocation46_spill] sm:$0xff] }
 0x102   : > { %963 = vmatpush.msrb.mxu0 %v3413_v59  ;;  %983 = vmatpush.msrb.mxu1 %v3429_v25  ;;  %v5872_v59 = vld [vmem:[#allocation36_spill] sm:$0xff]  ;;  %v5878_v42 = vld [vmem:[#allocation50_spill] sm:$0xff] }
 0x103   : > { %v587_v20 = vadd.f32 %v586_v12, %v585_v57  ;;  %1004 = vmatpush.msrb.mxu2 %v3315_v56  ;;  %1024 = vmatpush.msrb.mxu3 %v3327_v5  ;;  %v5871_v57 = vld [vmem:[#allocation34_spill] sm:$0xff]  ;;  %v5874_v25 = vld [vmem:[#allocation12_spill] sm:$0xff] }
 0x104   : > { %964 = vmatpush.msrb.mxu0 %v3284_v37  ;;  %984 = vmatpush.msrb.mxu1 %v3300_v47  ;;  %v5855_v37 = vld [vmem:[#allocation23_spill] sm:$0xff]  ;;  %v5858_v47 = vld [vmem:[#allocation10_spill] sm:$0xff]  ;;  %v5894_v12 = vld [vmem:[#allocation56_spill] sm:$0xff] }
 0x105   : > { %v588_v35 = vrot.slane %v587_v20, 2  ;;  %1005 = vmatpush.msrb.mxu2 %v3376_v52  ;;  %1025 = vmatpush.msrb.mxu3 %v3394_v33  ;;  %v5866_v52 = vld [vmem:[#allocation21_spill] sm:$0xff]  ;;  %v5868_v33 = vld [vmem:[#allocation54_spill] sm:$0xff] }
 0x106   : > { %2507 = vmatmul.msk.f32.vlgmr.msra.gmra.mxu2 %vm5783_vm0, %v3653_v24  ;;  %2508 = vmatmul.msk.f32.vlgmr.msra.gmra.mxu3 %vm5783_vm0, %v3653_v24 }
 0x107   : > { %v589_v16 = vadd.f32 %v588_v35, %v587_v20  ;;  %2505 = vmatmul.msk.f32.vlgmr.msra.gmra.mxu0 %vm5783_vm0, %v3653_v24  ;;  %2506 = vmatmul.msk.f32.vlgmr.msra.gmra.mxu1 %vm5783_vm0, %v3653_v24  ;;  %v5895_v20 = vld [vmem:[#allocation30_spill] sm:$0xff]  ;;  %v5896_v35 = vld [vmem:[#allocation28_spill] sm:$0xff] }
 0x108   : > { %1006 = vmatpush.msrb.mxu2 %v3232_v50  ;;  %1026 = vmatpush.msrb.mxu3 %v3239_v53  ;;  %v596_v50 = vld [vmem:[%s5724_s3 + $0x8] sm:$0xff] }
 0x109   : > { %v590_v62 = vrot.slane %v589_v16, 1  ;;  %965 = vmatpush.msrb.mxu0 %v3337_v6  ;;  %985 = vmatpush.msrb.mxu1 %v3356_v27  ;;  %v5860_v6 = vld [vmem:[#allocation35_spill] sm:$0xff]  ;;  %v5862_v27 = vld [vmem:[#allocation41_spill] sm:$0xff] }
 0x10a   : > { %1083 = vmatpush.msra.mxu2 %v3511_v8  ;;  %1103 = vmatpush.msra.mxu3 %v3524_v63  ;;  %v5879_v63 = vld [vmem:[#allocation19_spill] sm:$0xff] }
 0x10b   : > { %v591_v55 = vadd.f32 %v590_v62, %v589_v16  ;;  %966 = vmatpush.msrb.mxu0 %v3212_v38  ;;  %986 = vmatpush.msrb.mxu1 %v3221_v44  ;;  %v5853_v38 = vld [vmem:[#allocation17_spill] sm:$0xff]  ;;  %v5854_v44 = vld [vmem:[#allocation20_spill] sm:$0xff]  ;;  %v2994_v62 = vmov 0  }
 0x10c   : > { %1084 = vmatpush.msra.mxu2 %v3385_v41  ;;  %1104 = vmatpush.msra.mxu3 %v3401_v49  ;;  %v5867_v41 = vld [vmem:[#allocation53_spill] sm:$0xff]  ;;  %v5870_v49 = vld [vmem:[#allocation31_spill] sm:$0xff]  ;;  %v701_v16 = vld [vmem:[#allocation2] sm:$0x1] }
 0x10d   : > { %v593_v19 = vadd.f32 %v592_v48, %v591_v55  ;;  %1043 = vmatpush.msra.mxu0 %v3477_v0  ;;  %1063 = vmatpush.msra.mxu1 %v3496_v14  ;;  %v5859_v0 = vld [vmem:[#allocation33_spill] sm:$0xff]  ;;  %v5865_v14 = vld [vmem:[#allocation18_spill] sm:$0xff]  ;;  %v5897_v48 = vld [vmem:[#allocation39_spill] sm:$0xff] }
 0x10e   : > { %2511 = vmatmul.msk.f32.vlgmr.msrb.gmra.mxu2 %vm5783_vm0, %v3653_v24  ;;  %2512 = vmatmul.msk.f32.vlgmr.msrb.gmra.mxu3 %vm5783_vm0, %v3653_v24  ;;  %v5898_v55 = vld [vmem:[#allocation42_spill] sm:$0xff] }
 0x10f   : > { %v594_v26 = vmax.f32 %v593_v19, 0.0  ;;  %1085 = vmatpush.msra.mxu2 %v3442_v43  ;;  %1105 = vmatpush.msra.mxu3 %v3458_v4  ;;  %v5875_v43 = vld [vmem:[#allocation44_spill] sm:$0xff]  ;;  %v5899_v19 = vld [vmem:[#allocation47_spill] sm:$0xff] }
 0x110   : > { %2509 = vmatmul.msk.f32.vlgmr.msrb.gmra.mxu0 %vm5783_vm0, %v3653_v24  ;;  %2510 = vmatmul.msk.f32.vlgmr.msrb.gmra.mxu1 %vm5783_vm0, %v3653_v24  ;;  %v5877_v4 = vld [vmem:[#allocation48_spill] sm:$0xff] }
 0x111   : > { %v599_v28 = vperm.slane %v594_v26, 0  ;;  %1086 = vmatpush.msra.mxu2 %v3288_v39  ;;  %1106 = vmatpush.msra.mxu3 %v3296_v21  ;;  %v5856_v39 = vld [vmem:[#allocation25_spill] sm:$0xff] }
 0x112   : > { %1044 = vmatpush.msra.mxu0 %v3346_v36  ;;  %1064 = vmatpush.msra.mxu1 %v3365_v58  ;;  %v5857_v21 = vld [vmem:[#allocation9_spill] sm:$0xff]  ;;  %v5861_v36 = vld [vmem:[#allocation38_spill] sm:$0xff] }
 0x113   : > { %v603_v17 = vmul.f32 %v599_v28, %v598_v18  ;;  %v602_v34 = vmul.f32 %v599_v28, %v597_v22  ;;  %v600_v56 = vmul.f32 %v599_v28, %v595_v31  ;;  %v601_v53 = vmul.f32 %v599_v28, %v596_v50  ;;  %1163 = vmatpush.msrb.mxu2 %v3563_v15  ;;  %v5864_v58 = vld [vmem:[#allocation14_spill] sm:$0xff]  ;;  %v5873_v15 = vld [vmem:[#allocation11_spill] sm:$0xff]  ;;  %v5900_v26 = vld [vmem:[#allocation49_spill] sm:$0xff] }
 0x114   : > { %1183 = vmatpush.msrb.mxu3 %v3575_v13  ;;  %1045 = vmatpush.msra.mxu0 %v5853_v38  ;;  %v5880_v13 = vld [vmem:[#allocation22_spill] sm:$0xff]  ;;  %v5901_v18 = vld [vmem:[#allocation24_spill] sm:$0xff] }
 0x115   : > { %v613_v60 = vsel %vm578_vm1, %v603_v17, 0.0  ;;  %v610_v5 = vsel %vm578_vm1, %v602_v34, 0.0  ;;  %v604_v10 = vsel %vm578_vm1, %v600_v56, 0.0  ;;  %v607_v8 = vsel %vm578_vm1, %v601_v53, 0.0  ;;  %1065 = vmatpush.msra.mxu1 %v5854_v44  ;;  %1164 = vmatpush.msrb.mxu2 %v5855_v37  ;;  %v5902_v22 = vld [vmem:[#allocation26_spill] sm:$0xff]  ;;  %v619_v31 = vld [vmem:[%s5725_s4 + $0x18] sm:$0xff] }
 0x116   : > { %614 = vadd.xlane.f32.xlu1 %v613_v60  ;;  %611 = vadd.xlane.f32.xlu0 %v610_v5  ;;  %v618_v28 = vld [vmem:[%s5725_s4 + $0x10] sm:$0xff]  ;;  %v616_v17 = vld [vmem:[%s5725_s4] sm:$0xff]  ;;  %v617_v44 = vld [vmem:[%s5725_s4 + $0x8] sm:$0xff] }
 0x117   : > { %605 = vadd.xlane.f32.xlu2 %v604_v10  ;;  %2515 = vmatmul.msk.f32.vlgmr.msra.gmra.mxu2 %vm5783_vm0, %v3653_v24 }
 0x118   : > { %2516 = vmatmul.msk.f32.vlgmr.msra.gmra.mxu3 %vm5783_vm0, %v3653_v24  ;;  %1046 = vmatpush.msra.mxu0 %v5857_v21 }
 0x119   : > { %1184 = vmatpush.msrb.mxu3 %v5856_v39  ;;  %1066 = vmatpush.msra.mxu1 %v5858_v47 }
 0x11a   : > { %1165 = vmatpush.msrb.mxu2 %v5859_v0  ;;  %2513 = vmatmul.msk.f32.vlgmr.msra.gmra.mxu0 %vm5783_vm0, %v3653_v24 }
 0x11b   : > { %1185 = vmatpush.msrb.mxu3 %v5860_v6  ;;  %2514 = vmatmul.msk.f32.vlgmr.msra.gmra.mxu1 %vm5783_vm0, %v3653_v24 }
 0x11c   : > { %1123 = vmatpush.msrb.mxu0 %v5861_v36  ;;  %1143 = vmatpush.msrb.mxu1 %v5862_v27 }
 0x11d   : > { %1166 = vmatpush.msrb.mxu2 %v5863_v29  ;;  %1186 = vmatpush.msrb.mxu3 %v5864_v58 }
 0x11e   : > { %1124 = vmatpush.msrb.mxu0 %v5865_v14  ;;  %1144 = vmatpush.msrb.mxu1 %v5866_v52 }
 0x11f   : > { %608 = vadd.xlane.f32.xlu2 %v607_v8  ;;  %2519 = vmatmul.msk.f32.vlgmr.msrb.gmra.mxu2 %vm5783_vm0, %v3653_v24 }
 0x120   : > { %2520 = vmatmul.msk.f32.vlgmr.msrb.gmra.mxu3 %vm5783_vm0, %v3653_v24  ;;  %1243 = vmatpush.msra.mxu2 %v5867_v41 }
 0x121   : > { %1263 = vmatpush.msra.mxu3 %v5868_v33  ;;  %1125 = vmatpush.msrb.mxu0 %v5869_v7 }
 0x122   : > { %1145 = vmatpush.msrb.mxu1 %v5870_v49  ;;  %1244 = vmatpush.msra.mxu2 %v5871_v57 }
 0x123   : > { %1264 = vmatpush.msra.mxu3 %v5872_v59  ;;  %1126 = vmatpush.msrb.mxu0 %v5873_v15 }
 0x124   : > { %1146 = vmatpush.msrb.mxu1 %v5874_v25  ;;  %1245 = vmatpush.msra.mxu2 %v5875_v43 }
 0x125   : > { %1265 = vmatpush.msra.mxu3 %v5876_v30  ;;  %2517 = vmatmul.msk.f32.vlgmr.msrb.gmra.mxu0 %vm5783_vm0, %v3653_v24 }
 0x126   : > { %2518 = vmatmul.msk.f32.vlgmr.msrb.gmra.mxu1 %vm5783_vm0, %v3653_v24  ;;  %1203 = vmatpush.msra.mxu0 %v5877_v4 }
 0x127   : > { %1223 = vmatpush.msra.mxu1 %v5878_v42  ;;  %1246 = vmatpush.msra.mxu2 %v5879_v63 }
 0x128   : > { %1266 = vmatpush.msra.mxu3 %v5880_v13  ;;  %2523 = vmatmul.msk.f32.vlgmr.msra.gmra.mxu2 %vm5783_vm0, %v3653_v24 }
 0x129   : > { %2524 = vmatmul.msk.f32.vlgmr.msra.gmra.mxu3 %vm5783_vm0, %v3653_v24  ;;  %1204 = vmatpush.msra.mxu0 %v5881_v3 }
 0x12a   : > { %1224 = vmatpush.msra.mxu1 %v5882_v46  ;;  %1323 = vmatpush.msrb.mxu2 %v5883_v11 }
 0x12b   : > { %1343 = vmatpush.msrb.mxu3 %v5884_v9  ;;  %1205 = vmatpush.msra.mxu0 %v5885_v23 }
 0x12c   : > { %1225 = vmatpush.msra.mxu1 %v5886_v32  ;;  %1324 = vmatpush.msrb.mxu2 %v5887_v40 }
 0x12d   : > { %1344 = vmatpush.msrb.mxu3 %v5888_v51  ;;  %1206 = vmatpush.msra.mxu0 %v5889_v61 }
 0x12e   : > { %1226 = vmatpush.msra.mxu1 %v5890_v1  ;;  %1325 = vmatpush.msrb.mxu2 %v5891_v45 }
 0x12f   : > { %1345 = vmatpush.msrb.mxu3 %v5892_v54  ;;  %2521 = vmatmul.msk.f32.vlgmr.msra.gmra.mxu0 %vm5783_vm0, %v3653_v24 }
 0x130   : > { %2522 = vmatmul.msk.f32.vlgmr.msra.gmra.mxu1 %vm5783_vm0, %v3653_v24  ;;  %1283 = vmatpush.msrb.mxu0 %v5893_v2 }
 0x131   : > { %1303 = vmatpush.msrb.mxu1 %v5894_v12  ;;  %1326 = vmatpush.msrb.mxu2 %v5895_v20 }
 0x132   : > { %1346 = vmatpush.msrb.mxu3 %v5896_v35  ;;  %2527 = vmatmul.msk.f32.vlgmr.msrb.gmra.mxu2 %vm5783_vm0, %v3653_v24 }
 0x133   : > { %2528 = vmatmul.msk.f32.vlgmr.msrb.gmra.mxu3 %vm5783_vm0, %v3653_v24  ;;  %2619 = vset.pattern.permute.xlu2 %v2994_v62 }
 0x134   : > { %1284 = vmatpush.msrb.mxu0 %v5897_v48  ;;  %1304 = vmatpush.msrb.mxu1 %v5898_v55 }
 0x135   : > { %2620 = vset.pattern.permute.xlu0 %v2994_v62  ;;  %2621 = vset.pattern.permute.xlu1 %v2994_v62 }
 0x136   : > { %1285 = vmatpush.msrb.mxu0 %v5899_v19  ;;  %1305 = vmatpush.msrb.mxu1 %v5900_v26 }
 0x137   : > { %704 = vperm.xlu2 %2619, %v701_v16  }
 0x138   : > { %1286 = vmatpush.msrb.mxu0 %v5901_v18  ;;  %1306 = vmatpush.msrb.mxu1 %v5902_v22 }
 0x139   : > { %2525 = vmatmul.msk.f32.vlgmr.msrb.gmra.mxu0 %vm5783_vm0, %v3653_v24  ;;  %2526 = vmatmul.msk.f32.vlgmr.msrb.gmra.mxu1 %vm5783_vm0, %v3653_v24 }
 0x173   : > { %v3843_v8 = vpop.f32.mrf.mxu0  ;;  %v3848_v21 = vpop.f32.mrf.mxu1 }
 0x178   : > { %v3855_v52 = vpop.f32.mrf.mxu2  ;;  %v3857_v41 = vpop.f32.mrf.mxu3 }
 0x17b   : > { %v3852_v58 = vpop.f32.mrf.mxu0  ;;  %v3861_v7 = vpop.f32.mrf.mxu1 }
 0x180   : > { %v3870_v40 = vpop.f32.mrf.mxu2  ;;  %v3873_v1 = vpop.f32.mrf.mxu3 }
 0x184   : > { %v3865_v30 = vpop.f32.mrf.mxu0  ;;  %v3875_v35 = vpop.f32.mrf.mxu1 }
 0x189   : > { %v615_v34 = vpop.xlane.xlu1 %614  ;;  %v612_v56 = vpop.xlane.xlu0 %611 }
 0x18a   : > { %v623_v60 = vadd.f32 %v619_v31, %v615_v34  ;;  %v622_v5 = vadd.f32 %v618_v28, %v612_v56  ;;  %v606_v10 = vpop.xlane.xlu2 %605 }
 0x18b   : > { %v620_v50 = vadd.f32 %v616_v17, %v606_v10 }
 0x18c   : > { %v2496_v53 = vmul.f32 -1.442695, %v623_v60  ;;  %v2495_v24 = vmul.f32 -1.442695, %v622_v5 }
 0x18d   : > { %v2493_v38 = vmul.f32 -1.442695, %v620_v50  ;;  %v968_v31 = vpop.f32.mrf.mxu0 }
 0x18e   : > { %2622 = vpow2.f32 %v2496_v53  ;;  %v928_v53 = vpop.f32.mrf.mxu2 }
 0x18f   : > { %2624 = vpow2.f32 %v2495_v24  ;;  %v3889_v24 = vpop.f32.mrf.mxu3 }
 0x190   : > { %2626 = vpow2.f32 %v2493_v38 }
 0x192   : > { %v609_v37 = vpop.xlane.xlu2 %608 }
 0x193   : > { %v621_v39 = vadd.f32 %v617_v44, %v609_v37 }
 0x194   : > { %v2623_v47 = vpop.eup %2622 }
 0x195   : > { %v2625_v0 = vpop.eup %2624  ;;  %v3850_v6 = vadd.f32 1.0, %v2623_v47  ;;  %v2494_v29 = vmul.f32 -1.442695, %v621_v39  ;;  %v988_v47 = vpop.f32.mrf.mxu1 }
 0x196   : > { %v2627_v36 = vpop.eup %2626  ;;  %v638_v27 = vadd.f32 1.0, %v2625_v0 }
 0x197   : > { %2628 = vrcp.f32 %v3850_v6  ;;  %v636_v14 = vadd.f32 1.0, %v2627_v36  ;;  %v696_v18 = vand.u32 2147483648, %v3850_v6  ;;  %vm690_vm11 = vweird.f32 %v3850_v6 }
 0x198   : > { %2630 = vrcp.f32 %v638_v27  ;;  %v679_v13 = vand.u32 2147483647, %v638_v27  ;;  %v681_v3 = vand.u32 2147483648, %v638_v27  ;;  %vm675_vm4 = vweird.f32 %v638_v27 }
 0x199   : > { %2632 = vrcp.f32 %v636_v14  ;;  %v651_v9 = vand.u32 2147483648, %v636_v14  ;;  %v649_v32 = vand.u32 2147483647, %v636_v14  ;;  %vm645_vm6 = vweird.f32 %v636_v14 }
 0x19a   : > { %2634 = vpow2.f32 %v2494_v29  ;;  %v682_v45 = vor.u32 1.1754944e-38, %v681_v3  ;;  %v705_v2 = vpop.permute.xlu2 %704  ;;  %vm680_vm7 = vcmp.eq.f32.partialorder %v679_v13, 8.507059e+37  ;;  %v694_v28 = vand.u32 2147483647, %v3850_v6  ;;  %v1008_v29 = vpop.f32.mrf.mxu2 }
 0x19b   : > { %v652_v20 = vor.u32 1.1754944e-38, %v651_v9  ;;  %vm650_vm9 = vcmp.eq.f32.partialorder %v649_v32, 8.507059e+37  ;;  %v3879_v26 = vperm.slane %v705_v2, 0  ;;  %v697_v5 = vor.u32 1.1754944e-38, %v696_v18 }
 0x19c   : > { %vm695_vm14 = vcmp.eq.f32.partialorder %v694_v28, 8.507059e+37 }
 0x19d   : > { %v3859_v33 = vpop.eup %2628  ;;  %v969_v17 = vadd.f32 %v968_v31, %v3879_v26  ;;  %v789_v13 = vadd.f32 %v3857_v41, %v3879_v26  ;;  %v929_v2 = vadd.f32 %v928_v53, %v3879_v26 }
 0x19e   : > { %v2631_v49 = vpop.eup %2630  ;;  %v686_v57 = vmul.f32 %v3859_v33, %v3850_v6  ;;  %vm691_vm10 = vweird.f32 %v3859_v33  ;;  %v989_v6 = vadd.f32 %v988_v47, %v3879_v26 }
 0x19f   : > { %v2633_v59 = vpop.eup %2632  ;;  %v671_v15 = vmul.f32 %v2631_v49, %v638_v27  ;;  %vm676_vm2 = vweird.f32 %v2631_v49  ;;  %vm692_vm12 = vmor %vm690_vm11, %vm691_vm10  ;;  %v2541_v38 = vmul.f32 -1.442695, %v969_v17  ;;  %v2532_v41 = vmul.f32 -1.442695, %v789_v13 }
 0x1a0   : > { %v2635_v25 = vpop.eup %2634  ;;  %v641_v43 = vmul.f32 %v2633_v59, %v636_v14  ;;  %v687_v63 = vsub.f32 1.0, %v686_v57  ;;  %vm646_vm3 = vweird.f32 %v2633_v59  ;;  %vm677_vm5 = vmor %vm675_vm4, %vm676_vm2  ;;  %v2542_v27 = vmul.f32 -1.442695, %v989_v6 }
 0x1a1   : > { %v3867_v4 = vadd.f32 1.0, %v2635_v25  ;;  %v672_v42 = vsub.f32 1.0, %v671_v15  ;;  %vm647_vm8 = vmor %vm645_vm6, %vm646_vm3  ;;  %v729_v15 = vadd.f32 %v3843_v8, %v3879_v26 }
 0x1a2   : > { %v642_v46 = vsub.f32 1.0, %v641_v43  ;;  %v688_v61 = vmul.f32 %v3859_v33, %v687_v63  ;;  %v749_v43 = vadd.f32 %v3848_v21, %v3879_v26  ;;  %v769_v63 = vadd.f32 %v3855_v52, %v3879_v26 }
 0x1a3   : > { %2636 = vrcp.f32 %v3867_v4  ;;  %v673_v11 = vmul.f32 %v2631_v49, %v672_v42  ;;  %v666_v60 = vand.u32 2147483648, %v3867_v4  ;;  %v664_v50 = vand.u32 2147483647, %v3867_v4 }
 0x1a4   : > { %v643_v23 = vmul.f32 %v2633_v59, %v642_v46  ;;  %v689_v19 = vadd.f32 %v3859_v33, %v688_v61  ;;  %vm660_vm15 = vweird.f32 %v3867_v4  ;;  %2638 = vpow2.f32 %v2541_v38 }
 0x1a5   : > { %v674_v51 = vadd.f32 %v2631_v49, %v673_v11  ;;  %v667_v39 = vor.u32 1.1754944e-38, %v666_v60  ;;  %vm665_vm2 = vcmp.eq.f32.partialorder %v664_v50, 8.507059e+37  ;;  %2640 = vpow2.f32 %v2542_v27 }
 0x1a6   : > { %v644_v54 = vadd.f32 %v2633_v59, %v643_v23  ;;  %v693_v56 = vsel %vm692_vm12, %v3859_v33, %v689_v19  ;;  %v1009_v33 = vadd.f32 %v1008_v29, %v3879_v26  ;;  %v2529_v3 = vmul.f32 -1.442695, %v729_v15 }
 0x1a7   : > { %v678_v12 = vsel %vm677_vm5, %v2631_v49, %v674_v51  ;;  %v698_v44 = vsel %vm695_vm14, %v697_v5, %v693_v56  ;;  %v1028_v49 = vpop.f32.mrf.mxu3  ;;  %v809_v46 = vadd.f32 %v3852_v58, %v3879_v26  ;;  %v2530_v8 = vmul.f32 -1.442695, %v749_v43  ;;  %v1048_v5 = vpop.f32.mrf.mxu0 }
 0x1a8   : > { %v683_v16 = vsel %vm680_vm7, %v682_v45, %v678_v12  ;;  %v648_v62 = vsel %vm647_vm8, %v2633_v59, %v644_v54  ;;  %v1029_v57 = vadd.f32 %v1028_v49, %v3879_v26  ;;  %v2543_v25 = vmul.f32 -1.442695, %v1009_v33 }
 0x1a9   : > { %v2637_v48 = vpop.eup %2636  ;;  %1971 = vperm.xlu2 %2619, %v683_v16   ;;  %v653_v55 = vsel %vm650_vm9, %v652_v20, %v648_v62  ;;  %v829_v21 = vadd.f32 %v3861_v7, %v3879_v26  ;;  %v849_v52 = vadd.f32 %v3870_v40, %v3879_v26  ;;  %v2531_v9 = vmul.f32 -1.442695, %v769_v63 }
 0x1aa   : > { %1961 = vperm.xlu0 %2620, %v653_v55   ;;  %v656_v22 = vmul.f32 %v2637_v48, %v3867_v4  ;;  %vm661_vm13 = vweird.f32 %v2637_v48  ;;  %v2639_v14 = vpop.eup %2638  ;;  %v2544_v4 = vmul.f32 -1.442695, %v1029_v57  ;;  %v869_v23 = vadd.f32 %v3873_v1, %v3879_v26 }
 0x1ab   : > { %vm662_vm1 = vmor %vm660_vm15, %vm661_vm13  ;;  %v3895_v59 = vadd.f32 1.0, %v2639_v14  ;;  %v2641_v42 = vpop.eup %2640  ;;  %v2533_v51 = vmul.f32 -1.442695, %v809_v46  ;;  %v2534_v61 = vmul.f32 -1.442695, %v829_v21  ;;  %v889_v45 = vadd.f32 %v3865_v30, %v3879_v26 }
 0x1ac   : > { %v657_v34 = vsub.f32 1.0, %v656_v22  ;;  %v3910_v11 = vadd.f32 1.0, %v2641_v42  ;;  %v2535_v54 = vmul.f32 -1.442695, %v849_v52  ;;  %v909_v40 = vadd.f32 %v3875_v35, %v3879_v26 }
 0x1ad   : > { %2642 = vrcp.f32 %v3895_v59  ;;  %v2536_v1 = vmul.f32 -1.442695, %v869_v23  ;;  %v2537_v55 = vmul.f32 -1.442695, %v889_v45  ;;  %v2539_v22 = vmul.f32 -1.442695, %v929_v2 }
 0x1ae   : > { %v658_v10 = vmul.f32 %v2637_v48, %v657_v34  ;;  %2644 = vpow2.f32 %v2543_v25  ;;  %v2538_v19 = vmul.f32 -1.442695, %v909_v40  ;;  %v1668_v17 = vand.u32 2147483647, %v3895_v59 }
 0x1af   : > { %2646 = vpow2.f32 %v2544_v4  ;;  %v1670_v50 = vand.u32 2147483648, %v3895_v59  ;;  %v1049_v53 = vadd.f32 %v1048_v5, %v3879_v26  ;;  %vm1664_vm3 = vweird.f32 %v3895_v59 }
 0x1b0   : > { %v659_v37 = vadd.f32 %v2637_v48, %v658_v10  ;;  %2648 = vpow2.f32 %v2529_v3  ;;  %vm3945_vm4 = vcmp.eq.f32.partialorder %v1668_v17, 8.507059e+37  ;;  %v1683_v27 = vand.u32 2147483647, %v3910_v11 }
 0x1b1   : > { %1976 = vperm.xlu2 %2619, %v698_v44   ;;  %2650 = vpow2.f32 %v2530_v8  ;;  %v1685_v29 = vand.u32 2147483648, %v3910_v11  ;;  %v1671_v33 = vor.u32 1.1754944e-38, %v1670_v50  ;;  %vm1679_vm6 = vweird.f32 %v3910_v11  ;;  %v1088_v8 = vpop.f32.mrf.mxu2 }
 0x1b2   : > { %v663_v0 = vsel %vm662_vm1, %v2637_v48, %v659_v37  ;;  %2652 = vrcp.f32 %v3910_v11  ;;  %v949_v48 = vadd.f32 %v3889_v24, %v3879_v26  ;;  %vm3981_vm8 = vcmp.eq.f32.partialorder %v1683_v27, 8.507059e+37 }
 0x1b3   : > { %v668_v36 = vsel %vm665_vm2, %v667_v39, %v663_v0  ;;  %v3916_v32 = vpop.eup %2642  ;;  %2654 = vpow2.f32 %v2531_v9  ;;  %v2545_v0 = vmul.f32 -1.442695, %v1049_v53  ;;  %v1686_v9 = vor.u32 1.1754944e-38, %v1685_v29 }
 0x1b4   : > { %1966 = vperm.xlu1 %2621, %v668_v36   ;;  %v2645_v58 = vpop.eup %2644  ;;  %2656 = vpow2.f32 %v2532_v41  ;;  %v1660_v16 = vmul.f32 %v3916_v32, %v3895_v59  ;;  %v2540_v56 = vmul.f32 -1.442695, %v949_v48  ;;  %vm1665_vm5 = vweird.f32 %v3916_v32 }
 0x1b5   : > { %v2647_v7 = vpop.eup %2646  ;;  %2658 = vpow2.f32 %v2533_v51  ;;  %v3924_v12 = vadd.f32 1.0, %v2645_v58  ;;  %vm3976_vm7 = vmor %vm1664_vm3, %vm1665_vm5 }
 0x1b6   : > { %v2649_v20 = vpop.eup %2648  ;;  %2660 = vpow2.f32 %v2534_v61  ;;  %v3928_v62 = vadd.f32 1.0, %v2647_v7  ;;  %v1661_v28 = vsub.f32 1.0, %v1660_v16  ;;  %v1128_v16 = vpop.f32.mrf.mxu0 }
 0x1b7   : > { %v2651_v30 = vpop.eup %2650  ;;  %2662 = vpow2.f32 %v2535_v54  ;;  %v3942_v38 = vadd.f32 1.0, %v2649_v20  ;;  %v1700_v17 = vand.u32 2147483648, %v3924_v12  ;;  %vm1694_vm11 = vweird.f32 %v3924_v12 }
 0x1b8   : > { %v3932_v35 = vpop.eup %2652  ;;  %2664 = vpow2.f32 %v2536_v1  ;;  %v1662_v37 = vmul.f32 %v3916_v32, %v1661_v28  ;;  %v3949_v47 = vadd.f32 1.0, %v2651_v30  ;;  %vm1709_vm13 = vweird.f32 %v3928_v62 }
 0x1b9   : > { %v2655_v18 = vpop.eup %2654  ;;  %2666 = vrcp.f32 %v3924_v12  ;;  %v1675_v60 = vmul.f32 %v3932_v35, %v3910_v11  ;;  %v1490_v4 = vand.u32 2147483648, %v3942_v38  ;;  %vm1680_vm9 = vweird.f32 %v3932_v35 }
 0x1ba   : > { %v2657_v31 = vpop.eup %2656  ;;  %2668 = vrcp.f32 %v3928_v62  ;;  %v3958_v49 = vadd.f32 1.0, %v2655_v18  ;;  %v1663_v63 = vadd.f32 %v3916_v32, %v1662_v37  ;;  %v1505_v45 = vand.u32 2147483648, %v3949_v47  ;;  %vm4010_vm10 = vmor %vm1679_vm6, %vm1680_vm9 }
 0x1bb   : > { %v2659_v34 = vpop.eup %2658  ;;  %2670 = vpow2.f32 %v2537_v55  ;;  %v1676_v36 = vsub.f32 1.0, %v1675_v60  ;;  %v3960_v57 = vadd.f32 1.0, %v2657_v31  ;;  %v1129_v43 = vadd.f32 %v1128_v16, %v3879_v26 }
 0x1bc   : > { %v2661_v10 = vpop.eup %2660  ;;  %2672 = vpow2.f32 %v2538_v19  ;;  %v3963_v25 = vadd.f32 1.0, %v2659_v34  ;;  %v1667_v54 = vsel %vm3976_vm7, %v3916_v32, %v1663_v63  ;;  %v1520_v55 = vand.u32 2147483648, %v3958_v49 }
 0x1bd   : > { %v2663_v24 = vpop.eup %2662  ;;  %2674 = vpow2.f32 %v2539_v22  ;;  %v3970_v3 = vadd.f32 1.0, %v2661_v10  ;;  %v1677_v21 = vmul.f32 %v3932_v35, %v1676_v36  ;;  %v1672_v18 = vsel %vm3945_vm4, %v1671_v33, %v1667_v54 }
 0x1be   : > { %v2665_v44 = vpop.eup %2664  ;;  %2676 = vpow2.f32 %v2540_v56  ;;  %v3987_v41 = vadd.f32 1.0, %v2663_v24  ;;  %v1698_v22 = vand.u32 2147483647, %v3924_v12  ;;  %v1535_v31 = vand.u32 2147483648, %v3960_v57 }
 0x1bf   : > { %v3951_v6 = vpop.eup %2666  ;;  %2678 = vpow2.f32 %v2545_v0  ;;  %v3989_v51 = vadd.f32 1.0, %v2665_v44  ;;  %v1678_v2 = vadd.f32 %v3932_v35, %v1677_v21  ;;  %v1713_v34 = vand.u32 2147483647, %v3928_v62  ;;  %v1068_v44 = vpop.f32.mrf.mxu1 }
 0x1c0   : > { %v3955_v14 = vpop.eup %2668  ;;  %v1690_v13 = vmul.f32 %v3951_v6, %v3924_v12  ;;  %2680 = vrcp.f32 %v3942_v38  ;;  %v1715_v10 = vand.u32 2147483648, %v3928_v62  ;;  %v4039_v24 = vperm.slane %v1672_v18, 0 }
 0x1c1   : > { %v2671_v15 = vpop.eup %2670  ;;  %v1705_v23 = vmul.f32 %v3955_v14, %v3928_v62  ;;  %2682 = vrcp.f32 %v3949_v47  ;;  %v1682_v60 = vsel %vm4010_vm10, %v3932_v35, %v1678_v2  ;;  %vm1695_vm12 = vweird.f32 %v3951_v6 }
 0x1c2   : > { %v2673_v42 = vpop.eup %2672  ;;  %v3991_v58 = vadd.f32 1.0, %v2671_v15  ;;  %v1691_v40 = vsub.f32 1.0, %v1690_v13  ;;  %2684 = vrcp.f32 %v3958_v49  ;;  %5912 = vst [vmem:[#allocation20_spill] sm:$0xff] %v4039_v24  ;;  %vm4046_vm14 = vcmp.eq.f32.partialorder %v1698_v22, 8.507059e+37  ;;  %vm4063_vm1 = vmor %vm1694_vm11, %vm1695_vm12 }
 0x1c3   : > { %v2675_v46 = vpop.eup %2674  ;;  %v3995_v61 = vadd.f32 1.0, %v2673_v42  ;;  %v1706_v20 = vsub.f32 1.0, %v1705_v23  ;;  %2686 = vrcp.f32 %v3960_v57  ;;  %vm1710_vm15 = vweird.f32 %v3955_v14 }
 0x1c4   : > { %v2677_v59 = vpop.eup %2676  ;;  %v4002_v1 = vadd.f32 1.0, %v2675_v46  ;;  %2688 = vrcp.f32 %v3963_v25  ;;  %v1692_v28 = vmul.f32 %v3951_v6, %v1691_v40  ;;  %v1550_v39 = vand.u32 2147483648, %v3963_v25  ;;  %vm4077_vm3 = vmor %vm1709_vm13, %vm1710_vm15 }
 0x1c5   : > { %v2679_v30 = vpop.eup %2678  ;;  %v4014_v32 = vadd.f32 1.0, %v2677_v59  ;;  %v1707_v5 = vmul.f32 %v3955_v14, %v1706_v20  ;;  %v1069_v0 = vadd.f32 %v1068_v44, %v3879_v26  ;;  %v1687_v27 = vsel %vm3981_vm8, %v1686_v9, %v1682_v60 }
 0x1c6   : > { %v4024_v11 = vpop.eup %2680  ;;  %v4035_v50 = vadd.f32 1.0, %v2679_v30  ;;  %v1693_v29 = vadd.f32 %v3951_v6, %v1692_v28  ;;  %v1701_v33 = vor.u32 1.1754944e-38, %v1700_v17  ;;  %2690 = vrcp.f32 %v3970_v3 }
 0x1c7   : > { %v4037_v53 = vpop.eup %2682  ;;  %v1708_v63 = vadd.f32 %v3955_v14, %v1707_v5  ;;  %vm4068_vm2 = vcmp.eq.f32.partialorder %v1713_v34, 8.507059e+37  ;;  %v1716_v46 = vor.u32 1.1754944e-38, %v1715_v10  ;;  %v1565_v52 = vand.u32 2147483648, %v3970_v3  ;;  %v1108_v5 = vpop.f32.mrf.mxu3 }
 0x1c8   : > { %5911 = vst [vmem:[#allocation17_spill] sm:$0xff] %v4037_v53  ;;  %v4044_v37 = vpop.eup %2684  ;;  %2692 = vrcp.f32 %v4035_v50  ;;  %v1089_v9 = vadd.f32 %v1088_v8, %v3879_v26  ;;  %v4085_v23 = vperm.slane %v1687_v27, 0  ;;  %v2546_v54 = vmul.f32 -1.442695, %v1069_v0 }
 0x1c9   : > { %v4053_v36 = vpop.eup %2686  ;;  %2694 = vrcp.f32 %v3987_v41  ;;  %v1697_v62 = vsel %vm4063_vm1, %v3951_v6, %v1693_v29  ;;  %v1580_v40 = vand.u32 2147483648, %v3987_v41  ;;  %v1712_v20 = vsel %vm4077_vm3, %v3955_v14, %v1708_v63 }
 0x1ca   : > { %v4059_v15 = vpop.eup %2688  ;;  %5921 = vst [vmem:[#allocation23_spill] sm:$0xff] %v4085_v23  ;;  %2696 = vrcp.f32 %v3989_v51  ;;  %v1595_v30 = vand.u32 2147483648, %v3989_v51  ;;  %v1610_v6 = vand.u32 2147483648, %v3991_v58  ;;  %v2547_v28 = vmul.f32 -1.442695, %v1089_v9 }
 0x1cb   : > { %2698 = vrcp.f32 %v3991_v58  ;;  %v1702_v14 = vsel %vm4046_vm14, %v1701_v33, %v1697_v62  ;;  %v1625_v34 = vand.u32 2147483648, %v3995_v61  ;;  %v1717_v44 = vsel %vm4068_vm2, %v1716_v46, %v1712_v20 }
 0x1cc   : > { %2700 = vrcp.f32 %v3995_v61  ;;  %v4101_v18 = vpop.eup %2690  ;;  %v1640_v0 = vand.u32 2147483648, %v4002_v1  ;;  %v1109_v27 = vadd.f32 %v1108_v5, %v3879_v26  ;;  %v4125_v42 = vmul.f32 %v4024_v11, %v3942_v38 }
 0x1cd   : > { %2702 = vrcp.f32 %v4002_v1  ;;  %v4129_v63 = vor.u32 1.1754944e-38, %v1490_v4  ;;  %v4133_v46 = vperm.slane %v1702_v14, 0  ;;  %v4139_v12 = vmul.f32 %v4037_v53, %v3949_v47 }
 0x1ce   : > { %v4106_v17 = vpop.eup %2692  ;;  %2704 = vpow2.f32 %v2546_v54  ;;  %v4143_v54 = vperm.slane %v1717_v44, 0  ;;  %v4147_v4 = vor.u32 1.1754944e-38, %v1505_v45  ;;  %v4151_v62 = vmul.f32 %v4044_v37, %v3958_v49 }
 0x1cf   : > { %v4112_v10 = vpop.eup %2694  ;;  %2706 = vrcp.f32 %v4014_v32  ;;  %5922 = vst [vmem:[#allocation25_spill] sm:$0xff] %v4133_v46  ;;  %v1720_v8 = vmul.f32 %v4106_v17, %v4035_v50  ;;  %v4155_v20 = vor.u32 1.1754944e-38, %v1520_v55  ;;  %v4165_v5 = vor.u32 1.1754944e-38, %v1535_v31  ;;  %v1148_v46 = vpop.f32.mrf.mxu1 }
 0x1d0   : > { %v4119_v29 = vpop.eup %2696  ;;  %2708 = vpow2.f32 %v2547_v28  ;;  %5923 = vst [vmem:[#allocation9_spill] sm:$0xff] %v4143_v54  ;;  %v4161_v28 = vmul.f32 %v4053_v36, %v3960_v57  ;;  %v4169_v45 = vmul.f32 %v4059_v15, %v3963_v25  ;;  %v2548_v44 = vmul.f32 -1.442695, %v1109_v27 }
 0x1d1   : > { %v4131_v13 = vpop.eup %2698  ;;  %5924 = vst [vmem:[#allocation10_spill] sm:$0xff] %v4147_v4  ;;  %v4173_v55 = vor.u32 1.1754944e-38, %v1550_v39  ;;  %v4177_v60 = vmul.f32 %v4101_v18, %v3970_v3  ;;  %v4179_v22 = vor.u32 1.1754944e-38, %v1565_v52  ;;  %v4183_v31 = vmul.f32 %v4112_v10, %v3987_v41 }
 0x1d2   : > { %v4141_v9 = vpop.eup %2700  ;;  %5925 = vst [vmem:[#allocation33_spill] sm:$0xff] %v4155_v20  ;;  %v1721_v2 = vsub.f32 1.0, %v1720_v8  ;;  %v1728_v27 = vand.u32 2147483647, %v4035_v50  ;;  %v1730_v59 = vand.u32 2147483648, %v4035_v50  ;;  %v4189_v21 = vor.u32 1.1754944e-38, %v1580_v40 }
 0x1d3   : > { %v4157_v14 = vpop.eup %2702  ;;  %5926 = vst [vmem:[#allocation35_spill] sm:$0xff] %v4165_v5  ;;  %v4193_v39 = vmul.f32 %v4119_v29, %v3989_v51  ;;  %v4195_v56 = vor.u32 1.1754944e-38, %v1595_v30  ;;  %v4199_v52 = vmul.f32 %v4131_v13, %v3991_v58  ;;  %v4201_v19 = vor.u32 1.1754944e-38, %v1610_v6 }
 0x1d4   : > { %v2705_v35 = vpop.eup %2704  ;;  %5927 = vst [vmem:[#allocation38_spill] sm:$0xff] %v4173_v55  ;;  %v4205_v7 = vmul.f32 %v4141_v9, %v3995_v61  ;;  %2710 = vpow2.f32 %v2548_v44  ;;  %vm1484_vm4 = vweird.f32 %v3942_v38  ;;  %vm1724_vm5 = vweird.f32 %v4035_v50 }
 0x1d5   : > { %5928 = vst [vmem:[#allocation41_spill] sm:$0xff] %v4179_v22  ;;  %v4185_v48 = vpop.eup %2706  ;;  %v4207_v40 = vadd.f32 1.0, %v2705_v35  ;;  %vm1485_vm6 = vweird.f32 %v4024_v11  ;;  %v4213_v30 = vor.u32 1.1754944e-38, %v1625_v34  ;;  %v1630_v6 = vmul.f32 %v4157_v14, %v4002_v1 }
 0x1d6   : > { %5929 = vst [vmem:[#allocation13_spill] sm:$0xff] %v4189_v21  ;;  %v2709_v8 = vpop.eup %2708  ;;  %v4217_v33 = vor.u32 1.1754944e-38, %v1640_v0  ;;  %vm1499_vm7 = vweird.f32 %v3949_v47  ;;  %v1722_v35 = vmul.f32 %v4106_v17, %v1721_v2  ;;  %vm4221_vm8 = vcmp.eq.f32.partialorder %v1728_v27, 8.507059e+37  ;;  %vm4297_vm2 = vmor %vm1484_vm4, %vm1485_vm6 }
 0x1d7   : > { %5930 = vst [vmem:[#allocation14_spill] sm:$0xff] %v4195_v56  ;;  %v4225_v16 = vor.u32 1.1754944e-38, %v1730_v59  ;;  %vm1500_vm9 = vweird.f32 %v4037_v53  ;;  %v1645_v34 = vmul.f32 %v4185_v48, %v4014_v32  ;;  %vm1514_vm10 = vweird.f32 %v3958_v49 }
 0x1d8   : > { %5931 = vst [vmem:[#allocation18_spill] sm:$0xff] %v4201_v19  ;;  %vm1515_vm11 = vweird.f32 %v4044_v37  ;;  %v1481_v0 = vsub.f32 1.0, %v4125_v42  ;;  %v1496_v54 = vsub.f32 1.0, %v4139_v12  ;;  %v1511_v2 = vsub.f32 1.0, %v4151_v62  ;;  %vm4324_vm6 = vmor %vm1499_vm7, %vm1500_vm9 }
 0x1d9   : > { %5932 = vst [vmem:[#allocation21_spill] sm:$0xff] %v4213_v30  ;;  %v4235_v27 = vadd.f32 1.0, %v2709_v8  ;;  %vm1529_vm12 = vweird.f32 %v3960_v57  ;;  %vm1725_vm13 = vweird.f32 %v4106_v17  ;;  %vm1530_vm14 = vweird.f32 %v4053_v36  ;;  %vm4339_vm7 = vmor %vm1514_vm10, %vm1515_vm11 }
 0x1da   : > { %5933 = vst [vmem:[#allocation53_spill] sm:$0xff] %v4217_v33  ;;  %2712 = vrcp.f32 %v4207_v40  ;;  %v2549_v59 = vmul.f32 -1.442695, %v1129_v43  ;;  %v1149_v23 = vadd.f32 %v1148_v46, %v3879_v26  ;;  %vm1545_vm1 = vweird.f32 %v4059_v15  ;;  %v2711_v24 = vpop.eup %2710  ;;  %vm4259_vm15 = vmor %vm1724_vm5, %vm1725_vm13 }
 0x1db   : > { %v1526_v42 = vsub.f32 1.0, %v4161_v28  ;;  %v1541_v12 = vsub.f32 1.0, %v4169_v45  ;;  %v1556_v62 = vsub.f32 1.0, %v4177_v60  ;;  %v1571_v8 = vsub.f32 1.0, %v4183_v31  ;;  %vm4356_vm9 = vmor %vm1529_vm12, %vm1530_vm14 }
 0x1dc   : > { %v1723_v33 = vadd.f32 %v4106_v17, %v1722_v35  ;;  %vm1560_vm3 = vweird.f32 %v4101_v18  ;;  %v1586_v43 = vsub.f32 1.0, %v4193_v39  ;;  %v1601_v46 = vsub.f32 1.0, %v4199_v52 }
 0x1dd   : > { %v1616_v30 = vsub.f32 1.0, %v4205_v7  ;;  %v1631_v28 = vsub.f32 1.0, %v1630_v6  ;;  %v1646_v45 = vsub.f32 1.0, %v1645_v34  ;;  %2714 = vrcp.f32 %v4235_v27 }
 0x1de   : > { %v2550_v31 = vmul.f32 -1.442695, %v1149_v23  ;;  %v1482_v39 = vmul.f32 %v4024_v11, %v1481_v0  ;;  %v1497_v7 = vmul.f32 %v4037_v53, %v1496_v54  ;;  %v1512_v52 = vmul.f32 %v4044_v37, %v1511_v2 }
 0x1df   : > { %2716 = vpow2.f32 %v2549_v59  ;;  %v5938_v50 = vand.u32 2147483648, %v4014_v32  ;;  %v1527_v6 = vmul.f32 %v4053_v36, %v1526_v42  ;;  %v1542_v34 = vmul.f32 %v4059_v15, %v1541_v12 }
 0x1e0   : > { %v4276_v23 = vadd.f32 1.0, %v2711_v24  ;;  %v4278_v0 = vpop.eup %2712  ;;  %v1727_v54 = vsel %vm4259_vm15, %v4106_v17, %v1723_v33  ;;  %v1557_v2 = vmul.f32 %v4101_v18, %v1556_v62  ;;  %v1572_v59 = vmul.f32 %v4112_v10, %v1571_v8 }
 0x1e1   : > { %v4272_v35 = vor.u32 1.1754944e-38, %v5938_v50  ;;  %v1587_v19 = vmul.f32 %v4119_v29, %v1586_v43  ;;  %v1602_v42 = vmul.f32 %v4131_v13, %v1601_v46  ;;  %v1617_v24 = vmul.f32 %v4141_v9, %v1616_v30  ;;  %v1168_v50 = vpop.f32.mrf.mxu2 }
 0x1e2   : > { %v1632_v12 = vmul.f32 %v4157_v14, %v1631_v28  ;;  %2718 = vpow2.f32 %v2550_v31  ;;  %v1647_v33 = vmul.f32 %v4185_v48, %v1646_v45  ;;  %v4303_v62 = vadd.f32 %v4024_v11, %v1482_v39 }
 0x1e3   : > { %5939 = vst [vmem:[#allocation54_spill] sm:$0xff] %v4272_v35  ;;  %v4306_v30 = vadd.f32 %v4037_v53, %v1497_v7  ;;  %v4309_v8 = vadd.f32 %v4044_v37, %v1512_v52  ;;  %v4311_v43 = vpop.eup %2714  ;;  %v1732_v46 = vsel %vm4221_vm8, %v4225_v16, %v1727_v54  ;;  %v1735_v60 = vmul.f32 %v4278_v0, %v4207_v40 }
 0x1e4   : > { %v5943_v28 = vmov 0  ;;  %2720 = vrcp.f32 %v4276_v23  ;;  %v4330_v45 = vadd.f32 %v4053_v36, %v1527_v6  ;;  %v1745_v16 = vand.u32 2147483648, %v4207_v40 }
 0x1e5   : > { %5942 = vst [vmem:[#allocation27_spill] sm:$0xff] %v4306_v30  ;;  %v5944_v28 = vsel %vm4324_vm6, 4294967295, %v5943_v28  ;;  %v2717_v44 = vpop.eup %2716  ;;  %v4344_v39 = vadd.f32 %v4059_v15, %v1542_v34  ;;  %v4347_v7 = vadd.f32 %v4101_v18, %v1557_v2  ;;  %v4350_v52 = vadd.f32 %v4112_v10, %v1572_v59 }
 0x1e6   : > { %5945 = vst [vmem:[#allocation31_spill] sm:$0xff] %v5944_v28  ;;  %v4361_v54 = vadd.f32 %v4119_v29, %v1587_v19  ;;  %v4364_v34 = vadd.f32 %v4131_v13, %v1602_v42  ;;  %v4367_v2 = vadd.f32 %v4141_v9, %v1617_v24  ;;  %v1169_v59 = vadd.f32 %v1168_v50, %v3879_v26  ;;  %v1188_v28 = vpop.f32.mrf.mxu3 }
 0x1e7   : > { %v4370_v35 = vperm.slane %v1732_v46, 0  ;;  %v1743_v56 = vand.u32 2147483647, %v4207_v40  ;;  %vm5951_vm11 = vweird.f32 %v3963_v25  ;;  %v5952_v19 = vmov 0  ;;  %v6040_v46 = vld [vmem:[#allocation17_spill] sm:$0xff] }
 0x1e8   : > { %vm4378_vm12 = vmor %vm5951_vm11, %vm1545_vm1  ;;  %v4383_v42 = vadd.f32 %v4157_v14, %v1632_v12  ;;  %v2719_v24 = vpop.eup %2718  ;;  %v5954_v50 = vand.u32 2147483647, %v3942_v38  ;;  %vm5957_vm10 = vweird.f32 %v3970_v3  ;;  %v5958_v21 = vmov 0 }
 0x1e9   : > { %5950 = vst [vmem:[#allocation34_spill] sm:$0xff] %v4370_v35  ;;  %v5953_v19 = vsel %vm4378_vm12, 4294967295, %v5952_v19  ;;  %v1736_v35 = vsub.f32 1.0, %v1735_v60  ;;  %vm4395_vm8 = vmor %vm5957_vm10, %vm1560_vm3  ;;  %v1750_v12 = vmul.f32 %v4311_v43, %v4235_v27  ;;  %v4402_v22 = vadd.f32 %v4185_v48, %v1647_v33 }
 0x1ea   : > { %vm4387_vm14 = vcmp.eq.f32.partialorder %v5954_v50, 8.507059e+37  ;;  %v5959_v21 = vsel %vm4395_vm8, 4294967295, %v5958_v21  ;;  %v4404_v38 = vadd.f32 1.0, %v2717_v44  ;;  %v4406_v50 = vor.u32 1.1754944e-38, %v1745_v16  ;;  %v4425_v16 = vpop.eup %2720 }
 0x1eb   : > { %vm5961_vm1 = vweird.f32 %v4112_v10  ;;  %vm5962_vm11 = vweird.f32 %v3987_v41  ;;  %v5963_v60 = vmov 0  ;;  %v1760_v55 = vand.u32 2147483648, %v4235_v27 }
 0x1ec   : > { %5960 = vst [vmem:[#allocation36_spill] sm:$0xff] %v4406_v50  ;;  %vm4412_vm5 = vmor %vm5962_vm11, %vm5961_vm1  ;;  %v5965_v50 = vand.u32 2147483647, %v3949_v47  ;;  %v5966_v5 = vmov 0  ;;  %v1758_v20 = vand.u32 2147483647, %v4235_v27  ;;  %vm5981_vm15 = vweird.f32 %v4119_v29 }
 0x1ed   : > { %v5964_v60 = vsel %vm4412_vm5, 4294967295, %v5963_v60  ;;  %v2551_v4 = vmul.f32 -1.442695, %v1169_v59  ;;  %v5969_v44 = vand.u32 2147483647, %v3958_v49  ;;  %v5976_v53 = vmov 0 }
 0x1ee   : > { %vm4429_vm3 = vcmp.eq.f32.partialorder %v5965_v50, 8.507059e+37  ;;  %v5972_v47 = vand.u32 2147483647, %v3960_v57  ;;  %v5973_v50 = vmov 0  ;;  %v5978_v59 = vand.u32 2147483647, %v3970_v3 }
 0x1ef   : > { %v5967_v5 = vsel %vm4429_vm3, 4294967295, %v5966_v5  ;;  %vm4441_vm1 = vcmp.eq.f32.partialorder %v5969_v44, 8.507059e+37  ;;  %v5979_v49 = vmov 0  ;;  %vm5982_vm13 = vweird.f32 %v3989_v51 }
 0x1f0   : > { %5968 = vst [vmem:[#allocation11_spill] sm:$0xff] %v5967_v5  ;;  %vm4447_vm11 = vcmp.eq.f32.partialorder %v5972_v47, 8.507059e+37  ;;  %v5975_v5 = vand.u32 2147483647, %v3963_v25  ;;  %vm4459_vm4 = vcmp.eq.f32.partialorder %v5978_v59, 8.507059e+37  ;;  %vm4467_vm0 = vmor %vm5982_vm13, %vm5981_vm15  ;;  %v4483_v44 = vadd.f32 1.0, %v2719_v24 }
 0x1f1   : > { %v5974_v50 = vsel %vm4447_vm11, 4294967295, %v5973_v50  ;;  %v5980_v49 = vsel %vm4459_vm4, 4294967295, %v5979_v49  ;;  %v5986_v47 = vand.u32 2147483647, %v3987_v41  ;;  %v5987_v59 = vmov 0 }
 0x1f2   : > { %vm4453_vm10 = vcmp.eq.f32.partialorder %v5975_v5, 8.507059e+37  ;;  %5985 = vst [vmem:[#allocation12_spill] sm:$0xff] %v4483_v44  ;;  %v1737_v25 = vmul.f32 %v4278_v0, %v1736_v35  ;;  %vm4492_vm15 = vcmp.eq.f32.partialorder %v1743_v56, 8.507059e+37  ;;  %v5990_v33 = vmov 0  ;;  %v1208_v5 = vpop.f32.mrf.mxu0 }
 0x1f3   : > { %v5977_v53 = vsel %vm4453_vm10, 4294967295, %v5976_v53  ;;  %vm4487_vm13 = vcmp.eq.f32.partialorder %v5986_v47, 8.507059e+37  ;;  %v5991_v33 = vsel %vm4492_vm15, 4294967295, %v5990_v33  ;;  %v1751_v3 = vsub.f32 1.0, %v1750_v12  ;;  %v6058_v6 = vld [vmem:[#allocation36_spill] sm:$0xff] }
 0x1f4   : > { %v5988_v59 = vsel %vm4487_vm13, 4294967295, %v5987_v59  ;;  %2722 = vrcp.f32 %v4404_v38  ;;  %v5992_v41 = vand.u32 2147483647, %v3989_v51  ;;  %v5993_v47 = vmov 0 }
 0x1f5   : > { %5989 = vst [vmem:[#allocation44_spill] sm:$0xff] %v5988_v59  ;;  %vm5996_vm13 = vweird.f32 %v4131_v13  ;;  %vm5997_vm8 = vweird.f32 %v3991_v58  ;;  %v4515_v35 = vor.u32 1.1754944e-38, %v1760_v55  ;;  %v1765_v12 = vmul.f32 %v4425_v16, %v4276_v23 }
 0x1f6   : > { %vm4503_vm4 = vcmp.eq.f32.partialorder %v5992_v41, 8.507059e+37  ;;  %vm4511_vm15 = vmor %vm5997_vm8, %vm5996_vm13  ;;  %v1189_v24 = vadd.f32 %v1188_v28, %v3879_v26  ;;  %v1209_v51 = vadd.f32 %v1208_v5, %v3879_v26  ;;  %v1228_v41 = vpop.f32.mrf.mxu1  ;;  %vm6001_vm5 = vweird.f32 %v4141_v9 }
 0x1f7   : > { %v5994_v47 = vsel %vm4503_vm4, 4294967295, %v5993_v47  ;;  %6000 = vst [vmem:[#allocation48_spill] sm:$0xff] %v4515_v35  ;;  %vm6002_vm10 = vweird.f32 %v3995_v61  ;;  %v1592_v55 = vsel %vm4467_vm0, %v4119_v29, %v4361_v54  ;;  %2724 = vpow2.f32 %v2551_v4  ;;  %v1248_v54 = vpop.f32.mrf.mxu2 }
 0x1f8   : > { %5995 = vst [vmem:[#allocation46_spill] sm:$0xff] %v5994_v47  ;;  %vm4526_vm8 = vmor %vm6002_vm10, %vm6001_vm5  ;;  %v1229_v28 = vadd.f32 %v1228_v41, %v3879_v26  ;;  %v6005_v5 = vand.u32 2147483647, %v3991_v58  ;;  %v6006_v35 = vmov 0  ;;  %vm6009_vm4 = vweird.f32 %v4157_v14 }
 0x1f9   : > { %vm6010_vm5 = vweird.f32 %v4002_v1  ;;  %v1775_v57 = vand.u32 2147483648, %v4276_v23  ;;  %2726 = vrcp.f32 %v4483_v44  ;;  %v2552_v29 = vmul.f32 -1.442695, %v1189_v24  ;;  %v6041_v44 = vld [vmem:[#allocation27_spill] sm:$0xff] }
 0x1fa   : > { %vm4537_vm13 = vcmp.eq.f32.partialorder %v6005_v5, 8.507059e+37  ;;  %vm4545_vm10 = vmor %vm6010_vm5, %vm6009_vm4  ;;  %v2553_v4 = vmul.f32 -1.442695, %v1209_v51  ;;  %v6013_v58 = vand.u32 2147483647, %v3995_v61  ;;  %v6014_v41 = vmov 0 }
 0x1fb   : > { %v6007_v35 = vsel %vm4537_vm13, 4294967295, %v6006_v35  ;;  %v1738_v5 = vadd.f32 %v4278_v0, %v1737_v25  ;;  %vm6017_vm4 = vweird.f32 %v4185_v48  ;;  %vm6018_vm5 = vweird.f32 %v4014_v32 }
 0x1fc   : > { %6008 = vst [vmem:[#allocation50_spill] sm:$0xff] %v6007_v35  ;;  %vm4553_vm0 = vcmp.eq.f32.partialorder %v6013_v58, 8.507059e+37  ;;  %vm4562_vm13 = vmor %vm6018_vm5, %vm6017_vm4  ;;  %v1752_v24 = vmul.f32 %v4311_v43, %v1751_v3  ;;  %vm4567_vm12 = vcmp.eq.f32.partialorder %v1758_v20, 8.507059e+37  ;;  %v2554_v61 = vmul.f32 -1.442695, %v1229_v28 }
 0x1fd   : > { %v6015_v41 = vsel %vm4553_vm0, 4294967295, %v6014_v41  ;;  %v1249_v58 = vadd.f32 %v1248_v54, %v3879_v26  ;;  %vm6026_vm4 = vweird.f32 %v4278_v0  ;;  %vm6027_vm5 = vweird.f32 %v4207_v40  ;;  %v4595_v54 = vpop.eup %2722 }
 0x1fe   : > { %6016 = vst [vmem:[#allocation19_spill] sm:$0xff] %v6015_v41  ;;  %v6023_v41 = vand.u32 2147483647, %v4002_v1  ;;  %vm4582_vm11 = vmor %vm6027_vm5, %vm6026_vm4  ;;  %v1766_v20 = vsub.f32 1.0, %v1765_v12  ;;  %v1773_v3 = vand.u32 2147483647, %v4276_v23  ;;  %v1607_v1 = vsel %vm4511_vm15, %v4131_v13, %v4364_v34 }
 0x1ff   : > { %v1622_v28 = vsel %vm4526_vm8, %v4141_v9, %v4367_v2  ;;  %vm1755_vm4 = vweird.f32 %v4311_v43  ;;  %vm1769_vm5 = vweird.f32 %v4276_v23  ;;  %v1637_v40 = vsel %vm4545_vm10, %v4157_v14, %v4383_v42  ;;  %v2725_v14 = vpop.eup %2724  ;;  %v6043_v12 = vld [vmem:[#allocation10_spill] sm:$0xff] }
 0x200   : > { %vm4574_vm0 = vcmp.eq.f32.partialorder %v6023_v41, 8.507059e+37  ;;  %2728 = vpow2.f32 %v2552_v29  ;;  %v6030_v56 = vand.u32 2147483647, %v4014_v32  ;;  %v4609_v34 = vor.u32 1.1754944e-38, %v1775_v57  ;;  %v6046_v41 = vld [vmem:[#allocation33_spill] sm:$0xff] }
 0x201   : > { %v1652_v9 = vsel %vm4562_vm13, %v4185_v48, %v4402_v22  ;;  %v6033_v2 = vsel %vm4297_vm2, %v4024_v11, %v4303_v62  ;;  %2730 = vpow2.f32 %v2553_v4  ;;  %v1742_v42 = vsel %vm4582_vm11, %v4278_v0, %v1738_v5  ;;  %v1268_v48 = vpop.f32.mrf.mxu3  ;;  %v4627_v22 = vpop.eup %2726 }
 0x202   : > { %vm4605_vm15 = vcmp.eq.f32.partialorder %v6030_v56, 8.507059e+37  ;;  %v1492_v32 = vsel %vm4387_vm14, %v4129_v63, %v6033_v2  ;;  %v1753_v59 = vadd.f32 %v4311_v43, %v1752_v24  ;;  %2732 = vpow2.f32 %v2554_v61  ;;  %v6048_v61 = vld [vmem:[#allocation35_spill] sm:$0xff] }
 0x203   : > { %v2555_v47 = vmul.f32 -1.442695, %v1249_v58  ;;  %vm6034_vm2 = vweird.f32 %v4235_v27  ;;  %v1767_v63 = vmul.f32 %v4425_v16, %v1766_v20  ;;  %vm4638_vm14 = vcmp.eq.f32.partialorder %v1773_v3, 8.507059e+37  ;;  %v6066_v20 = vld [vmem:[#allocation14_spill] sm:$0xff]  ;;  %v6078_v27 = vld [vmem:[#allocation53_spill] sm:$0xff] }
 0x204   : > { %vm4633_vm8 = vmor %vm6034_vm2, %vm1755_vm4  ;;  %v1780_v0 = vmul.f32 %v4595_v54, %v4404_v38  ;;  %v6042_v35 = vsel %vm4324_vm6, %v6040_v46, %v6041_v44  ;;  %v1269_v29 = vadd.f32 %v1268_v48, %v3879_v26  ;;  %v6045_v4 = vsel %vm4339_vm7, %v4044_v37, %v4309_v8  ;;  %v6052_v37 = vld [vmem:[#allocation38_spill] sm:$0xff]  ;;  %v6056_v8 = vld [vmem:[#allocation41_spill] sm:$0xff] }
 0x205   : > { %v1507_v57 = vsel %vm4429_vm3, %v6043_v12, %v6042_v35  ;;  %v1522_v5 = vsel %vm4441_vm1, %v6046_v41, %v6045_v4  ;;  %v6047_v24 = vsel %vm4356_vm9, %v4053_v36, %v4330_v45  ;;  %vm6049_vm6 = vnez %v5974_v50  ;;  %v6065_v50 = vld [vmem:[#allocation12_spill] sm:$0xff]  ;;  %v6075_v46 = vld [vmem:[#allocation21_spill] sm:$0xff]  ;;  %v6076_v44 = vld [vmem:[#allocation19_spill] sm:$0xff] }
 0x206   : > { %v4669_v58 = vsel %vm6049_vm6, %v6048_v61, %v6047_v24  ;;  %vm6050_vm3 = vnez %v5953_v19  ;;  %vm6053_vm7 = vnez %v5977_v53  ;;  %vm6054_vm1 = vnez %v5959_v21  ;;  %v6063_v21 = vld [vmem:[#allocation44_spill] sm:$0xff] }
 0x207   : > { %v6051_v31 = vsel %vm6050_vm3, %v4059_v15, %v4344_v39  ;;  %v6055_v36 = vsel %vm6054_vm1, %v4101_v18, %v4347_v7  ;;  %vm6057_vm9 = vnez %v5980_v49  ;;  %vm6059_vm11 = vnez %v5991_v33  ;;  %v6062_v15 = vld [vmem:[#allocation13_spill] sm:$0xff]  ;;  %v2729_v7 = vpop.eup %2728 }
 0x208   : > { %v4679_v30 = vsel %vm6053_vm7, %v6052_v37, %v6051_v31  ;;  %v4689_v45 = vsel %vm6057_vm9, %v6056_v8, %v6055_v36  ;;  %v1747_v19 = vsel %vm6059_vm11, %v6058_v6, %v1742_v42  ;;  %vm1770_vm13 = vweird.f32 %v4425_v16  ;;  %v1288_v42 = vpop.f32.mrf.mxu0  ;;  %v6081_v31 = vld [vmem:[#allocation54_spill] sm:$0xff] }
 0x209   : > { %vm6060_vm10 = vnez %v5964_v60  ;;  %vm6064_vm4 = vnez %v6063_v21  ;;  %v4705_v39 = vadd.f32 1.0, %v2725_v14  ;;  %v1757_v33 = vsel %vm4633_vm8, %v4311_v43, %v1753_v59  ;;  %v6067_v60 = vld [vmem:[#allocation46_spill] sm:$0xff]  ;;  %vm4725_vm8 = vmor %vm1769_vm5, %vm1770_vm13 }
 0x20a   : > { %v6061_v53 = vsel %vm6060_vm10, %v4112_v10, %v4350_v52  ;;  %v1795_v49 = vmul.f32 %v4627_v22, %v6065_v50  ;;  %vm6068_vm2 = vnez %v6067_v60  ;;  %2734 = vpow2.f32 %v2555_v47  ;;  %v2731_v10 = vpop.eup %2730  ;;  %v6071_v59 = vld [vmem:[#allocation18_spill] sm:$0xff] }
 0x20b   : > { %v4703_v18 = vsel %vm6064_vm4, %v6062_v15, %v6061_v53  ;;  %v4715_v3 = vsel %vm6068_vm2, %v6066_v20, %v1592_v55  ;;  %v1768_v52 = vadd.f32 %v4425_v16, %v1767_v63  ;;  %v1781_v56 = vsub.f32 1.0, %v1780_v0  ;;  %v2733_v48 = vpop.eup %2732  ;;  %v6072_v47 = vld [vmem:[#allocation50_spill] sm:$0xff]  ;;  %v6074_v0 = vld [vmem:[#allocation48_spill] sm:$0xff] }
 0x20c   : > { %v1788_v2 = vand.u32 2147483647, %v4404_v38  ;;  %v2556_v14 = vmul.f32 -1.442695, %v1269_v29  ;;  %v4719_v11 = vperm.slane %v1747_v19, 0  ;;  %vm1784_vm6 = vweird.f32 %v4404_v38 }
 0x20d   : > { %v1790_v55 = vand.u32 2147483648, %v4404_v38  ;;  %vm6073_vm3 = vnez %v6072_v47  ;;  %v1762_v62 = vsel %vm4567_vm12, %v6074_v0, %v1757_v33  ;;  %vm6077_vm7 = vnez %v6076_v44 }
 0x20e   : > { %v1612_v63 = vsel %vm6073_vm3, %v6071_v59, %v1607_v1  ;;  %v1627_v23 = vsel %vm6077_vm7, %v6075_v46, %v1622_v28  ;;  %2736 = vrcp.f32 %v4705_v39  ;;  %v4741_v35 = vadd.f32 1.0, %v2729_v7  ;;  %v1348_v7 = vpop.f32.mrf.mxu3 }
 0x20f   : > { %v1796_v12 = vsub.f32 1.0, %v1795_v49  ;;  %v4746_v29 = vsel %vm4574_vm0, %v6078_v27, %v1637_v40  ;;  %v4748_v4 = vadd.f32 1.0, %v2731_v10  ;;  %v1289_v1 = vadd.f32 %v1288_v42, %v3879_v26 }
 0x210   : > { %v1772_v51 = vsel %vm4725_vm8, %v4425_v16, %v1768_v52  ;;  %v1782_v28 = vmul.f32 %v4595_v54, %v1781_v56  ;;  %vm4755_vm12 = vcmp.eq.f32.partialorder %v1788_v2, 8.507059e+37  ;;  %v4759_v24 = vadd.f32 1.0, %v2733_v48  ;;  %v2735_v25 = vpop.eup %2734  ;;  %v1308_v16 = vpop.f32.mrf.mxu1 }
 0x211   : > { %2738 = vpow2.f32 %v2556_v14  ;;  %v4761_v40 = vperm.slane %v1762_v62, 0  ;;  %v1791_v61 = vor.u32 1.1754944e-38, %v1790_v55  ;;  %v1657_v37 = vsel %vm4605_vm15, %v6081_v31, %v1652_v9  ;;  %v1328_v9 = vpop.f32.mrf.mxu2 }
 0x212   : > { %v4766_v36 = vperm.slane %v1492_v32, 0  ;;  %vm1785_vm0 = vweird.f32 %v4595_v54  ;;  %v4769_v8 = vperm.slane %v1507_v57, 0  ;;  %v4771_v6 = vperm.slane %v1522_v5, 0 }
 0x213   : > { %2740 = vrcp.f32 %v4741_v35  ;;  %v1777_v19 = vsel %vm4638_vm14, %v4609_v34, %v1772_v51  ;;  %v1797_v53 = vmul.f32 %v4627_v22, %v1796_v12  ;;  %v2557_v13 = vmul.f32 -1.442695, %v1289_v1  ;;  %vm4788_vm5 = vmor %vm1784_vm6, %vm1785_vm0 }
 0x214   : > { %2742 = vrcp.f32 %v4748_v4  ;;  %v4779_v32 = vpop.eup %2736  ;;  %v1783_v15 = vadd.f32 %v4595_v54, %v1782_v28  ;;  %v4783_v57 = vadd.f32 1.0, %v2735_v25  ;;  %v1309_v5 = vadd.f32 %v1308_v16, %v3879_v26 }
 0x215   : > { %2744 = vrcp.f32 %v4759_v24  ;;  %vm1799_vm15 = vweird.f32 %v6065_v50  ;;  %vm1800_vm14 = vweird.f32 %v4627_v22  ;;  %v1803_v17 = vand.u32 2147483647, %v6065_v50 }
 0x216   : > { %v1805_v21 = vand.u32 2147483648, %v6065_v50  ;;  %v4797_v49 = vperm.slane %v4669_v58, 0  ;;  %v4800_v20 = vperm.slane %v4679_v30, 0  ;;  %v4803_v38 = vperm.slane %v4689_v45, 0  ;;  %vm4820_vm1 = vmor %vm1799_vm15, %vm1800_vm14 }
 0x217   : > { %v2739_v33 = vpop.eup %2738  ;;  %v1329_v60 = vadd.f32 %v1328_v9, %v3879_v26  ;;  %v4806_v10 = vperm.slane %v1777_v19, 0  ;;  %v1798_v52 = vadd.f32 %v4627_v22, %v1797_v53  ;;  %v1810_v56 = vmul.f32 %v4779_v32, %v4705_v39 }
 0x218   : > { %2746 = vpow2.f32 %v2557_v13  ;;  %v1787_v58 = vsel %vm4788_vm5, %v4595_v54, %v1783_v15  ;;  %v2558_v45 = vmul.f32 -1.442695, %v1309_v5  ;;  %v1349_v14 = vadd.f32 %v1348_v7, %v3879_v26 }
 0x219   : > { %v4811_v2 = vpop.eup %2740  ;;  %2748 = vrcp.f32 %v4783_v57  ;;  %vm4828_vm9 = vcmp.eq.f32.partialorder %v1803_v17, 8.507059e+37  ;;  %v1806_v54 = vor.u32 1.1754944e-38, %v1805_v21  ;;  %v4833_v43 = vperm.slane %v4703_v18, 0 }
 0x21a   : > { %v4826_v42 = vpop.eup %2742  ;;  %v4835_v50 = vadd.f32 1.0, %v2739_v33  ;;  %v4840_v59 = vperm.slane %v4715_v3, 0  ;;  %v4842_v47 = vperm.slane %v1612_v63, 0  ;;  %v4844_v26 = vperm.slane %v1627_v23, 0 }
 0x21b   : > { %v4837_v55 = vpop.eup %2744  ;;  %v2559_v0 = vmul.f32 -1.442695, %v1329_v60  ;;  %v1792_v62 = vsel %vm4755_vm12, %v1791_v61, %v1787_v58  ;;  %v1802_v18 = vsel %vm4820_vm1, %v4627_v22, %v1798_v52  ;;  %v1811_v46 = vsub.f32 1.0, %v1810_v56 }
 0x21c   : > { %v1825_v44 = vmul.f32 %v4811_v2, %v4741_v35  ;;  %v1818_v12 = vand.u32 2147483647, %v4705_v39  ;;  %v1840_v3 = vmul.f32 %v4826_v42, %v4748_v4  ;;  %2750 = vpow2.f32 %v2558_v45 }
 0x21d   : > { %v2560_v63 = vmul.f32 -1.442695, %v1349_v14  ;;  %v4857_v27 = vperm.slane %v4746_v29, 0  ;;  %v4859_v1 = vperm.slane %v1657_v37, 0  ;;  %v1855_v22 = vmul.f32 %v4837_v55, %v4759_v24 }
 0x21e   : > { %v2747_v23 = vpop.eup %2746  ;;  %2752 = vrcp.f32 %v4835_v50  ;;  %v4866_v28 = vperm.slane %v1792_v62, 0  ;;  %v1807_v41 = vsel %vm4828_vm9, %v1806_v54, %v1802_v18  ;;  %v1820_v25 = vand.u32 2147483648, %v4705_v39 }
 0x21f   : > { %v4864_v51 = vpop.eup %2748  ;;  %2754 = vpow2.f32 %v2559_v0  ;;  %v1812_v29 = vmul.f32 %v4779_v32, %v1811_v46  ;;  %v1826_v61 = vsub.f32 1.0, %v1825_v44  ;;  %v1833_v31 = vand.u32 2147483647, %v4741_v35 }
 0x220   : > { %v1835_v37 = vand.u32 2147483648, %v4741_v35  ;;  %vm1814_vm11 = vweird.f32 %v4705_v39  ;;  %vm4875_vm13 = vcmp.eq.f32.partialorder %v1818_v12, 8.507059e+37  ;;  %v1841_v19 = vsub.f32 1.0, %v1840_v3 }
 0x221   : > { %2756 = vpow2.f32 %v2560_v63  ;;  %vm1815_vm10 = vweird.f32 %v4779_v32  ;;  %v1856_v53 = vsub.f32 1.0, %v1855_v22  ;;  %v1870_v13 = vmul.f32 %v4864_v51, %v4783_v57 }
 0x222   : > { %v4882_v9 = vadd.f32 1.0, %v2747_v23  ;;  %v2751_v15 = vpop.eup %2750  ;;  %v4884_v5 = vperm.slane %v1807_v41, 0  ;;  %v1821_v34 = vor.u32 1.1754944e-38, %v1820_v25  ;;  %vm1829_vm4 = vweird.f32 %v4741_v35  ;;  %vm4901_vm6 = vmor %vm1814_vm11, %vm1815_vm10 }
 0x223   : > { %v1848_v17 = vand.u32 2147483647, %v4748_v4  ;;  %v1813_v7 = vadd.f32 %v4779_v32, %v1812_v29  ;;  %v1827_v33 = vmul.f32 %v4811_v2, %v1826_v61  ;;  %vm4892_vm2 = vcmp.eq.f32.partialorder %v1833_v31, 8.507059e+37 }
 0x224   : > { %v4888_v21 = vpop.eup %2752  ;;  %v1836_v52 = vor.u32 1.1754944e-38, %v1835_v37  ;;  %vm1844_vm8 = vweird.f32 %v4748_v4  ;;  %v1842_v30 = vmul.f32 %v4826_v42, %v1841_v19  ;;  %v1850_v45 = vand.u32 2147483648, %v4748_v4 }
 0x225   : > { %v2755_v56 = vpop.eup %2754  ;;  %vm1859_vm3 = vweird.f32 %v4759_v24  ;;  %v1863_v14 = vand.u32 2147483647, %v4759_v24  ;;  %vm1830_vm7 = vweird.f32 %v4811_v2  ;;  %v1857_v48 = vmul.f32 %v4837_v55, %v1856_v53 }
 0x226   : > { %v1871_v54 = vsub.f32 1.0, %v1870_v13  ;;  %2758 = vrcp.f32 %v4882_v9  ;;  %vm1845_vm12 = vweird.f32 %v4826_v42  ;;  %vm4913_vm0 = vcmp.eq.f32.partialorder %v1848_v17, 8.507059e+37  ;;  %vm4929_vm15 = vmor %vm1829_vm4, %vm1830_vm7 }
 0x227   : > { %v2757_v39 = vpop.eup %2756  ;;  %v1865_v62 = vand.u32 2147483648, %v4759_v24  ;;  %v1885_v18 = vmul.f32 %v4888_v21, %v4835_v50  ;;  %v1817_v46 = vsel %vm4901_vm6, %v4779_v32, %v1813_v7  ;;  %v1828_v44 = vadd.f32 %v4811_v2, %v1827_v33  ;;  %vm4939_vm14 = vmor %vm1844_vm8, %vm1845_vm12 }
 0x228   : > { %vm1860_vm5 = vweird.f32 %v4837_v55  ;;  %v4925_v12 = vadd.f32 1.0, %v2751_v15  ;;  %v1843_v63 = vadd.f32 %v4826_v42, %v1842_v30  ;;  %v1851_v23 = vor.u32 1.1754944e-38, %v1850_v45 }
 0x229   : > { %v1878_v22 = vand.u32 2147483647, %v4783_v57  ;;  %v4935_v41 = vadd.f32 1.0, %v2755_v56  ;;  %v1858_v25 = vadd.f32 %v4837_v55, %v1857_v48  ;;  %vm4944_vm1 = vcmp.eq.f32.partialorder %v1863_v14, 8.507059e+37  ;;  %vm4955_vm9 = vmor %vm1859_vm3, %vm1860_vm5  ;;  %v5008_v14 = vpop.permute.xlu2 %1971 }
 0x22a   : > { %v1872_v29 = vmul.f32 %v4864_v51, %v1871_v54  ;;  %v4949_v61 = vadd.f32 1.0, %v2757_v39  ;;  %v1822_v31 = vsel %vm4875_vm13, %v1821_v34, %v1817_v46  ;;  %v1866_v37 = vor.u32 1.1754944e-38, %v1865_v62 }
 0x22b   : > { %vm1874_vm11 = vweird.f32 %v4783_v57  ;;  %v1886_v19 = vsub.f32 1.0, %v1885_v18  ;;  %v1832_v13 = vsel %vm4929_vm15, %v4811_v2, %v1828_v44  ;;  %vm1875_vm10 = vweird.f32 %v4864_v51 }
 0x22c   : > { %v4960_v53 = vpop.eup %2758  ;;  %v1880_v16 = vand.u32 2147483648, %v4783_v57  ;;  %2760 = vrcp.f32 %v4925_v12  ;;  %v1847_v24 = vsel %vm4939_vm14, %v4826_v42, %v1843_v63  ;;  %vm4971_vm13 = vcmp.eq.f32.partialorder %v1878_v22, 8.507059e+37  ;;  %vm4987_vm4 = vmor %vm1874_vm11, %vm1875_vm10 }
 0x22d   : > { %v1893_v34 = vand.u32 2147483647, %v4835_v50  ;;  %2762 = vrcp.f32 %v4935_v41  ;;  %v1862_v2 = vsel %vm4955_vm9, %v4837_v55, %v1858_v25  ;;  %v1873_v17 = vadd.f32 %v4864_v51, %v1872_v29 }
 0x22e   : > { %v1895_v7 = vand.u32 2147483648, %v4835_v50  ;;  %2764 = vrcp.f32 %v4949_v61  ;;  %v1837_v42 = vsel %vm4892_vm2, %v1836_v52, %v1832_v13  ;;  %v1887_v56 = vmul.f32 %v4888_v21, %v1886_v19 }
 0x22f   : > { %v1900_v55 = vmul.f32 %v4960_v53, %v4882_v9  ;;  %v1910_v58 = vand.u32 2147483648, %v4882_v9  ;;  %v4995_v30 = vperm.slane %v1822_v31, 0  ;;  %v1852_v45 = vsel %vm4913_vm0, %v1851_v23, %v1847_v24 }
 0x230   : > { %v1881_v60 = vor.u32 1.1754944e-38, %v1880_v16  ;;  %vm1889_vm2 = vweird.f32 %v4835_v50  ;;  %v1867_v57 = vsel %vm4944_vm1, %v1866_v37, %v1862_v2  ;;  %vm1890_vm8 = vweird.f32 %v4888_v21 }
 0x231   : > { %vm5003_vm6 = vcmp.eq.f32.partialorder %v1893_v34, 8.507059e+37  ;;  %vm1904_vm3 = vweird.f32 %v4882_v9  ;;  %v5012_v54 = vperm.slane %v1837_v42, 0  ;;  %v1877_v39 = vsel %vm4987_vm4, %v4864_v51, %v1873_v17  ;;  %vm5033_vm7 = vmor %vm1889_vm2, %vm1890_vm8  ;;  %v2767_v42 = vld [vmem:[%s3132_s17 + $0x208] sm:$0xff] }
 0x232   : > { %v5010_v48 = vpop.eup %2760  ;;  %v1896_v0 = vor.u32 1.1754944e-38, %v1895_v7  ;;  %v1908_v62 = vand.u32 2147483647, %v4882_v9  ;;  %v5020_v46 = vperm.slane %v1852_v45, 0  ;;  %v1888_v44 = vadd.f32 %v4888_v21, %v1887_v56  ;;  %v2766_v7 = vld [vmem:[%s3132_s17 + $0x200] sm:$0xff]  ;;  %v2768_v45 = vld [vmem:[%s3132_s17 + $0x210] sm:$0xff] }
 0x233   : > { %v5018_v18 = vpop.eup %2762  ;;  %v1901_v3 = vsub.f32 1.0, %v1900_v55  ;;  %v5023_v63 = vor.u32 1.1754944e-38, %v1910_v58  ;;  %v5027_v22 = vperm.slane %v1867_v57, 0  ;;  %v1925_v32 = vand.u32 2147483648, %v4925_v12  ;;  %v2769_v57 = vld [vmem:[%s3132_s17 + $0x218] sm:$0xff] }
 0x234   : > { %v5025_v23 = vpop.eup %2764  ;;  %v2075_v25 = vadd.f32 %v4766_v36, %v5008_v14  ;;  %v2076_v35 = vadd.f32 %v4769_v8, %v5008_v14  ;;  %v5044_v29 = vsel %vm4971_vm13, %v1881_v60, %v1877_v39  ;;  %v1915_v50 = vmul.f32 %v5010_v48, %v4925_v12 }
 0x235   : > { %v2077_v31 = vadd.f32 %v4771_v6, %v5008_v14  ;;  %v2078_v4 = vadd.f32 %v4797_v49, %v5008_v14  ;;  %vm1905_vm12 = vweird.f32 %v4960_v53  ;;  %v1923_v37 = vand.u32 2147483647, %v4925_v12 }
 0x236   : > { %v1930_v19 = vmul.f32 %v5018_v18, %v4935_v41  ;;  %v2079_v13 = vadd.f32 %v4800_v20, %v5008_v14  ;;  %v1892_v16 = vsel %vm5033_vm7, %v4888_v21, %v1888_v44  ;;  %v1902_v24 = vmul.f32 %v4960_v53, %v1901_v3  ;;  %vm5103_vm14 = vmor %vm1904_vm3, %vm1905_vm12 }
 0x237   : > { %vm1919_vm0 = vweird.f32 %v4925_v12  ;;  %v1945_v15 = vmul.f32 %v5025_v23, %v4949_v61  ;;  %v2080_v34 = vadd.f32 %v4803_v38, %v5008_v14  ;;  %v5067_v2 = vor.u32 1.1754944e-38, %v1925_v32 }
 0x238   : > { %v2081_v17 = vadd.f32 %v4833_v43, %v5008_v14  ;;  %v2203_v21 = vmul.f32 %v2766_v7, %v2075_v25  ;;  %v2204_v33 = vmul.f32 %v2767_v42, %v2076_v35  ;;  %vm5073_vm5 = vcmp.eq.f32.partialorder %v1908_v62, 8.507059e+37  ;;  %v2770_v62 = vld [vmem:[%s3132_s17 + $0x220] sm:$0xff]  ;;  %v6118_v42 = vld [vmem:[#allocation20_spill] sm:$0xff] }
 0x239   : > { %v1916_v55 = vsub.f32 1.0, %v1915_v50  ;;  %v2082_v58 = vadd.f32 %v4840_v59, %v5008_v14  ;;  %v2205_v60 = vmul.f32 %v2768_v45, %v2077_v31  ;;  %v2206_v39 = vmul.f32 %v2769_v57, %v2078_v4  ;;  %v2771_v50 = vld [vmem:[%s3132_s17 + $0x228] sm:$0xff] }
 0x23a   : > { %v1931_v44 = vsub.f32 1.0, %v1930_v19  ;;  %vm1934_vm15 = vweird.f32 %v4935_v41  ;;  %v2083_v3 = vadd.f32 %v4842_v47, %v5008_v14  ;;  %v2207_v51 = vmul.f32 %v2770_v62, %v2079_v13  ;;  %2331 = vst [vmem:[%s5087_s30 + $0x200] sm:$0xff] %v2203_v21  ;;  %v2782_v19 = vld [vmem:[%s3132_s17 + $0x280] sm:$0xff] }
 0x23b   : > { %v1903_v32 = vadd.f32 %v4960_v53, %v1902_v24  ;;  %v1946_v25 = vsub.f32 1.0, %v1945_v15  ;;  %v2084_v35 = vadd.f32 %v4844_v26, %v5008_v14  ;;  %v2208_v31 = vmul.f32 %v2771_v50, %v2080_v34  ;;  %2332 = vst [vmem:[%s5087_s30 + $0x208] sm:$0xff] %v2204_v33  ;;  %v2772_v24 = vld [vmem:[%s3132_s17 + $0x230] sm:$0xff]  ;;  %v2773_v34 = vld [vmem:[%s3132_s17 + $0x238] sm:$0xff]  ;;  %v2774_v33 = vld [vmem:[%s3132_s17 + $0x240] sm:$0xff] }
 0x23c   : > { %v5097_v4 = vsel %vm5003_vm6, %v1896_v0, %v1892_v16  ;;  %vm1920_vm1 = vweird.f32 %v5010_v48  ;;  %v2085_v13 = vadd.f32 %v4857_v27, %v5008_v14  ;;  %v2209_v15 = vmul.f32 %v2772_v24, %v2081_v17  ;;  %2333 = vst [vmem:[%s5087_s30 + $0x210] sm:$0xff] %v2205_v60  ;;  %v6119_v60 = vld [vmem:[#allocation23_spill] sm:$0xff]  ;;  %v2777_v50 = vld [vmem:[%s3132_s17 + $0x258] sm:$0xff] }
 0x23d   : > { %v1917_v52 = vmul.f32 %v5010_v48, %v1916_v55  ;;  %vm5113_vm9 = vcmp.eq.f32.partialorder %v1923_v37, 8.507059e+37  ;;  %v1938_v9 = vand.u32 2147483647, %v4935_v41  ;;  %v2086_v16 = vadd.f32 %v4859_v1, %v5008_v14  ;;  %2334 = vst [vmem:[%s5087_s30 + $0x218] sm:$0xff] %v2206_v39  ;;  %v2775_v39 = vld [vmem:[%s3132_s17 + $0x248] sm:$0xff]  ;;  %vm5152_vm4 = vmor %vm1919_vm0, %vm1920_vm1  ;;  %v2785_v0 = vld [vmem:[%s3132_s17 + $0x298] sm:$0xff] }
 0x23e   : > { %v2210_v7 = vmul.f32 %v2773_v34, %v2082_v58  ;;  %v1932_v17 = vmul.f32 %v5018_v18, %v1931_v44  ;;  %v1940_v21 = vand.u32 2147483648, %v4935_v41  ;;  %v2087_v37 = vadd.f32 %v6118_v42, %v5008_v14  ;;  %2335 = vst [vmem:[%s5087_s30 + $0x220] sm:$0xff] %v2207_v51  ;;  %v2776_v51 = vld [vmem:[%s3132_s17 + $0x250] sm:$0xff]  ;;  %v2778_v34 = vld [vmem:[%s3132_s17 + $0x260] sm:$0xff] }
 0x23f   : > { %v2211_v55 = vmul.f32 %v2774_v33, %v2083_v3  ;;  %v1907_v45 = vsel %vm5103_vm14, %v4960_v53, %v1903_v32  ;;  %v1947_v58 = vmul.f32 %v5025_v23, %v1946_v25  ;;  %v2088_v57 = vadd.f32 %v6119_v60, %v5008_v14  ;;  %2336 = vst [vmem:[%s5087_s30 + $0x228] sm:$0xff] %v2208_v31  ;;  %v6120_v3 = vld [vmem:[#allocation25_spill] sm:$0xff] }
 0x240   : > { %v2212_v44 = vmul.f32 %v2775_v39, %v2084_v35  ;;  %vm1935_vm11 = vweird.f32 %v5018_v18  ;;  %vm1949_vm10 = vweird.f32 %v4949_v61  ;;  %v2089_v62 = vadd.f32 %v6120_v3, %v5008_v14  ;;  %2337 = vst [vmem:[%s5087_s30 + $0x230] sm:$0xff] %v2209_v15  ;;  %v6121_v25 = vld [vmem:[#allocation9_spill] sm:$0xff]  ;;  %v6124_v15 = vld [vmem:[#allocation34_spill] sm:$0xff] }
 0x241   : > { %v2213_v53 = vmul.f32 %v2776_v51, %v2085_v13  ;;  %v1918_v32 = vadd.f32 %v5010_v48, %v1917_v52  ;;  %vm1950_vm13 = vweird.f32 %v5025_v23  ;;  %v2090_v35 = vadd.f32 %v6121_v25, %v5008_v14  ;;  %2338 = vst [vmem:[%s5087_s30 + $0x238] sm:$0xff] %v2210_v7  ;;  %vm5166_vm2 = vmor %vm1934_vm15, %vm1935_vm11  ;;  %v2779_v39 = vld [vmem:[%s3132_s17 + $0x268] sm:$0xff] }
 0x242   : > { %v2214_v31 = vmul.f32 %v2777_v50, %v2086_v16  ;;  %v1933_v13 = vadd.f32 %v5018_v18, %v1932_v17  ;;  %v1955_v24 = vand.u32 2147483648, %v4949_v61  ;;  %v2091_v52 = vadd.f32 %v6124_v15, %v5008_v14  ;;  %2339 = vst [vmem:[%s5087_s30 + $0x240] sm:$0xff] %v2211_v55  ;;  %vm5187_vm6 = vmor %vm1949_vm10, %vm1950_vm13 }
 0x243   : > { %v2215_v16 = vmul.f32 %v2778_v34, %v2087_v37  ;;  %v1948_v7 = vadd.f32 %v5025_v23, %v1947_v58  ;;  %v1953_v17 = vand.u32 2147483647, %v4949_v61  ;;  %v2092_v33 = vadd.f32 %v4719_v11, %v5008_v14  ;;  %2340 = vst [vmem:[%s5087_s30 + $0x248] sm:$0xff] %v2212_v44  ;;  %v2780_v44 = vld [vmem:[%s3132_s17 + $0x270] sm:$0xff]  ;;  %v2787_v58 = vld [vmem:[%s3132_s17 + $0x2a8] sm:$0xff] }
 0x244   : > { %v2216_v37 = vmul.f32 %v2779_v39, %v2088_v57  ;;  %v1912_v41 = vsel %vm5073_vm5, %v5023_v63, %v1907_v45  ;;  %vm5179_vm8 = vcmp.eq.f32.partialorder %v1938_v9, 8.507059e+37  ;;  %v2093_v57 = vadd.f32 %v4761_v40, %v5008_v14  ;;  %2341 = vst [vmem:[%s5087_s30 + $0x250] sm:$0xff] %v2213_v53  ;;  %v2781_v45 = vld [vmem:[%s3132_s17 + $0x278] sm:$0xff] }
 0x245   : > { %v2217_v56 = vmul.f32 %v2780_v44, %v2089_v62  ;;  %v1922_v63 = vsel %vm5152_vm4, %v5010_v48, %v1918_v32  ;;  %v1941_v9 = vor.u32 1.1754944e-38, %v1940_v21  ;;  %v2094_v61 = vadd.f32 %v4806_v10, %v5008_v14  ;;  %2342 = vst [vmem:[%s5087_s30 + $0x258] sm:$0xff] %v2214_v31  ;;  %v5273_v32 = vpop.permute.xlu2 %1976 }
 0x246   : > { %v2218_v51 = vmul.f32 %v2781_v45, %v2090_v35  ;;  %v1937_v50 = vsel %vm5166_vm2, %v5018_v18, %v1933_v13  ;;  %v1956_v62 = vor.u32 1.1754944e-38, %v1955_v24  ;;  %v2095_v53 = vadd.f32 %v4866_v28, %v5008_v14  ;;  %2343 = vst [vmem:[%s5087_s30 + $0x260] sm:$0xff] %v2215_v16  ;;  %v2783_v35 = vld [vmem:[%s3132_s17 + $0x288] sm:$0xff]  ;;  %v2789_v45 = vld [vmem:[%s3132_s17 + $0x2b8] sm:$0xff] }
 0x247   : > { %v2219_v48 = vmul.f32 %v2782_v19, %v2091_v52  ;;  %v1952_v21 = vsel %vm5187_vm6, %v5025_v23, %v1948_v7  ;;  %vm5212_vm3 = vcmp.eq.f32.partialorder %v1953_v17, 8.507059e+37  ;;  %v2096_v18 = vadd.f32 %v4884_v5, %v5008_v14  ;;  %2344 = vst [vmem:[%s5087_s30 + $0x268] sm:$0xff] %v2216_v37  ;;  %v2784_v52 = vld [vmem:[%s3132_s17 + $0x290] sm:$0xff] }
 0x248   : > { %v2220_v31 = vmul.f32 %v2783_v35, %v2092_v33  ;;  %v5221_v13 = vperm.slane %v5044_v29, 0  ;;  %v1927_v24 = vsel %vm5113_vm9, %v5067_v2, %v1922_v63  ;;  %v2097_v23 = vadd.f32 %v4995_v30, %v5008_v14  ;;  %2345 = vst [vmem:[%s5087_s30 + $0x270] sm:$0xff] %v2217_v56  ;;  %v2786_v33 = vld [vmem:[%s3132_s17 + $0x2a0] sm:$0xff]  ;;  %v2788_v56 = vld [vmem:[%s3132_s17 + $0x2b0] sm:$0xff] }
 0x249   : > { %v2221_v34 = vmul.f32 %v2784_v52, %v2093_v57  ;;  %v5231_v16 = vperm.slane %v5097_v4, 0  ;;  %v1942_v29 = vsel %vm5179_vm8, %v1941_v9, %v1937_v50  ;;  %v2098_v12 = vadd.f32 %v5012_v54, %v5008_v14  ;;  %2346 = vst [vmem:[%s5087_s30 + $0x278] sm:$0xff] %v2218_v51  ;;  %v2792_v35 = vld [vmem:[%s3132_s17 + $0x2d0] sm:$0xff] }
 0x24a   : > { %v2222_v2 = vmul.f32 %v2785_v0, %v2094_v61  ;;  %v5239_v7 = vperm.slane %v1912_v41, 0  ;;  %v1957_v17 = vsel %vm5212_vm3, %v1956_v62, %v1952_v21  ;;  %v2099_v4 = vadd.f32 %v5020_v46, %v5008_v14  ;;  %2347 = vst [vmem:[%s5087_s30 + $0x280] sm:$0xff] %v2219_v48  ;;  %v2790_v62 = vld [vmem:[%s3132_s17 + $0x2c0] sm:$0xff]  ;;  %v2791_v48 = vld [vmem:[%s3132_s17 + $0x2c8] sm:$0xff] }
 0x24b   : > { %v2223_v39 = vmul.f32 %v2786_v33, %v2095_v53  ;;  %v5247_v37 = vperm.slane %v1927_v24, 0  ;;  %v2100_v55 = vadd.f32 %v5027_v22, %v5008_v14  ;;  %v2224_v41 = vmul.f32 %v2787_v58, %v2096_v18  ;;  %2348 = vst [vmem:[%s5087_s30 + $0x288] sm:$0xff] %v2220_v31  ;;  %v2795_v0 = vld [vmem:[%s3132_s17 + $0x2e8] sm:$0xff] }
 0x24c   : > { %v5253_v57 = vperm.slane %v1942_v29, 0  ;;  %v2101_v44 = vadd.f32 %v5221_v13, %v5008_v14  ;;  %v2225_v63 = vmul.f32 %v2788_v56, %v2097_v23  ;;  %2349 = vst [vmem:[%s5087_s30 + $0x290] sm:$0xff] %v2221_v34  ;;  %v5259_v9 = vperm.slane %v1957_v17, 0  ;;  %v2793_v23 = vld [vmem:[%s3132_s17 + $0x2d8] sm:$0xff]  ;;  %v2794_v34 = vld [vmem:[%s3132_s17 + $0x2e0] sm:$0xff]  ;;  %v2796_v17 = vld [vmem:[%s3132_s17 + $0x2f0] sm:$0xff] }
 0x24d   : > { %v2102_v61 = vadd.f32 %v5231_v16, %v5008_v14  ;;  %v2226_v51 = vmul.f32 %v2789_v45, %v2098_v12  ;;  %2350 = vst [vmem:[%s5087_s30 + $0x298] sm:$0xff] %v2222_v2  ;;  %v2103_v50 = vadd.f32 %v5239_v7, %v5008_v14  ;;  %v2227_v53 = vmul.f32 %v2790_v62, %v2099_v4 }
 0x24e   : > { %2351 = vst [vmem:[%s5087_s30 + $0x2a0] sm:$0xff] %v2223_v39  ;;  %v2104_v19 = vadd.f32 %v5247_v37, %v5008_v14  ;;  %v2228_v21 = vmul.f32 %v2791_v48, %v2100_v55  ;;  %v2105_v18 = vadd.f32 %v5253_v57, %v5008_v14  ;;  %v2229_v31 = vmul.f32 %v2792_v35, %v2101_v44  ;;  %v2797_v39 = vld [vmem:[%s3132_s17 + $0x2f8] sm:$0xff]  ;;  %v2798_v44 = vld [vmem:[%s3132_s17 + $0x300] sm:$0xff] }
 0x24f   : > { %2352 = vst [vmem:[%s5087_s30 + $0x2a8] sm:$0xff] %v2224_v41  ;;  %v2106_v24 = vadd.f32 %v5259_v9, %v5008_v14  ;;  %v2230_v52 = vmul.f32 %v2793_v23, %v2102_v61  ;;  %v2231_v29 = vmul.f32 %v2794_v34, %v2103_v50  ;;  %v2107_v12 = vadd.f32 %v4766_v36, %v5273_v32  ;;  %v2799_v61 = vld [vmem:[%s3132_s17 + $0x308] sm:$0xff]  ;;  %v2800_v50 = vld [vmem:[%s3132_s17 + $0x310] sm:$0xff] }
 0x250   : > { %2353 = vst [vmem:[%s5087_s30 + $0x2b0] sm:$0xff] %v2225_v63  ;;  %v2232_v2 = vmul.f32 %v2795_v0, %v2104_v19  ;;  %v2108_v14 = vadd.f32 %v4769_v8, %v5273_v32  ;;  %v2233_v4 = vmul.f32 %v2796_v17, %v2105_v18  ;;  %v2109_v33 = vadd.f32 %v4771_v6, %v5273_v32  ;;  %v2801_v19 = vld [vmem:[%s3132_s17 + $0x318] sm:$0xff]  ;;  %v2802_v18 = vld [vmem:[%s3132_s17 + $0x320] sm:$0xff]  ;;  %v2804_v34 = vld [vmem:[%s3132_s17 + $0x330] sm:$0xff] }
 0x251   : > { %2354 = vst [vmem:[%s5087_s30 + $0x2b8] sm:$0xff] %v2226_v51  ;;  %v2234_v55 = vmul.f32 %v2797_v39, %v2106_v24  ;;  %v2110_v58 = vadd.f32 %v4797_v49, %v5273_v32  ;;  %v2111_v41 = vadd.f32 %v4800_v20, %v5273_v32  ;;  %v2235_v56 = vmul.f32 %v2798_v44, %v2107_v12  ;;  %v2803_v24 = vld [vmem:[%s3132_s17 + $0x328] sm:$0xff]  ;;  %v2805_v0 = vld [vmem:[%s3132_s17 + $0x338] sm:$0xff]  ;;  %v2806_v17 = vld [vmem:[%s3132_s17 + $0x340] sm:$0xff] }
 0x252   : > { %2355 = vst [vmem:[%s5087_s30 + $0x2c0] sm:$0xff] %v2227_v53  ;;  %v2112_v63 = vadd.f32 %v4803_v38, %v5273_v32  ;;  %v2236_v45 = vmul.f32 %v2799_v61, %v2108_v14  ;;  %v2113_v51 = vadd.f32 %v4833_v43, %v5273_v32  ;;  %v2237_v62 = vmul.f32 %v2800_v50, %v2109_v33  ;;  %v2807_v39 = vld [vmem:[%s3132_s17 + $0x348] sm:$0xff] }
 0x253   : > { %2356 = vst [vmem:[%s5087_s30 + $0x2c8] sm:$0xff] %v2228_v21  ;;  %vm6133_vm7 = vcmask 261120   ;;  %v2114_v53 = vadd.f32 %v4840_v59, %v5273_v32  ;;  %v2238_v48 = vmul.f32 %v2801_v19, %v2110_v58  ;;  %v2115_v21 = vadd.f32 %v4842_v47, %v5273_v32 }
 0x254   : > { %2357 = vst [vmem:[%s5087_s30 + $0x2d0] sm:$0xff] %v2229_v31  ;;  %v2239_v35 = vmul.f32 %v2802_v18, %v2111_v41  ;;  %v2116_v31 = vadd.f32 %v4844_v26, %v5273_v32  ;;  %v2240_v23 = vmul.f32 %v2803_v24, %v2112_v63  ;;  %v2118_v12 = vadd.f32 %v4859_v1, %v5273_v32  ;;  %v2808_v41 = vld [vmem:[%s3132_s17 + $0x350] sm:$0xff]  ;;  %v2809_v63 = vld [vmem:[%s3132_s17 + $0x358] sm:$0xff]  ;;  %vm6134_vm12 = vmmov %vm6133_vm7 }
 0x255   : > { %2358 = vst [vmem:[%s5087_s30 + $0x2d8] sm:$0xff] %v2230_v52  ;;  %v2117_v52 = vadd.f32 %v4857_v27, %v5273_v32  ;;  %v2119_v14 = vadd.f32 %v6118_v42, %v5273_v32  ;;  %v2120_v33 = vadd.f32 %v6119_v60, %v5273_v32  ;;  %v2121_v58 = vadd.f32 %v6120_v3, %v5273_v32  ;;  %vm6135_vm0 = vmmov %vm6133_vm7 }
 0x256   : > { %2359 = vst [vmem:[%s5087_s30 + $0x2e0] sm:$0xff] %v2231_v29  ;;  %v2241_v29 = vmul.f32 %v2804_v34, %v2113_v51  ;;  %v2246_v61 = vmul.f32 %v2809_v63, %v2118_v12  ;;  %v2810_v51 = vld [vmem:[%s3132_s17 + $0x360] sm:$0xff]  ;;  %v2815_v12 = vld [vmem:[%s3132_s17 + $0x388] sm:$0xff]  ;;  %vm6136_vm5 = vmmov %vm6135_vm0 }
 0x257   : > { %2360 = vst [vmem:[%s5087_s30 + $0x2e8] sm:$0xff] %v2232_v2  ;;  %v2242_v2 = vmul.f32 %v2805_v0, %v2114_v53  ;;  %v2245_v44 = vmul.f32 %v2808_v41, %v2117_v52  ;;  %v2247_v50 = vmul.f32 %v2810_v51, %v2119_v14  ;;  %v2811_v53 = vld [vmem:[%s3132_s17 + $0x368] sm:$0xff]  ;;  %v2814_v52 = vld [vmem:[%s3132_s17 + $0x380] sm:$0xff]  ;;  %v2816_v14 = vld [vmem:[%s3132_s17 + $0x390] sm:$0xff] }
 0x258   : > { %2361 = vst [vmem:[%s5087_s30 + $0x2f0] sm:$0xff] %v2233_v4  ;;  %v2243_v4 = vmul.f32 %v2806_v17, %v2115_v21  ;;  %v2248_v19 = vmul.f32 %v2811_v53, %v2120_v33  ;;  %v2812_v21 = vld [vmem:[%s3132_s17 + $0x370] sm:$0xff]  ;;  %v2817_v33 = vld [vmem:[%s3132_s17 + $0x398] sm:$0xff] }
 0x259   : > { %2362 = vst.msk [vmem:[%s5087_s30 + $0x2f8] sm:$0xff] %vm6133_vm7, %v2234_v55  ;;  %v2244_v55 = vmul.f32 %v2807_v39, %v2116_v31  ;;  %v2249_v18 = vmul.f32 %v2812_v21, %v2121_v58  ;;  %v2813_v31 = vld [vmem:[%s3132_s17 + $0x378] sm:$0xff]  ;;  %v2818_v58 = vld [vmem:[%s3132_s17 + $0x3a0] sm:$0xff] }
 0x25a   : > { %2363 = vst [vmem:[%s5087_s30 + $0x300] sm:$0xff] %v2235_v56  ;;  %v2122_v56 = vadd.f32 %v6121_v25, %v5273_v32 }
 0x25b   : > { %2364 = vst [vmem:[%s5087_s30 + $0x308] sm:$0xff] %v2236_v45  ;;  %v2123_v45 = vadd.f32 %v6124_v15, %v5273_v32 }
 0x25c   : > { %2365 = vst [vmem:[%s5087_s30 + $0x310] sm:$0xff] %v2237_v62  ;;  %v2124_v62 = vadd.f32 %v4719_v11, %v5273_v32  ;;  %v2250_v24 = vmul.f32 %v2813_v31, %v2122_v56  ;;  %v2819_v56 = vld [vmem:[%s3132_s17 + $0x3a8] sm:$0xff] }
 0x25d   : > { %2366 = vst [vmem:[%s5087_s30 + $0x318] sm:$0xff] %v2238_v48  ;;  %v2125_v48 = vadd.f32 %v4761_v40, %v5273_v32  ;;  %v2251_v34 = vmul.f32 %v2814_v52, %v2123_v45  ;;  %v2820_v45 = vld [vmem:[%s3132_s17 + $0x3b0] sm:$0xff] }
 0x25e   : > { %2367 = vst [vmem:[%s5087_s30 + $0x320] sm:$0xff] %v2239_v35  ;;  %v2126_v35 = vadd.f32 %v4806_v10, %v5273_v32  ;;  %v2252_v0 = vmul.f32 %v2815_v12, %v2124_v62  ;;  %v2821_v62 = vld [vmem:[%s3132_s17 + $0x3b8] sm:$0xff]  ;;  %v2824_v52 = vld [vmem:[%s3132_s17 + $0x3d0] sm:$0xff] }
 0x25f   : > { %2368 = vst [vmem:[%s5087_s30 + $0x328] sm:$0xff] %v2240_v23  ;;  %v2127_v23 = vadd.f32 %v4866_v28, %v5273_v32  ;;  %v2253_v17 = vmul.f32 %v2816_v14, %v2125_v48  ;;  %v2822_v48 = vld [vmem:[%s3132_s17 + $0x3c0] sm:$0xff]  ;;  %v2825_v12 = vld [vmem:[%s3132_s17 + $0x3d8] sm:$0xff] }
 0x260   : > { %2369 = vst [vmem:[%s5087_s30 + $0x330] sm:$0xff] %v2241_v29  ;;  %v2128_v29 = vadd.f32 %v4884_v5, %v5273_v32  ;;  %v2254_v39 = vmul.f32 %v2817_v33, %v2126_v35  ;;  %v2823_v35 = vld [vmem:[%s3132_s17 + $0x3c8] sm:$0xff] }
 0x261   : > { %2370 = vst [vmem:[%s5087_s30 + $0x338] sm:$0xff] %v2242_v2  ;;  %v2129_v2 = vadd.f32 %v4995_v30, %v5273_v32  ;;  %v2255_v41 = vmul.f32 %v2818_v58, %v2127_v23  ;;  %v2137_v23 = vadd.f32 %v5253_v57, %v5273_v32 }
 0x262   : > { %2371 = vst [vmem:[%s5087_s30 + $0x340] sm:$0xff] %v2243_v4  ;;  %v2130_v4 = vadd.f32 %v5012_v54, %v5273_v32  ;;  %v2256_v63 = vmul.f32 %v2819_v56, %v2128_v29  ;;  %v2138_v29 = vadd.f32 %v5259_v9, %v5273_v32 }
 0x263   : > { %2372 = vst [vmem:[%s5087_s30 + $0x348] sm:$0xff] %v2244_v55  ;;  %v2131_v55 = vadd.f32 %v5020_v46, %v5273_v32  ;;  %v2257_v51 = vmul.f32 %v2820_v45, %v2129_v2  ;;  %v2826_v2 = vld [vmem:[%s3132_s17 + $0x3e0] sm:$0xff] }
 0x264   : > { %2373 = vst [vmem:[%s5087_s30 + $0x350] sm:$0xff] %v2245_v44  ;;  %v2132_v44 = vadd.f32 %v5027_v22, %v5273_v32  ;;  %v2258_v53 = vmul.f32 %v2821_v62, %v2130_v4  ;;  %v2827_v4 = vld [vmem:[%s3132_s17 + $0x3e8] sm:$0xff] }
 0x265   : > { %2374 = vst [vmem:[%s5087_s30 + $0x358] sm:$0xff] %v2246_v61  ;;  %v2133_v61 = vadd.f32 %v5221_v13, %v5273_v32  ;;  %v2259_v21 = vmul.f32 %v2822_v48, %v2131_v55 }
 0x266   : > { %2375 = vst [vmem:[%s5087_s30 + $0x360] sm:$0xff] %v2247_v50  ;;  %v2134_v50 = vadd.f32 %v5231_v16, %v5273_v32  ;;  %v2260_v31 = vmul.f32 %v2823_v35, %v2132_v44 }
 0x267   : > { %2376 = vst [vmem:[%s5087_s30 + $0x368] sm:$0xff] %v2248_v19  ;;  %v2135_v19 = vadd.f32 %v5239_v7, %v5273_v32 }
 0x268   : > { %2377 = vst [vmem:[%s5087_s30 + $0x370] sm:$0xff] %v2249_v18  ;;  %v2136_v18 = vadd.f32 %v5247_v37, %v5273_v32 }
 0x269   : > { %2378 = vst [vmem:[%s5087_s30 + $0x378] sm:$0xff] %v2250_v24  ;;  %v5404_v24 = vpop.permute.xlu0 %1961  ;;  %v2263_v14 = vmul.f32 %v2826_v2, %v2135_v19  ;;  %v2832_v19 = vld [vmem:[%s3132_s17 + $0x10] sm:$0xff] }
 0x26a   : > { %2379 = vst [vmem:[%s5087_s30 + $0x380] sm:$0xff] %v2251_v34  ;;  %v2261_v34 = vmul.f32 %v2824_v52, %v2133_v61  ;;  %v2264_v33 = vmul.f32 %v2827_v4, %v2136_v18  ;;  %v2012_v32 = vadd.f32 %v4769_v8, %v5404_v24  ;;  %v2013_v58 = vadd.f32 %v4771_v6, %v5404_v24  ;;  %v2830_v61 = vld [vmem:[%s3132_s17] sm:$0xff]  ;;  %v2833_v18 = vld [vmem:[%s3132_s17 + $0x18] sm:$0xff]  ;;  %v2836_v2 = vld [vmem:[%s3132_s17 + $0x30] sm:$0xff] }
 0x26b   : > { %2380 = vst [vmem:[%s5087_s30 + $0x388] sm:$0xff] %v2252_v0  ;;  %v2262_v0 = vmul.f32 %v2825_v12, %v2134_v50  ;;  %v2014_v56 = vadd.f32 %v4797_v49, %v5404_v24  ;;  %v2831_v50 = vld [vmem:[%s3132_s17 + $0x8] sm:$0xff]  ;;  %v2837_v4 = vld [vmem:[%s3132_s17 + $0x38] sm:$0xff] }
 0x26c   : > { %2381 = vst [vmem:[%s5087_s30 + $0x390] sm:$0xff] %v2253_v17  ;;  %v2011_v17 = vadd.f32 %v4766_v36, %v5404_v24  ;;  %v2140_v62 = vmul.f32 %v2831_v50, %v2012_v32  ;;  %v2141_v48 = vmul.f32 %v2832_v19, %v2013_v58  ;;  %v2023_v32 = vadd.f32 %v6118_v42, %v5404_v24 }
 0x26d   : > { %2382 = vst [vmem:[%s5087_s30 + $0x398] sm:$0xff] %v2254_v39  ;;  %v2828_v39 = vld [vmem:[%s3132_s17 + $0x3f0] sm:$0xff]  ;;  %v2142_v35 = vmul.f32 %v2833_v18, %v2014_v56  ;;  %v2024_v58 = vadd.f32 %v6119_v60, %v5404_v24  ;;  %v2025_v56 = vadd.f32 %v6120_v3, %v5404_v24 }
 0x26e   : > { %2383 = vst [vmem:[%s5087_s30 + $0x3a0] sm:$0xff] %v2255_v41  ;;  %v2265_v55 = vmul.f32 %v2828_v39, %v2137_v23  ;;  %v2829_v41 = vld [vmem:[%s3132_s17 + $0x3f8] sm:$0xff]  ;;  %v2139_v45 = vmul.f32 %v2830_v61, %v2011_v17  ;;  %v2834_v23 = vld [vmem:[%s3132_s17 + $0x20] sm:$0xff]  ;;  %v2022_v17 = vadd.f32 %v4859_v1, %v5404_v24 }
 0x26f   : > { %2384 = vst [vmem:[%s5087_s30 + $0x3a8] sm:$0xff] %v2256_v63  ;;  %v2266_v44 = vmul.f32 %v2829_v41, %v2138_v29  ;;  %v2015_v63 = vadd.f32 %v4800_v20, %v5404_v24  ;;  %v2835_v29 = vld [vmem:[%s3132_s17 + $0x28] sm:$0xff]  ;;  %v2838_v39 = vld [vmem:[%s3132_s17 + $0x40] sm:$0xff] }
 0x270   : > { %2385 = vst [vmem:[%s5087_s30 + $0x3b0] sm:$0xff] %v2257_v51  ;;  %v2016_v51 = vadd.f32 %v4803_v38, %v5404_v24  ;;  %v2839_v41 = vld [vmem:[%s3132_s17 + $0x48] sm:$0xff] }
 0x271   : > { %2386 = vst [vmem:[%s5087_s30 + $0x3b8] sm:$0xff] %v2258_v53  ;;  %v2017_v53 = vadd.f32 %v4833_v43, %v5404_v24  ;;  %v2143_v52 = vmul.f32 %v2834_v23, %v2015_v63  ;;  %v2840_v63 = vld [vmem:[%s3132_s17 + $0x50] sm:$0xff] }
 0x272   : > { %2387 = vst [vmem:[%s5087_s30 + $0x3c0] sm:$0xff] %v2259_v21  ;;  %v2018_v21 = vadd.f32 %v4840_v59, %v5404_v24  ;;  %v2144_v12 = vmul.f32 %v2835_v29, %v2016_v51  ;;  %v2841_v51 = vld [vmem:[%s3132_s17 + $0x58] sm:$0xff] }
 0x273   : > { %2388 = vst [vmem:[%s5087_s30 + $0x3c8] sm:$0xff] %v2260_v31  ;;  %v2019_v31 = vadd.f32 %v4842_v47, %v5404_v24  ;;  %v2150_v50 = vmul.f32 %v2841_v51, %v2022_v17  ;;  %v2847_v17 = vld [vmem:[%s3132_s17 + $0x88] sm:$0xff] }
 0x274   : > { %2389 = vst [vmem:[%s5087_s30 + $0x3d0] sm:$0xff] %v2261_v34  ;;  %v2020_v34 = vadd.f32 %v4844_v26, %v5404_v24 }
 0x275   : > { %2390 = vst [vmem:[%s5087_s30 + $0x3d8] sm:$0xff] %v2262_v0  ;;  %v2021_v0 = vadd.f32 %v4857_v27, %v5404_v24 }
 0x276   : > { %2391 = vst [vmem:[%s5087_s30 + $0x3e0] sm:$0xff] %v2263_v14  ;;  %v2145_v14 = vmul.f32 %v2836_v2, %v2017_v53  ;;  %v2842_v53 = vld [vmem:[%s3132_s17 + $0x60] sm:$0xff] }
 0x277   : > { %2392 = vst [vmem:[%s5087_s30 + $0x3e8] sm:$0xff] %v2264_v33  ;;  %v2146_v33 = vmul.f32 %v2837_v4, %v2018_v21  ;;  %v2149_v61 = vmul.f32 %v2840_v63, %v2021_v0  ;;  %v2151_v19 = vmul.f32 %v2842_v53, %v2023_v32  ;;  %v2843_v21 = vld [vmem:[%s3132_s17 + $0x68] sm:$0xff]  ;;  %v2846_v0 = vld [vmem:[%s3132_s17 + $0x80] sm:$0xff]  ;;  %v2848_v32 = vld [vmem:[%s3132_s17 + $0x90] sm:$0xff] }
 0x278   : > { %2393 = vst [vmem:[%s5087_s30 + $0x3f0] sm:$0xff] %v2265_v55  ;;  %v2147_v55 = vmul.f32 %v2838_v39, %v2019_v31  ;;  %v2152_v18 = vmul.f32 %v2843_v21, %v2024_v58  ;;  %v2844_v31 = vld [vmem:[%s3132_s17 + $0x70] sm:$0xff]  ;;  %v2849_v58 = vld [vmem:[%s3132_s17 + $0x98] sm:$0xff] }
 0x279   : > { %2394 = vst.msk [vmem:[%s5087_s30 + $0x3f8] sm:$0xff] %vm6134_vm12, %v2266_v44  ;;  %v2148_v44 = vmul.f32 %v2839_v41, %v2020_v34  ;;  %v2153_v23 = vmul.f32 %v2844_v31, %v2025_v56  ;;  %v2845_v34 = vld [vmem:[%s3132_s17 + $0x78] sm:$0xff]  ;;  %v2850_v56 = vld [vmem:[%s3132_s17 + $0xa0] sm:$0xff] }
 0x27a   : > { %2267 = vst [vmem:[%s5087_s30] sm:$0xff] %v2139_v45  ;;  %v2026_v45 = vadd.f32 %v6121_v25, %v5404_v24 }
 0x27b   : > { %2268 = vst [vmem:[%s5087_s30 + $0x8] sm:$0xff] %v2140_v62  ;;  %v2027_v62 = vadd.f32 %v6124_v15, %v5404_v24 }
 0x27c   : > { %2269 = vst [vmem:[%s5087_s30 + $0x10] sm:$0xff] %v2141_v48  ;;  %v2028_v48 = vadd.f32 %v4719_v11, %v5404_v24  ;;  %v2154_v29 = vmul.f32 %v2845_v34, %v2026_v45  ;;  %v2851_v45 = vld [vmem:[%s3132_s17 + $0xa8] sm:$0xff] }
 0x27d   : > { %2270 = vst [vmem:[%s5087_s30 + $0x18] sm:$0xff] %v2142_v35  ;;  %v2029_v35 = vadd.f32 %v4761_v40, %v5404_v24  ;;  %v2155_v2 = vmul.f32 %v2846_v0, %v2027_v62  ;;  %v2852_v62 = vld [vmem:[%s3132_s17 + $0xb0] sm:$0xff] }
 0x27e   : > { %2271 = vst [vmem:[%s5087_s30 + $0x20] sm:$0xff] %v2143_v52  ;;  %v2030_v52 = vadd.f32 %v4806_v10, %v5404_v24  ;;  %v2156_v4 = vmul.f32 %v2847_v17, %v2028_v48  ;;  %v2853_v48 = vld [vmem:[%s3132_s17 + $0xb8] sm:$0xff]  ;;  %v2856_v0 = vld [vmem:[%s3132_s17 + $0xd0] sm:$0xff] }
 0x27f   : > { %2272 = vst [vmem:[%s5087_s30 + $0x28] sm:$0xff] %v2144_v12  ;;  %v2031_v12 = vadd.f32 %v4866_v28, %v5404_v24  ;;  %v2157_v39 = vmul.f32 %v2848_v32, %v2029_v35  ;;  %v2854_v35 = vld [vmem:[%s3132_s17 + $0xc0] sm:$0xff]  ;;  %v2857_v17 = vld [vmem:[%s3132_s17 + $0xd8] sm:$0xff] }
 0x280   : > { %2273 = vst [vmem:[%s5087_s30 + $0x30] sm:$0xff] %v2145_v14  ;;  %v2032_v14 = vadd.f32 %v4884_v5, %v5404_v24  ;;  %v2158_v41 = vmul.f32 %v2849_v58, %v2030_v52  ;;  %v2855_v52 = vld [vmem:[%s3132_s17 + $0xc8] sm:$0xff] }
 0x281   : > { %2274 = vst [vmem:[%s5087_s30 + $0x38] sm:$0xff] %v2146_v33  ;;  %v2033_v33 = vadd.f32 %v4995_v30, %v5404_v24  ;;  %v2159_v63 = vmul.f32 %v2850_v56, %v2031_v12  ;;  %v2041_v12 = vadd.f32 %v5253_v57, %v5404_v24 }
 0x282   : > { %2275 = vst [vmem:[%s5087_s30 + $0x40] sm:$0xff] %v2147_v55  ;;  %v2034_v55 = vadd.f32 %v5012_v54, %v5404_v24  ;;  %v2160_v51 = vmul.f32 %v2851_v45, %v2032_v14  ;;  %v2042_v14 = vadd.f32 %v5259_v9, %v5404_v24  ;;  %v2862_v45 = vld [vmem:[%s3132_s17 + $0x100] sm:$0xff] }
 0x283   : > { %2276 = vst [vmem:[%s5087_s30 + $0x48] sm:$0xff] %v2148_v44  ;;  %v2035_v44 = vadd.f32 %v5020_v46, %v5404_v24  ;;  %v2161_v53 = vmul.f32 %v2852_v62, %v2033_v33  ;;  %v2858_v33 = vld [vmem:[%s3132_s17 + $0xe0] sm:$0xff] }
 0x284   : > { %2277 = vst [vmem:[%s5087_s30 + $0x50] sm:$0xff] %v2149_v61  ;;  %v2036_v61 = vadd.f32 %v5027_v22, %v5404_v24  ;;  %v2162_v21 = vmul.f32 %v2853_v48, %v2034_v55  ;;  %v2859_v55 = vld [vmem:[%s3132_s17 + $0xe8] sm:$0xff]  ;;  %v2865_v48 = vld [vmem:[%s3132_s17 + $0x118] sm:$0xff] }
 0x285   : > { %2278 = vst [vmem:[%s5087_s30 + $0x58] sm:$0xff] %v2150_v50  ;;  %v2037_v50 = vadd.f32 %v5221_v13, %v5404_v24  ;;  %v2163_v31 = vmul.f32 %v2854_v35, %v2035_v44 }
 0x286   : > { %2279 = vst [vmem:[%s5087_s30 + $0x60] sm:$0xff] %v2151_v19  ;;  %v2038_v19 = vadd.f32 %v5231_v16, %v5404_v24  ;;  %v2164_v34 = vmul.f32 %v2855_v52, %v2036_v61  ;;  %v2868_v52 = vld [vmem:[%s3132_s17 + $0x130] sm:$0xff] }
 0x287   : > { %2280 = vst [vmem:[%s5087_s30 + $0x68] sm:$0xff] %v2152_v18  ;;  %v2039_v18 = vadd.f32 %v5239_v7, %v5404_v24 }
 0x288   : > { %2281 = vst [vmem:[%s5087_s30 + $0x70] sm:$0xff] %v2153_v23  ;;  %v2040_v23 = vadd.f32 %v5247_v37, %v5404_v24 }
 0x289   : > { %2282 = vst [vmem:[%s5087_s30 + $0x78] sm:$0xff] %v2154_v29  ;;  %v5535_v29 = vpop.permute.xlu1 %1966  ;;  %v2167_v32 = vmul.f32 %v2858_v33, %v2039_v18  ;;  %v2866_v18 = vld [vmem:[%s3132_s17 + $0x120] sm:$0xff]  ;;  %v2872_v33 = vld [vmem:[%s3132_s17 + $0x150] sm:$0xff] }
 0x28a   : > { %2283 = vst [vmem:[%s5087_s30 + $0x80] sm:$0xff] %v2155_v2  ;;  %v2165_v2 = vmul.f32 %v2856_v0, %v2037_v50  ;;  %v2168_v58 = vmul.f32 %v2859_v55, %v2040_v23  ;;  %v2044_v24 = vadd.f32 %v4769_v8, %v5535_v29  ;;  %v2045_v56 = vadd.f32 %v4771_v6, %v5535_v29  ;;  %v2863_v50 = vld [vmem:[%s3132_s17 + $0x108] sm:$0xff] }
 0x28b   : > { %2284 = vst [vmem:[%s5087_s30 + $0x88] sm:$0xff] %v2156_v4  ;;  %v2166_v4 = vmul.f32 %v2857_v17, %v2038_v19  ;;  %v2047_v8 = vadd.f32 %v4800_v20, %v5535_v29  ;;  %v2048_v6 = vadd.f32 %v4803_v38, %v5535_v29  ;;  %v2050_v20 = vadd.f32 %v4840_v59, %v5535_v29  ;;  %v2871_v17 = vld [vmem:[%s3132_s17 + $0x148] sm:$0xff] }
 0x28c   : > { %2285 = vst [vmem:[%s5087_s30 + $0x90] sm:$0xff] %v2157_v39  ;;  %v2043_v39 = vadd.f32 %v4766_v36, %v5535_v29  ;;  %v2046_v36 = vadd.f32 %v4797_v49, %v5535_v29  ;;  %v2172_v62 = vmul.f32 %v2863_v50, %v2044_v24  ;;  %v2049_v49 = vadd.f32 %v4833_v43, %v5535_v29  ;;  %v2880_v50 = vld [vmem:[%s3132_s17 + $0x190] sm:$0xff] }
 0x28d   : > { %2286 = vst [vmem:[%s5087_s30 + $0x98] sm:$0xff] %v2158_v41  ;;  %v2860_v41 = vld [vmem:[%s3132_s17 + $0xf0] sm:$0xff]  ;;  %v2175_v35 = vmul.f32 %v2866_v18, %v2047_v8  ;;  %v2052_v43 = vadd.f32 %v4844_v26, %v5535_v29  ;;  %v2053_v59 = vadd.f32 %v4857_v27, %v5535_v29  ;;  %v2055_v26 = vadd.f32 %v6118_v42, %v5535_v29  ;;  %v2878_v8 = vld [vmem:[%s3132_s17 + $0x180] sm:$0xff] }
 0x28e   : > { %2287 = vst [vmem:[%s5087_s30 + $0xa0] sm:$0xff] %v2159_v63  ;;  %v2169_v44 = vmul.f32 %v2860_v41, %v2041_v12  ;;  %v2861_v63 = vld [vmem:[%s3132_s17 + $0xf8] sm:$0xff]  ;;  %v2174_v38 = vmul.f32 %v2865_v48, %v2046_v36  ;;  %v2056_v27 = vadd.f32 %v6119_v60, %v5535_v29  ;;  %v2058_v42 = vadd.f32 %v6121_v25, %v5535_v29  ;;  %v2875_v41 = vld [vmem:[%s3132_s17 + $0x168] sm:$0xff] }
 0x28f   : > { %2288 = vst [vmem:[%s5087_s30 + $0xa8] sm:$0xff] %v2160_v51  ;;  %v2170_v61 = vmul.f32 %v2861_v63, %v2042_v14  ;;  %v2171_v51 = vmul.f32 %v2862_v45, %v2043_v39  ;;  %v2869_v12 = vld [vmem:[%s3132_s17 + $0x138] sm:$0xff]  ;;  %v2059_v60 = vadd.f32 %v6124_v15, %v5535_v29  ;;  %v2061_v25 = vadd.f32 %v4761_v40, %v5535_v29  ;;  %v2883_v48 = vld [vmem:[%s3132_s17 + $0x1a8] sm:$0xff] }
 0x290   : > { %2289 = vst [vmem:[%s5087_s30 + $0xb0] sm:$0xff] %v2161_v53  ;;  %v2864_v53 = vld [vmem:[%s3132_s17 + $0x110] sm:$0xff]  ;;  %v2178_v0 = vmul.f32 %v2869_v12, %v2050_v20  ;;  %v2873_v39 = vld [vmem:[%s3132_s17 + $0x158] sm:$0xff]  ;;  %v2062_v15 = vadd.f32 %v4806_v10, %v5535_v29  ;;  %v2064_v40 = vadd.f32 %v4884_v5, %v5535_v29  ;;  %v2065_v10 = vadd.f32 %v4995_v30, %v5535_v29 }
 0x291   : > { %2290 = vst [vmem:[%s5087_s30 + $0xb8] sm:$0xff] %v2162_v21  ;;  %v2173_v19 = vmul.f32 %v2864_v53, %v2045_v56  ;;  %v2051_v21 = vadd.f32 %v4842_v47, %v5535_v29  ;;  %v2054_v47 = vadd.f32 %v4859_v1, %v5535_v29  ;;  %v2057_v1 = vadd.f32 %v6120_v3, %v5535_v29  ;;  %v2876_v56 = vld [vmem:[%s3132_s17 + $0x170] sm:$0xff] }
 0x292   : > { %2291 = vst [vmem:[%s5087_s30 + $0xc0] sm:$0xff] %v2163_v31  ;;  %v2867_v31 = vld [vmem:[%s3132_s17 + $0x128] sm:$0xff]  ;;  %v2060_v3 = vadd.f32 %v4719_v11, %v5535_v29  ;;  %v2063_v11 = vadd.f32 %v4866_v28, %v5535_v29  ;;  %v2187_v45 = vmul.f32 %v2878_v8, %v2059_v60  ;;  %v2066_v28 = vadd.f32 %v5012_v54, %v5535_v29 }
 0x293   : > { %2292 = vst [vmem:[%s5087_s30 + $0xc8] sm:$0xff] %v2164_v34  ;;  %v2176_v23 = vmul.f32 %v2867_v31, %v2048_v6  ;;  %v2177_v34 = vmul.f32 %v2868_v52, %v2049_v49  ;;  %v2182_v55 = vmul.f32 %v2873_v39, %v2054_v47  ;;  %v2185_v63 = vmul.f32 %v2876_v56, %v2057_v1  ;;  %v2881_v49 = vld [vmem:[%s3132_s17 + $0x198] sm:$0xff]  ;;  %v2886_v31 = vld [vmem:[%s3132_s17 + $0x1c0] sm:$0xff] }
 0x294   : > { %2293 = vst [vmem:[%s5087_s30 + $0xd0] sm:$0xff] %v2165_v2  ;;  %v2870_v2 = vld [vmem:[%s3132_s17 + $0x140] sm:$0xff]  ;;  %v2190_v53 = vmul.f32 %v2881_v49, %v2062_v15  ;;  %v2067_v5 = vadd.f32 %v5020_v46, %v5535_v29  ;;  %v2068_v30 = vadd.f32 %v5027_v22, %v5535_v29  ;;  %v2069_v54 = vadd.f32 %v5221_v13, %v5535_v29  ;;  %v2889_v47 = vld [vmem:[%s3132_s17 + $0x1d8] sm:$0xff] }
 0x295   : > { %2294 = vst [vmem:[%s5087_s30 + $0xd8] sm:$0xff] %v2166_v4  ;;  %v2179_v14 = vmul.f32 %v2870_v2, %v2051_v21  ;;  %v2180_v4 = vmul.f32 %v2871_v17, %v2052_v43  ;;  %v2884_v21 = vld [vmem:[%s3132_s17 + $0x1b0] sm:$0xff]  ;;  %v2070_v46 = vadd.f32 %v5231_v16, %v5535_v29  ;;  %v2071_v22 = vadd.f32 %v5239_v7, %v5535_v29  ;;  %v2887_v16 = vld [vmem:[%s3132_s17 + $0x1c8] sm:$0xff] }
 0x296   : > { %2295 = vst [vmem:[%s5087_s30 + $0xe0] sm:$0xff] %v2167_v32  ;;  %v2181_v32 = vmul.f32 %v2872_v33, %v2053_v59  ;;  %v2193_v18 = vmul.f32 %v2884_v21, %v2065_v10  ;;  %v2195_v13 = vmul.f32 %v2886_v31, %v2067_v5  ;;  %v2196_v59 = vmul.f32 %v2887_v16, %v2068_v30 }
 0x297   : > { %2296 = vst [vmem:[%s5087_s30 + $0xe8] sm:$0xff] %v2168_v58  ;;  %v2874_v58 = vld [vmem:[%s3132_s17 + $0x160] sm:$0xff]  ;;  %v2073_v52 = vadd.f32 %v5253_v57, %v5535_v29  ;;  %v2198_v12 = vmul.f32 %v2889_v47, %v2070_v46 }
 0x298   : > { %2297 = vst [vmem:[%s5087_s30 + $0xf0] sm:$0xff] %v2169_v44  ;;  %v2183_v24 = vmul.f32 %v2874_v58, %v2055_v26  ;;  %v2184_v44 = vmul.f32 %v2875_v41, %v2056_v27  ;;  %v2891_v26 = vld [vmem:[%s3132_s17 + $0x1e8] sm:$0xff] }
 0x299   : > { %2298 = vst.msk [vmem:[%s5087_s30 + $0xf8] sm:$0xff] %vm6135_vm0, %v2170_v61  ;;  %v2877_v61 = vld [vmem:[%s3132_s17 + $0x178] sm:$0xff] }
 0x29a   : > { %2299 = vst [vmem:[%s5087_s30 + $0x100] sm:$0xff] %v2171_v51  ;;  %v2186_v36 = vmul.f32 %v2877_v61, %v2058_v42  ;;  %v2879_v51 = vld [vmem:[%s3132_s17 + $0x188] sm:$0xff] }
 0x29b   : > { %2300 = vst [vmem:[%s5087_s30 + $0x108] sm:$0xff] %v2172_v62  ;;  %v2188_v6 = vmul.f32 %v2879_v51, %v2060_v3  ;;  %v2189_v62 = vmul.f32 %v2880_v50, %v2061_v25 }
 0x29c   : > { %2301 = vst [vmem:[%s5087_s30 + $0x110] sm:$0xff] %v2173_v19  ;;  %v2882_v19 = vld [vmem:[%s3132_s17 + $0x1a0] sm:$0xff] }
 0x29d   : > { %2302 = vst [vmem:[%s5087_s30 + $0x118] sm:$0xff] %v2174_v38  ;;  %v2191_v20 = vmul.f32 %v2882_v19, %v2063_v11  ;;  %v2192_v38 = vmul.f32 %v2883_v48, %v2064_v40 }
 0x29e   : > { %2303 = vst [vmem:[%s5087_s30 + $0x120] sm:$0xff] %v2175_v35  ;;  %v2885_v35 = vld [vmem:[%s3132_s17 + $0x1b8] sm:$0xff] }
 0x29f   : > { %2304 = vst [vmem:[%s5087_s30 + $0x128] sm:$0xff] %v2176_v23  ;;  %v2194_v43 = vmul.f32 %v2885_v35, %v2066_v28  ;;  %v2072_v23 = vadd.f32 %v5247_v37, %v5535_v29  ;;  %v2074_v37 = vadd.f32 %v5259_v9, %v5535_v29  ;;  %v2893_v9 = vld [vmem:[%s3132_s17 + $0x1f8] sm:$0xff] }
 0x2a0   : > { %2305 = vst [vmem:[%s5087_s30 + $0x130] sm:$0xff] %v2177_v34  ;;  %v2888_v34 = vld [vmem:[%s3132_s17 + $0x1d0] sm:$0xff] }
 0x2a1   : > { %2306 = vst [vmem:[%s5087_s30 + $0x138] sm:$0xff] %v2178_v0  ;;  %v2197_v7 = vmul.f32 %v2888_v34, %v2069_v54  ;;  %v2890_v0 = vld [vmem:[%s3132_s17 + $0x1e0] sm:$0xff]  ;;  %v2200_v2 = vmul.f32 %v2891_v26, %v2072_v23  ;;  %v2202_v29 = vmul.f32 %v2893_v9, %v2074_v37 }
 0x2a2   : > { %2307 = vst [vmem:[%s5087_s30 + $0x140] sm:$0xff] %v2179_v14  ;;  %v2199_v57 = vmul.f32 %v2890_v0, %v2071_v22  ;;  %v2892_v14 = vld [vmem:[%s3132_s17 + $0x1f0] sm:$0xff]  ;;  %s2944_s17 = scalar_lea.hbm %s5728_s7, 2048 }
 0x2a3   : > { %2308 = vst [vmem:[%s5087_s30 + $0x148] sm:$0xff] %v2180_v4  ;;  %v2201_v27 = vmul.f32 %v2892_v14, %v2073_v52  ;;  %p2946_p1 = scmp.lt.s32.totalorder %s2944_s17, %s2940_s10 }
 0x2a4   : > { %2309 = vst [vmem:[%s5087_s30 + $0x150] sm:$0xff] %v2181_v32 }
 0x2a5   : > { %2310 = vst [vmem:[%s5087_s30 + $0x158] sm:$0xff] %v2182_v55  ;;  %p2947_p3 = por %p2946_p1, %p2945_p0 }
 0x2a6   : > { %2311 = vst [vmem:[%s5087_s30 + $0x160] sm:$0xff] %v2183_v24 }
 0x2a7   : > { %2312 = vst [vmem:[%s5087_s30 + $0x168] sm:$0xff] %v2184_v44  ;;  %p2948_p4 = pnand %p2947_p3, %p2943_p13 }
 0x2a8   : > { %2313 = vst [vmem:[%s5087_s30 + $0x170] sm:$0xff] %v2185_v63 }
 0x2a9   : > { %2314 = vst [vmem:[%s5087_s30 + $0x178] sm:$0xff] %v2186_v36 }
 0x2aa   : > { %2315 = vst [vmem:[%s5087_s30 + $0x180] sm:$0xff] %v2187_v45 }
 0x2ab   : > { %2316 = vst [vmem:[%s5087_s30 + $0x188] sm:$0xff] %v2188_v6 }
 0x2ac   : > { %2317 = vst [vmem:[%s5087_s30 + $0x190] sm:$0xff] %v2189_v62 }
 0x2ad   : > { %2318 = vst [vmem:[%s5087_s30 + $0x198] sm:$0xff] %v2190_v53 }
 0x2ae   : > { %2319 = vst [vmem:[%s5087_s30 + $0x1a0] sm:$0xff] %v2191_v20 }
 0x2af   : > { %2320 = vst [vmem:[%s5087_s30 + $0x1a8] sm:$0xff] %v2192_v38 }
 0x2b0   : > { %2321 = vst [vmem:[%s5087_s30 + $0x1b0] sm:$0xff] %v2193_v18 }
 0x2b1   : > { %2322 = vst [vmem:[%s5087_s30 + $0x1b8] sm:$0xff] %v2194_v43 }
 0x2b2   : > { %2323 = vst [vmem:[%s5087_s30 + $0x1c0] sm:$0xff] %v2195_v13 }
 0x2b3   : > { %2324 = vst [vmem:[%s5087_s30 + $0x1c8] sm:$0xff] %v2196_v59 }
 0x2b4   : > { %2325 = vst [vmem:[%s5087_s30 + $0x1d0] sm:$0xff] %v2197_v7 }
 0x2b5   : > { %2326 = vst [vmem:[%s5087_s30 + $0x1d8] sm:$0xff] %v2198_v12 }
 0x2b6   : > { %2327 = vst [vmem:[%s5087_s30 + $0x1e0] sm:$0xff] %v2199_v57 }
 0x2b7   : > { %2328 = vst [vmem:[%s5087_s30 + $0x1e8] sm:$0xff] %v2200_v2 }
 0x2b8   : > { %2329 = vst [vmem:[%s5087_s30 + $0x1f0] sm:$0xff] %v2201_v27 }
 0x2b9   : > { %2330 = vst.msk [vmem:[%s5087_s30 + $0x1f8] sm:$0xff] %vm6136_vm5, %v2202_v29 }
 0x2ba   : > { %2951 = shalt.err (!%p2948_p4)
}
 0x2bb   : > { %s2995_s23 = smov 4096   ;;  %s2996_s30 = smov 256  }
 0x2bc   : > { %2570 = dma.vmem_to_hbm [thread:$0]  (%p3090_p11), %s2409_s19, 16384, %s2411_s20, %s2396_s16, %s2995_s23, %s2995_s23, %s2996_s30  }
 0x2bd PF: > { %s2425_s9 = sand.u32 1, %s2978_s26   ;;  %p6137_p7 = scmp.ge.s32.totalorder %s2990_s29, 2 }
 0x2be   : > { %s2426_s6 = scalar_lea.sflag [#allocation5], %s2425_s9 }
 0x2bf   : > { %p2577_p5 = pnand %p6137_p7, %p3094_p12 }
 0x2c1   : > { %p2578_p8 = pneg %p2577_p5 }
 0x2c3   : > { %2973 = dma.done.wait (%p2578_p8), %s2426_s6, 16384  }
 0x2c4   : > { %2975 = vsyncadd (%p2578_p8), %s2426_s6, 4294950912  ;;  %p22_p10 = scmp.ge.s32.totalorder %s3065_s8, 4   ;;  %s6138_s26 = smov %s2982_s27 }
 0x2c5   : > { %s6139_s27 = smov %s2986_s28  ;;  %s6140_s28 = smov %s3077_s11 }
 0x2c6   : > { %s6141_s29 = smov %s3065_s8  ;;  %24 = sbr.rel (!%p22_p10) target bundleno = 8 (0x8), region = 93 }
 0x2cb   :  { %2432 = vsyncpa [#allocation4], 1 }
 0x2cc   :  { %2434 = vsyncpa [#allocation4 + $0x1], 1 }
 0x2cd   :  { %2435 = vsyncpa [#allocation5], 1 }
 0x2ce   :  { %2437 = vsyncpa [#allocation5 + $0x1], 1 }

</bundles_post_ra>
